<compile_context>
chip_gen: v7x
topology: tpu7x:2x2x1
jax: 0.10.0
libtpu: 0.0.40
codegen_flags: <defaults>
</compile_context>

<pallas_src>
import functools

import numpy as np
import jax
import jax.numpy as jnp
from jax import lax
from jax.experimental import pallas as pl
from jax.experimental.pallas import tpu as pltpu
from jax.scipy.special import xlogy

EPS = 1e-6
# Scoped-VMEM budget: above v5e's 16 MiB default, within v6e defaults and with
# headroom inside v7x's 64 MiB physical VMEM.
_VMEM_LIMIT_BYTES = 32 * 1024 * 1024


def _pick_k_tile(K):
    """Largest K tile in {512, 256, 128} that divides K exactly (else full K)."""
    for t in (512, 256, 128):
        if K > t and K % t == 0:
            return t
    return K


# --------------------------------------------------------------------------
# Pallas kernel: "fuse" 1x1 conv   out = a @ Wa + b @ Wb   (bias-free)
# Tiled over (M, N, K), f32 VMEM accumulator, bf16 MXU operands.  Splitting the
# weight removes the torch.cat([a, b], dim=1) channel-concat HBM round trip.
# --------------------------------------------------------------------------
def _fuse_kernel(a_ref, b_ref, wa_ref, wb_ref, o_ref, acc_ref):
    k = pl.program_id(2)

    @pl.when(k == 0)
    def _():
        acc_ref[...] = jnp.zeros_like(acc_ref)

    acc_ref[...] += (
        jnp.dot(a_ref[...], wa_ref[...], preferred_element_type=jnp.float32)
        + jnp.dot(b_ref[...], wb_ref[...], preferred_element_type=jnp.float32)
    )

    @pl.when(k == pl.num_programs(2) - 1)
    def _():
        o_ref[...] = acc_ref[...].astype(o_ref.dtype)


def fuse_matmul(a, b, wa, wb):
    """(M, K) @ (K, N) + (M, K) @ (K, N), K-tiled, bf16 MXU, f32 accumulate."""
    M, K = a.shape
    K2, N = wa.shape
    assert K == K2 and b.shape == a.shape and wb.shape == wa.shape
    tm = M if M <= 256 else 256          # multiple of 8 (or full M)
    tn = N if N <= 256 else 256          # multiple of 128 (or full N)
    tk = _pick_k_tile(K)                 # divides K exactly
    grid = (pl.cdiv(M, tm), pl.cdiv(N, tn), K // tk)
    return pl.pallas_call(
        _fuse_kernel,
        out_shape=jax.ShapeDtypeStruct((M, N), jnp.float32),
        grid=grid,
        in_specs=[
            pl.BlockSpec((tm, tk), lambda i, j, k: (i, k)),
            pl.BlockSpec((tm, tk), lambda i, j, k: (i, k)),
            pl.BlockSpec((tk, tn), lambda i, j, k: (k, j)),
            pl.BlockSpec((tk, tn), lambda i, j, k: (k, j)),
        ],
        out_specs=pl.BlockSpec((tm, tn), lambda i, j, k: (i, j)),
        scratch_shapes=[pltpu.VMEM((tm, tn), jnp.float32)],
        compiler_params=pltpu.CompilerParams(
            dimension_semantics=("parallel", "parallel", "arbitrary"),
            vmem_limit_bytes=_VMEM_LIMIT_BYTES),
    )(a.astype(jnp.bfloat16), b.astype(jnp.bfloat16),
      wa.astype(jnp.bfloat16), wb.astype(jnp.bfloat16))


# --------------------------------------------------------------------------
# Pallas kernel: DistributionUncertainty (training-mode) normalization.
# Per-channel statistics are independent, so the channel axis is tiled/parallel.
# --------------------------------------------------------------------------
def _dsu_kernel(x_ref, em_ref, es_ref, o_ref, *, n, hw):
    x = x_ref[...]                                           # (N, HW, tc) f32
    mean = jnp.mean(x, axis=1, keepdims=True)                # (N, 1, tc)
    var = jnp.sum((x - mean) ** 2, axis=1, keepdims=True) / (hw - 1)   # unbiased
    var_eps = var + EPS
    std = jnp.sqrt(var_eps)                                  # needed for gamma
    inv_std = lax.rsqrt(var_eps)                             # EUP, no VALU divide
    mu = mean[:, 0, :]                                       # (N, tc)
    sd = std[:, 0, :]
    mu_m = jnp.mean(mu, axis=0, keepdims=True)
    sv_mu = jnp.sqrt(jnp.sum((mu - mu_m) ** 2, axis=0, keepdims=True) / (n - 1) + EPS)
    sd_m = jnp.mean(sd, axis=0, keepdims=True)
    sv_sd = jnp.sqrt(jnp.sum((sd - sd_m) ** 2, axis=0, keepdims=True) / (n - 1) + EPS)
    beta = mu + em_ref[...] * sv_mu                          # (N, tc)
    gamma = sd + es_ref[...] * sv_sd                         # (N, tc)
    o_ref[...] = (x - mean) * inv_std * gamma[:, None, :] + beta[:, None, :]


def dsu(x_nhwc, eps_mu, eps_std):
    N, H, W, C = x_nhwc.shape
    assert N > 1, "DSU batch statistics need at least 2 samples"
    HW = H * W
    x = x_nhwc.reshape(N, HW, C)
    tc = 128 if (C % 128 == 0 and C > 128) else C
    kern = functools.partial(_dsu_kernel, n=N, hw=HW)
    out = pl.pallas_call(
        kern,
        out_shape=jax.ShapeDtypeStruct((N, HW, C), jnp.float32),
        grid=(C // tc,),
        in_specs=[
            pl.BlockSpec((N, HW, tc), lambda c: (0, 0, c)),
            pl.BlockSpec((N, tc), lambda c: (0, c)),
            pl.BlockSpec((N, tc), lambda c: (0, c)),
        ],
        out_specs=pl.BlockSpec((N, HW, tc), lambda c: (0, 0, c)),
        compiler_params=pltpu.CompilerParams(
            dimension_semantics=("parallel",),
            vmem_limit_bytes=_VMEM_LIMIT_BYTES),
    )(x, eps_mu, eps_std)
    return out.reshape(N, H, W, C)


# --------------------------------------------------------------------------
# Pallas kernels: per-batch depthwise cross-correlation (groups=C conv),
# channel-tiled, with the adap_down 1x1 conv fused into the epilogue.
# --------------------------------------------------------------------------
def _dw_xcorr_block(fs_ref, ft_ref, *, ht, wt, ho, wo):
    """Depthwise xcorr of one (batch, channel-tile) block.

    fs_ref block: (1, Hs, Wp, tc) bf16 (W zero-padded to a multiple of 8).
    ft_ref block: (1, ht, wt, tc) bf16.
    Returns (ho, wo, tc) f32.
    """
    fs = fs_ref[0].astype(jnp.float32)                       # (Hs, Wp, tc)
    ft = ft_ref[0].astype(jnp.float32)                       # (ht, wt, tc)
    wp = fs.shape[1]
    acc = jnp.zeros((ho, wo, fs.shape[-1]), jnp.float32)
    for dx in range(wt):
        # One XLU sublane roll per dx; every VPU slice below then starts at an
        # aligned sublane offset 0 with a multiple-of-8 width (wrapped columns
        # land beyond wo and are never read).
        fs_dx = fs if dx == 0 else pltpu.roll(fs, wp - dx, 1)
        for dy in range(ht):
            patch = fs_dx[dy:dy + ho, 0:wo, :]               # (ho, wo, tc)
            ker = ft[dy, dx, :][None, None, :]               # (1, 1, tc)
            acc = acc + patch * ker
    return acc


def _xcorr_adap_kernel(fs_ref, ft_ref, w_ref, b_ref, o_adap_ref, o_chan_ref,
                       *, ht, wt, ho, wo, c_total):
    c = pl.program_id(1)

    @pl.when(c == 0)
    def _():
        o_adap_ref[...] = jnp.broadcast_to(b_ref[...][:, None, :], o_adap_ref.shape)
        o_chan_ref[...] = jnp.zeros_like(o_chan_ref)

    xc = _dw_xcorr_block(fs_ref, ft_ref, ht=ht, wt=wt, ho=ho, wo=wo)   # (ho,wo,tc)
    o_chan_ref[...] += (jnp.sum(xc, axis=-1) * (1.0 / c_total))[None]
    xf = xc.reshape(ho * wo, xc.shape[-1]).astype(w_ref.dtype)
    o_adap_ref[...] += jnp.dot(xf, w_ref[...],
                               preferred_element_type=jnp.float32)[None]


def _xcorr_mean_kernel(fs_ref, ft_ref, o_chan_ref, *, ht, wt, ho, wo, c_total):
    c = pl.program_id(1)

    @pl.when(c == 0)
    def _():
        o_chan_ref[...] = jnp.zeros_like(o_chan_ref)

    xc = _dw_xcorr_block(fs_ref, ft_ref, ht=ht, wt=wt, ho=ho, wo=wo)
    o_chan_ref[...] += (jnp.sum(xc, axis=-1) * (1.0 / c_total))[None]


def xcorr_adap_down(fs, ft, w_adap, b_adap, valid_hw):
    """Fused depthwise xcorr + channel-mean + adap_down 1x1 conv.

    Returns:
      out_adap : (B, ho*wo, D)  == adap_down(xcorr), pixel-major (y*wo + x).
      chan_mean: (B, ho, wo)    == xcorr.mean(over channels) for the loss.
    """
    B, Hs, Wp, C = fs.shape
    _, ht, wt, _ = ft.shape
    vh, vw = valid_hw
    ho, wo = vh - ht + 1, vw - wt + 1
    D = w_adap.shape[1]
    tc = 128 if (C % 128 == 0 and C > 128) else C
    kern = functools.partial(_xcorr_adap_kernel, ht=ht, wt=wt, ho=ho, wo=wo,
                             c_total=C)
    out_adap, chan_mean = pl.pallas_call(
        kern,
        out_shape=(jax.ShapeDtypeStruct((B, ho * wo, D), jnp.float32),
                   jax.ShapeDtypeStruct((B, ho, wo), jnp.float32)),
        grid=(B, C // tc),
        in_specs=[
            pl.BlockSpec((1, Hs, Wp, tc), lambda b, c: (b, 0, 0, c)),
            pl.BlockSpec((1, ht, wt, tc), lambda b, c: (b, 0, 0, c)),
            pl.BlockSpec((tc, D), lambda b, c: (c, 0)),
            pl.BlockSpec((1, D), lambda b, c: (0, 0)),
        ],
        out_specs=(pl.BlockSpec((1, ho * wo, D), lambda b, c: (b, 0, 0)),
                   pl.BlockSpec((1, ho, wo), lambda b, c: (b, 0, 0))),
        compiler_params=pltpu.CompilerParams(
            dimension_semantics=("parallel", "arbitrary"),
            vmem_limit_bytes=_VMEM_LIMIT_BYTES),
    )(fs.astype(jnp.bfloat16), ft.astype(jnp.bfloat16),
      w_adap.astype(jnp.bfloat16), b_adap.reshape(1, D).astype(jnp.float32))
    return out_adap, chan_mean


def xcorr_mean(fs, ft, valid_hw):
    """Depthwise xcorr reduced to its channel mean (for the KL-loss branch)."""
    B, Hs, Wp, C = fs.shape
    _, ht, wt, _ = ft.shape
    vh, vw = valid_hw
    ho, wo = vh - ht + 1, vw - wt + 1
    tc = 128 if (C % 128 == 0 and C > 128) else C
    kern = functools.partial(_xcorr_mean_kernel, ht=ht, wt=wt, ho=ho, wo=wo,
                             c_total=C)
    return pl.pallas_call(
        kern,
        out_shape=jax.ShapeDtypeStruct((B, ho, wo), jnp.float32),
        grid=(B, C // tc),
        in_specs=[
            pl.BlockSpec((1, Hs, Wp, tc), lambda b, c: (b, 0, 0, c)),
            pl.BlockSpec((1, ht, wt, tc), lambda b, c: (b, 0, 0, c)),
        ],
        out_specs=pl.BlockSpec((1, ho, wo), lambda b, c: (b, 0, 0)),
        compiler_params=pltpu.CompilerParams(
            dimension_semantics=("parallel", "arbitrary"),
            vmem_limit_bytes=_VMEM_LIMIT_BYTES),
    )(fs.astype(jnp.bfloat16), ft.astype(jnp.bfloat16))


# --------------------------------------------------------------------------
# Plain-JAX glue
# --------------------------------------------------------------------------
def _bilinear_matrix(in_size, out_size, pad_rows_to=None):
    # Exact F.interpolate(mode='bilinear', align_corners=False) weights.
    scale = in_size / out_size
    j = np.arange(out_size, dtype=np.float64)
    src = np.maximum((j + 0.5) * scale - 0.5, 0.0)
    i0 = np.minimum(np.floor(src).astype(np.int64), in_size - 1)
    i1 = np.minimum(i0 + 1, in_size - 1)
    w1 = src - i0
    w0 = 1.0 - w1
    m = np.zeros((out_size, in_size), dtype=np.float32)
    np.add.at(m, (np.arange(out_size), i0), w0.astype(np.float32))
    np.add.at(m, (np.arange(out_size), i1), w1.astype(np.float32))
    if pad_rows_to is not None and pad_rows_to > out_size:
        m = np.concatenate(
            [m, np.zeros((pad_rows_to - out_size, in_size), np.float32)], axis=0)
    return jnp.asarray(m)


def interpolate_bilinear(x_nhwc, out_h, out_w, pad_w_to=None):
    # Zero-padding of W to a multiple of 8 is folded into the interp matrix so
    # the xcorr kernel sees a sublane-aligned block without an extra pad op.
    B, H, W, C = x_nhwc.shape
    mh = _bilinear_matrix(H, out_h)
    mw = _bilinear_matrix(W, out_w, pad_rows_to=pad_w_to)
    return jnp.einsum("ih,jw,bhwc->bijc", mh, mw, x_nhwc)


def _xcorr_mean_ref(fs, ft, valid_hw):
    """Pure-JAX reference for the depthwise-xcorr channel mean (bf16 inputs)."""
    B, Hs, Wp, C = fs.shape
    _, ht, wt, _ = ft.shape
    vh, vw = valid_hw
    ho, wo = vh - ht + 1, vw - wt + 1
    fsb = fs.astype(jnp.bfloat16).astype(jnp.float32)
    ftb = ft.astype(jnp.bfloat16).astype(jnp.float32)
    acc = jnp.zeros((B, ho, wo), jnp.float32)
    for dy in range(ht):
        for dx in range(wt):
            acc = acc + jnp.sum(
                fsb[:, dy:dy + ho, dx:dx + wo, :] * ftb[:, dy:dy + 1, dx:dx + 1, :],
                axis=-1)
    return acc / C


class SiameseTrackerPallas:
    def __init__(self, key, feat_channels=256, adap_out=128, backbone_stride=4):
        C = feat_channels
        self.C, self.D, self.stride = C, adap_out, backbone_stride
        k1, k2, k3, k4, k5 = jax.random.split(key, 5)
        # TODO(synk): pretrained ResNet-50 backbone is not reproducible in-kernel;
        # replaced by a deterministic avg-pool(stride) + 1x1-conv stand-in.
        self.w_backbone = 0.05 * jax.random.normal(k1, (3, C), jnp.float32)
        self.b_backbone = 0.05 * jax.random.normal(k2, (C,), jnp.float32)
        # fuse: Conv2d(2C, C, kernel_size=1, bias=False); weight stored as two
        # halves so the kernel never needs the channel concat.
        w_fuse = (1.0 / np.sqrt(2 * C)) * jax.random.normal(k3, (2 * C, C), jnp.float32)
        self.w_fuse_a = w_fuse[:C]
        self.w_fuse_b = w_fuse[C:]
        # adap_down: Conv2d(C, D, kernel_size=1) with bias (fused into xcorr kernel).
        self.w_adap = (1.0 / np.sqrt(C)) * jax.random.normal(k4, (C, self.D), jnp.float32)
        self.b_adap = 0.01 * jax.random.normal(k5, (self.D,), jnp.float32)

    # ---- stand-in backbone (plain-JAX glue) ----
    def backbone(self, img_nchw):
        x = jnp.transpose(img_nchw, (0, 2, 3, 1))            # NCHW -> NHWC
        B, H, W, _ = x.shape
        s = self.stride
        x = x.reshape(B, H // s, s, W // s, s, 3).mean(axis=(2, 4))
        B, h, w, _ = x.shape
        y = x.reshape(B * h * w, 3) @ self.w_backbone + self.b_backbone
        return y.reshape(B, h, w, self.C)

    def style_intervener(self, x, xi, key):
        x_t = jnp.concatenate([x, xi], axis=0)                # (2B, h, w, C)
        N = x_t.shape[0]
        k1, k2 = jax.random.split(key)
        # TODO(synk): torch.randn_like RNG stream not reproducible; deterministic jax normals used.
        eps_mu = jax.random.normal(k1, (N, self.C), jnp.float32)
        eps_std = jax.random.normal(k2, (N, self.C), jnp.float32)
        x_u = dsu(x_t, eps_mu, eps_std)
        B = x.shape[0]
        return x_u[:B], x_u[B:]

    def fuse_both(self, tmpl_pair, srch_pair):
        # Template + search pixel rows batched into a single tiled matmul so
        # the MXU sees one larger M instead of two tiny calls.
        (ta, tb), (sa, sb) = tmpl_pair, srch_pair
        B, th, tw, C = ta.shape
        _, sh, sw, _ = sa.shape
        mt = B * th * tw
        a = jnp.concatenate([ta.reshape(mt, C), sa.reshape(B * sh * sw, C)], axis=0)
        b = jnp.concatenate([tb.reshape(mt, C), sb.reshape(B * sh * sw, C)], axis=0)
        y = fuse_matmul(a, b, self.w_fuse_a, self.w_fuse_b)
        f_t = y[:mt].reshape(B, th, tw, C)
        f_s = y[mt:].reshape(B, sh, sw, C)
        return f_t, f_s

    def __call__(self, tmpl_rgb, tmpl_tir, search_rgb, search_tir, key, Test=None):
        f_t_rgb = self.backbone(tmpl_rgb)                     # (B, 4, 4, C)
        f_t_tir = self.backbone(tmpl_tir)
        f_s_rgb = self.backbone(search_rgb)                   # (B, 6, 6, C)
        f_s_tir = self.backbone(search_tir)

        k1, k2 = jax.random.split(key)
        f_t_rgb, f_t_tir = self.style_intervener(f_t_rgb, f_t_tir, k1)
        f_s_rgb, f_s_tir = self.style_intervener(f_s_rgb, f_s_tir, k2)

        f_t, f_s = self.fuse_both((f_t_rgb, f_t_tir), (f_s_rgb, f_s_tir))

        # 19x19 bilinear resize; W zero-padded to 24 for sublane-aligned xcorr.
        f_s_i = interpolate_bilinear(f_s, 19, 19, pad_w_to=24)
        f_s_rgb_i = interpolate_bilinear(f_s_rgb, 19, 19, pad_w_to=24)

        # Fused depthwise xcorr + adap_down + channel-mean (xcorr never hits HBM).
        out_adap, xcorr_mean_main = xcorr_adap_down(
            f_s_i, f_t, self.w_adap, self.b_adap, valid_hw=(19, 19))

        if Test is None:
            rgb_mean = xcorr_mean(f_s_rgb_i, f_t_rgb, valid_hw=(19, 19))
            # NOTE: the reference builds f_s_tir from f_s_rgb and never uses the
            # TIR softmax in the loss (tir_loss reuses the RGB one), so the dead
            # TIR xcorr kernel launch is skipped — identical outputs.
            p_rgb = jax.nn.softmax(rgb_mean, axis=-1)                 # (B, 16, 16)
            log_q = jax.nn.log_softmax(xcorr_mean_main, axis=-1)      # (B, 16, 16)
            B = out_adap.shape[0]
            # F.kl_div(log_q, p, reduction='batchmean'), NaN-safe via xlogy.
            kl = (jnp.sum(xlogy(p_rgb, p_rgb)) - jnp.sum(p_rgb * log_q)) / B
            rgb_loss = kl
            tir_loss = kl          # reference computes kl_div against xcorrs_rgb twice
            loss = (rgb_loss + tir_loss) / 2.0
        else:
            loss = None

        # out_adap is already (B, 256, D) ==
        # torch: adap_down(xcorrs).reshape(B, D, 256).permute(0, 2, 1)
        return out_adap, loss


if __name__ == "__main__":
    key = jax.random.PRNGKey(0)
    k_param, k_noise, k_in, k_chk = jax.random.split(key, 4)
    model = SiameseTrackerPallas(k_param)

    # ---- unit self-check: xcorr kernel vs pure-JAX reference ----
    kc1, kc2 = jax.random.split(k_chk)
    fs_test = jax.random.normal(kc1, (2, 19, 24, 256), jnp.float32)
    ft_test = jax.random.normal(kc2, (2, 4, 4, 256), jnp.float32)
    got = xcorr_mean(fs_test, ft_test, valid_hw=(19, 19))
    ref = _xcorr_mean_ref(fs_test, ft_test, valid_hw=(19, 19))
    assert jnp.allclose(got, ref, rtol=5e-3, atol=5e-3), "xcorr kernel mismatch"

    ks = jax.random.split(k_in, 4)
    tmpl_rgb = jax.random.normal(ks[0], (2, 3, 16, 16), jnp.float32)   # NCHW
    tmpl_tir = jax.random.normal(ks[1], (2, 3, 16, 16), jnp.float32)
    search_rgb = jax.random.normal(ks[2], (2, 3, 24, 24), jnp.float32)
    search_tir = jax.random.normal(ks[3], (2, 3, 24, 24), jnp.float32)

    out, loss = model(tmpl_rgb, tmpl_tir, search_rgb, search_tir, k_noise, Test=None)
    jax.block_until_ready((out, loss))
    assert out.shape == (2, 256, model.D)
    assert bool(jnp.isfinite(loss))
    print("KERNEL_OK")
</pallas_src>

<mosaic_0001>
module attributes {stable_mosaic.version = 11 : i64} {
  func.func @_xcorr_mean_kernel(%arg0: i32, %arg1: i32, %arg2: memref<1x19x24x128xbf16, #tpu.memory_space<vmem>>, %arg3: memref<1x4x4x128xbf16, #tpu.memory_space<vmem>>, %arg4: memref<1x16x16xf32, #tpu.memory_space<vmem>>) attributes {dimension_semantics = [#tpu.dimension_semantics<parallel>, #tpu.dimension_semantics<arbitrary>], iteration_bounds = array<i64: 2, 2>, scalar_prefetch = 0 : i64, scratch_operands = 0 : i64, tpu.core_type = #tpu.core_type<tc>, window_params = [{transform_indices = @transform_0, window_bounds = array<i64: 1, 19, 24, 128>}, {transform_indices = @transform_1, window_bounds = array<i64: 1, 4, 4, 128>}, {transform_indices = @transform_2, window_bounds = array<i64: 1, 16, 16>}]} {
    %c0_i32 = arith.constant 0 : i32
    %0 = arith.cmpi eq, %arg1, %c0_i32 : i32
    %1 = arith.extui %0 : i1 to i32
    %c0_i32_0 = arith.constant 0 : i32
    %2 = arith.cmpi ne, %1, %c0_i32_0 : i32
    scf.if %2 {
      %cst_16 = arith.constant 0.000000e+00 : f32
      %132 = vector.broadcast %cst_16 : f32 to vector<1x16x16xf32>
      %c0_17 = arith.constant 0 : index
      %c0_18 = arith.constant 0 : index
      %c0_19 = arith.constant 0 : index
      %133 = vector.load %arg4[%c0_17, %c0_18, %c0_19] : memref<1x16x16xf32, #tpu.memory_space<vmem>>, vector<1x16x16xf32>
      tpu.vector_store %arg4[%c0_17, %c0_18, %c0_19], %132 {strides = array<i32>} : memref<1x16x16xf32, #tpu.memory_space<vmem>>, vector<1x16x16xf32>,
    } else {
    }
    %c0 = arith.constant 0 : index
    %c0_1 = arith.constant 0 : index
    %c0_2 = arith.constant 0 : index
    %c0_3 = arith.constant 0 : index
    %3 = vector.load %arg2[%c0, %c0_1, %c0_2, %c0_3] : memref<1x19x24x128xbf16, #tpu.memory_space<vmem>>, vector<1x19x24x128xbf16>
    %4 = vector.shape_cast %3 : vector<1x19x24x128xbf16> to vector<19x24x128xbf16>
    %5 = arith.extf %4 : vector<19x24x128xbf16> to vector<19x24x128xf32>
    %c0_4 = arith.constant 0 : index
    %c0_5 = arith.constant 0 : index
    %c0_6 = arith.constant 0 : index
    %c0_7 = arith.constant 0 : index
    %6 = vector.load %arg3[%c0_4, %c0_5, %c0_6, %c0_7] : memref<1x4x4x128xbf16, #tpu.memory_space<vmem>>, vector<1x4x4x128xbf16>
    %7 = vector.shape_cast %6 : vector<1x4x4x128xbf16> to vector<4x4x128xbf16>
    %8 = arith.extf %7 : vector<4x4x128xbf16> to vector<4x4x128xf32>
    %cst = arith.constant 0.000000e+00 : f32
    %9 = vector.broadcast %cst : f32 to vector<16x16x128xf32>
    %10 = vector.extract_strided_slice %5 {offsets = [0, 0, 0], sizes = [16, 16, 128], strides = [1, 1, 1]} : vector<19x24x128xf32> to vector<16x16x128xf32>
    %11 = vector.extract_strided_slice %8 {offsets = [0, 0, 0], sizes = [1, 1, 128], strides = [1, 1, 1]} : vector<4x4x128xf32> to vector<1x1x128xf32>
    %12 = vector.shape_cast %11 : vector<1x1x128xf32> to vector<128xf32>
    %13 = vector.shape_cast %12 : vector<128xf32> to vector<1x1x128xf32>
    %14 = vector.broadcast %13 : vector<1x1x128xf32> to vector<16x16x128xf32>
    %15 = arith.mulf %10, %14 : vector<16x16x128xf32>
    %16 = arith.addf %9, %15 : vector<16x16x128xf32>
    %17 = vector.extract_strided_slice %5 {offsets = [1, 0, 0], sizes = [16, 16, 128], strides = [1, 1, 1]} : vector<19x24x128xf32> to vector<16x16x128xf32>
    %18 = vector.extract_strided_slice %8 {offsets = [1, 0, 0], sizes = [1, 1, 128], strides = [1, 1, 1]} : vector<4x4x128xf32> to vector<1x1x128xf32>
    %19 = vector.shape_cast %18 : vector<1x1x128xf32> to vector<128xf32>
    %20 = vector.shape_cast %19 : vector<128xf32> to vector<1x1x128xf32>
    %21 = vector.broadcast %20 : vector<1x1x128xf32> to vector<16x16x128xf32>
    %22 = arith.mulf %17, %21 : vector<16x16x128xf32>
    %23 = arith.addf %16, %22 : vector<16x16x128xf32>
    %24 = vector.extract_strided_slice %5 {offsets = [2, 0, 0], sizes = [16, 16, 128], strides = [1, 1, 1]} : vector<19x24x128xf32> to vector<16x16x128xf32>
    %25 = vector.extract_strided_slice %8 {offsets = [2, 0, 0], sizes = [1, 1, 128], strides = [1, 1, 1]} : vector<4x4x128xf32> to vector<1x1x128xf32>
    %26 = vector.shape_cast %25 : vector<1x1x128xf32> to vector<128xf32>
    %27 = vector.shape_cast %26 : vector<128xf32> to vector<1x1x128xf32>
    %28 = vector.broadcast %27 : vector<1x1x128xf32> to vector<16x16x128xf32>
    %29 = arith.mulf %24, %28 : vector<16x16x128xf32>
    %30 = arith.addf %23, %29 : vector<16x16x128xf32>
    %31 = vector.extract_strided_slice %5 {offsets = [3, 0, 0], sizes = [16, 16, 128], strides = [1, 1, 1]} : vector<19x24x128xf32> to vector<16x16x128xf32>
    %32 = vector.extract_strided_slice %8 {offsets = [3, 0, 0], sizes = [1, 1, 128], strides = [1, 1, 1]} : vector<4x4x128xf32> to vector<1x1x128xf32>
    %33 = vector.shape_cast %32 : vector<1x1x128xf32> to vector<128xf32>
    %34 = vector.shape_cast %33 : vector<128xf32> to vector<1x1x128xf32>
    %35 = vector.broadcast %34 : vector<1x1x128xf32> to vector<16x16x128xf32>
    %36 = arith.mulf %31, %35 : vector<16x16x128xf32>
    %37 = arith.addf %30, %36 : vector<16x16x128xf32>
    %c23_i32 = arith.constant 23 : i32
    %38 = tpu.dynamic_rotate %5 by %c23_i32 dim 1 : vector<19x24x128xf32>, i32 -> vector<19x24x128xf32>
    %39 = vector.extract_strided_slice %38 {offsets = [0, 0, 0], sizes = [16, 16, 128], strides = [1, 1, 1]} : vector<19x24x128xf32> to vector<16x16x128xf32>
    %40 = vector.extract_strided_slice %8 {offsets = [0, 1, 0], sizes = [1, 1, 128], strides = [1, 1, 1]} : vector<4x4x128xf32> to vector<1x1x128xf32>
    %41 = vector.shape_cast %40 : vector<1x1x128xf32> to vector<128xf32>
    %42 = vector.shape_cast %41 : vector<128xf32> to vector<1x1x128xf32>
    %43 = vector.broadcast %42 : vector<1x1x128xf32> to vector<16x16x128xf32>
    %44 = arith.mulf %39, %43 : vector<16x16x128xf32>
    %45 = arith.addf %37, %44 : vector<16x16x128xf32>
    %46 = vector.extract_strided_slice %38 {offsets = [1, 0, 0], sizes = [16, 16, 128], strides = [1, 1, 1]} : vector<19x24x128xf32> to vector<16x16x128xf32>
    %47 = vector.extract_strided_slice %8 {offsets = [1, 1, 0], sizes = [1, 1, 128], strides = [1, 1, 1]} : vector<4x4x128xf32> to vector<1x1x128xf32>
    %48 = vector.shape_cast %47 : vector<1x1x128xf32> to vector<128xf32>
    %49 = vector.shape_cast %48 : vector<128xf32> to vector<1x1x128xf32>
    %50 = vector.broadcast %49 : vector<1x1x128xf32> to vector<16x16x128xf32>
    %51 = arith.mulf %46, %50 : vector<16x16x128xf32>
    %52 = arith.addf %45, %51 : vector<16x16x128xf32>
    %53 = vector.extract_strided_slice %38 {offsets = [2, 0, 0], sizes = [16, 16, 128], strides = [1, 1, 1]} : vector<19x24x128xf32> to vector<16x16x128xf32>
    %54 = vector.extract_strided_slice %8 {offsets = [2, 1, 0], sizes = [1, 1, 128], strides = [1, 1, 1]} : vector<4x4x128xf32> to vector<1x1x128xf32>
    %55 = vector.shape_cast %54 : vector<1x1x128xf32> to vector<128xf32>
    %56 = vector.shape_cast %55 : vector<128xf32> to vector<1x1x128xf32>
    %57 = vector.broadcast %56 : vector<1x1x128xf32> to vector<16x16x128xf32>
    %58 = arith.mulf %53, %57 : vector<16x16x128xf32>
    %59 = arith.addf %52, %58 : vector<16x16x128xf32>
    %60 = vector.extract_strided_slice %38 {offsets = [3, 0, 0], sizes = [16, 16, 128], strides = [1, 1, 1]} : vector<19x24x128xf32> to vector<16x16x128xf32>
    %61 = vector.extract_strided_slice %8 {offsets = [3, 1, 0], sizes = [1, 1, 128], strides = [1, 1, 1]} : vector<4x4x128xf32> to vector<1x1x128xf32>
    %62 = vector.shape_cast %61 : vector<1x1x128xf32> to vector<128xf32>
    %63 = vector.shape_cast %62 : vector<128xf32> to vector<1x1x128xf32>
    %64 = vector.broadcast %63 : vector<1x1x128xf32> to vector<16x16x128xf32>
    %65 = arith.mulf %60, %64 : vector<16x16x128xf32>
    %66 = arith.addf %59, %65 : vector<16x16x128xf32>
    %c22_i32 = arith.constant 22 : i32
    %67 = tpu.dynamic_rotate %5 by %c22_i32 dim 1 : vector<19x24x128xf32>, i32 -> vector<19x24x128xf32>
    %68 = vector.extract_strided_slice %67 {offsets = [0, 0, 0], sizes = [16, 16, 128], strides = [1, 1, 1]} : vector<19x24x128xf32> to vector<16x16x128xf32>
    %69 = vector.extract_strided_slice %8 {offsets = [0, 2, 0], sizes = [1, 1, 128], strides = [1, 1, 1]} : vector<4x4x128xf32> to vector<1x1x128xf32>
    %70 = vector.shape_cast %69 : vector<1x1x128xf32> to vector<128xf32>
    %71 = vector.shape_cast %70 : vector<128xf32> to vector<1x1x128xf32>
    %72 = vector.broadcast %71 : vector<1x1x128xf32> to vector<16x16x128xf32>
    %73 = arith.mulf %68, %72 : vector<16x16x128xf32>
    %74 = arith.addf %66, %73 : vector<16x16x128xf32>
    %75 = vector.extract_strided_slice %67 {offsets = [1, 0, 0], sizes = [16, 16, 128], strides = [1, 1, 1]} : vector<19x24x128xf32> to vector<16x16x128xf32>
    %76 = vector.extract_strided_slice %8 {offsets = [1, 2, 0], sizes = [1, 1, 128], strides = [1, 1, 1]} : vector<4x4x128xf32> to vector<1x1x128xf32>
    %77 = vector.shape_cast %76 : vector<1x1x128xf32> to vector<128xf32>
    %78 = vector.shape_cast %77 : vector<128xf32> to vector<1x1x128xf32>
    %79 = vector.broadcast %78 : vector<1x1x128xf32> to vector<16x16x128xf32>
    %80 = arith.mulf %75, %79 : vector<16x16x128xf32>
    %81 = arith.addf %74, %80 : vector<16x16x128xf32>
    %82 = vector.extract_strided_slice %67 {offsets = [2, 0, 0], sizes = [16, 16, 128], strides = [1, 1, 1]} : vector<19x24x128xf32> to vector<16x16x128xf32>
    %83 = vector.extract_strided_slice %8 {offsets = [2, 2, 0], sizes = [1, 1, 128], strides = [1, 1, 1]} : vector<4x4x128xf32> to vector<1x1x128xf32>
    %84 = vector.shape_cast %83 : vector<1x1x128xf32> to vector<128xf32>
    %85 = vector.shape_cast %84 : vector<128xf32> to vector<1x1x128xf32>
    %86 = vector.broadcast %85 : vector<1x1x128xf32> to vector<16x16x128xf32>
    %87 = arith.mulf %82, %86 : vector<16x16x128xf32>
    %88 = arith.addf %81, %87 : vector<16x16x128xf32>
    %89 = vector.extract_strided_slice %67 {offsets = [3, 0, 0], sizes = [16, 16, 128], strides = [1, 1, 1]} : vector<19x24x128xf32> to vector<16x16x128xf32>
    %90 = vector.extract_strided_slice %8 {offsets = [3, 2, 0], sizes = [1, 1, 128], strides = [1, 1, 1]} : vector<4x4x128xf32> to vector<1x1x128xf32>
    %91 = vector.shape_cast %90 : vector<1x1x128xf32> to vector<128xf32>
    %92 = vector.shape_cast %91 : vector<128xf32> to vector<1x1x128xf32>
    %93 = vector.broadcast %92 : vector<1x1x128xf32> to vector<16x16x128xf32>
    %94 = arith.mulf %89, %93 : vector<16x16x128xf32>
    %95 = arith.addf %88, %94 : vector<16x16x128xf32>
    %c21_i32 = arith.constant 21 : i32
    %96 = tpu.dynamic_rotate %5 by %c21_i32 dim 1 : vector<19x24x128xf32>, i32 -> vector<19x24x128xf32>
    %97 = vector.extract_strided_slice %96 {offsets = [0, 0, 0], sizes = [16, 16, 128], strides = [1, 1, 1]} : vector<19x24x128xf32> to vector<16x16x128xf32>
    %98 = vector.extract_strided_slice %8 {offsets = [0, 3, 0], sizes = [1, 1, 128], strides = [1, 1, 1]} : vector<4x4x128xf32> to vector<1x1x128xf32>
    %99 = vector.shape_cast %98 : vector<1x1x128xf32> to vector<128xf32>
    %100 = vector.shape_cast %99 : vector<128xf32> to vector<1x1x128xf32>
    %101 = vector.broadcast %100 : vector<1x1x128xf32> to vector<16x16x128xf32>
    %102 = arith.mulf %97, %101 : vector<16x16x128xf32>
    %103 = arith.addf %95, %102 : vector<16x16x128xf32>
    %104 = vector.extract_strided_slice %96 {offsets = [1, 0, 0], sizes = [16, 16, 128], strides = [1, 1, 1]} : vector<19x24x128xf32> to vector<16x16x128xf32>
    %105 = vector.extract_strided_slice %8 {offsets = [1, 3, 0], sizes = [1, 1, 128], strides = [1, 1, 1]} : vector<4x4x128xf32> to vector<1x1x128xf32>
    %106 = vector.shape_cast %105 : vector<1x1x128xf32> to vector<128xf32>
    %107 = vector.shape_cast %106 : vector<128xf32> to vector<1x1x128xf32>
    %108 = vector.broadcast %107 : vector<1x1x128xf32> to vector<16x16x128xf32>
    %109 = arith.mulf %104, %108 : vector<16x16x128xf32>
    %110 = arith.addf %103, %109 : vector<16x16x128xf32>
    %111 = vector.extract_strided_slice %96 {offsets = [2, 0, 0], sizes = [16, 16, 128], strides = [1, 1, 1]} : vector<19x24x128xf32> to vector<16x16x128xf32>
    %112 = vector.extract_strided_slice %8 {offsets = [2, 3, 0], sizes = [1, 1, 128], strides = [1, 1, 1]} : vector<4x4x128xf32> to vector<1x1x128xf32>
    %113 = vector.shape_cast %112 : vector<1x1x128xf32> to vector<128xf32>
    %114 = vector.shape_cast %113 : vector<128xf32> to vector<1x1x128xf32>
    %115 = vector.broadcast %114 : vector<1x1x128xf32> to vector<16x16x128xf32>
    %116 = arith.mulf %111, %115 : vector<16x16x128xf32>
    %117 = arith.addf %110, %116 : vector<16x16x128xf32>
    %118 = vector.extract_strided_slice %96 {offsets = [3, 0, 0], sizes = [16, 16, 128], strides = [1, 1, 1]} : vector<19x24x128xf32> to vector<16x16x128xf32>
    %119 = vector.extract_strided_slice %8 {offsets = [3, 3, 0], sizes = [1, 1, 128], strides = [1, 1, 1]} : vector<4x4x128xf32> to vector<1x1x128xf32>
    %120 = vector.shape_cast %119 : vector<1x1x128xf32> to vector<128xf32>
    %121 = vector.shape_cast %120 : vector<128xf32> to vector<1x1x128xf32>
    %122 = vector.broadcast %121 : vector<1x1x128xf32> to vector<16x16x128xf32>
    %123 = arith.mulf %118, %122 : vector<16x16x128xf32>
    %124 = arith.addf %117, %123 : vector<16x16x128xf32>
    %c0_8 = arith.constant 0 : index
    %c0_9 = arith.constant 0 : index
    %c0_10 = arith.constant 0 : index
    %125 = vector.load %arg4[%c0_8, %c0_9, %c0_10] : memref<1x16x16xf32, #tpu.memory_space<vmem>>, vector<1x16x16xf32>
    %cst_11 = arith.constant dense<0.000000e+00> : vector<16x16xf32>
    %126 = vector.multi_reduction <add>, %124, %cst_11 [2] : vector<16x16x128xf32> to vector<16x16xf32>
    %cst_12 = arith.constant 3.906250e-03 : f32
    %127 = vector.broadcast %cst_12 : f32 to vector<16x16xf32>
    %128 = arith.mulf %126, %127 : vector<16x16xf32>
    %129 = vector.shape_cast %128 : vector<16x16xf32> to vector<1x16x16xf32>
    %130 = arith.addf %125, %129 : vector<1x16x16xf32>
    %c0_13 = arith.constant 0 : index
    %c0_14 = arith.constant 0 : index
    %c0_15 = arith.constant 0 : index
    %131 = vector.load %arg4[%c0_13, %c0_14, %c0_15] : memref<1x16x16xf32, #tpu.memory_space<vmem>>, vector<1x16x16xf32>
    tpu.vector_store %arg4[%c0_13, %c0_14, %c0_15], %130 {strides = array<i32>} : memref<1x16x16xf32, #tpu.memory_space<vmem>>, vector<1x16x16xf32>,
    return
  }
  func.func @transform_0(%arg0: i32, %arg1: i32) -> (i32, i32, i32, i32) {
    %c0_i32 = arith.constant 0 : i32
    %c0_i32_0 = arith.constant 0 : i32
    %c0_i32_1 = arith.constant 0 : i32
    return %arg0, %c0_i32, %c0_i32_0, %arg1 : i32, i32, i32, i32
  }
  func.func @transform_1(%arg0: i32, %arg1: i32) -> (i32, i32, i32, i32) {
    %c0_i32 = arith.constant 0 : i32
    %c0_i32_0 = arith.constant 0 : i32
    %c0_i32_1 = arith.constant 0 : i32
    return %arg0, %c0_i32, %c0_i32_0, %arg1 : i32, i32, i32, i32
  }
  func.func @transform_2(%arg0: i32, %arg1: i32) -> (i32, i32, i32) {
    %c0_i32 = arith.constant 0 : i32
    %c0_i32_0 = arith.constant 0 : i32
    %c0_i32_1 = arith.constant 0 : i32
    return %arg0, %c0_i32, %c0_i32_0 : i32, i32, i32
  }
}

</mosaic_0001>

<bundles_post_ra>
// kernel: tpu_custom_call.1
= control target key start
LH: loop header
LB: loop body
LE: loop exit
PB: predicated region body
PF: predicated region fallthrough
CT: control target
= control target key end

     0   :  { %s5053_s0 = inlined_call_operand.hbm [shape: bf16[2,19,24,256], index: 0, kind: input, shape index: {}]   ;;  %s5054_s1 = inlined_call_operand.hbm [shape: bf16[2,4,4,256], index: 1, kind: input, shape index: {}]   ;;  %s5055_s2 = inlined_call_operand.hbm [shape: f32[2,16,16], index: 2, kind: output, shape index: {}]  }
   0x1   :  { %5309 = sst [smem:[#allocation86_spill]] %s5053_s0 }
   0x2   :  { %7 = vsyncpa [#allocation3], 0 }
   0x3   :  { %9 = vsyncpa [#allocation3 + $0x1], 0 }
   0x4   :  { %10 = vsyncpa [#allocation6], 0 }
   0x5   :  { %12 = vsyncpa [#allocation6 + $0x1], 0 }
   0x6   :  { %13 = vsyncpa [#allocation4], 0 }
   0x7   :  { %15 = vsyncpa [#allocation4 + $0x1], 0  ;;  %s2647_s9 = smov 0   ;;  %s2649_s10 = smov 0  }
   0x8   :  { %s2651_s11 = smov 0   ;;  %s2653_s12 = smov 0  }
   0x9   :  { %s2655_s13 = smov 0   ;;  %s2657_s14 = smov 0  }
   0xa   :  { %s2659_s15 = smov 0   ;;  %s2661_s16 = smov 0  }
   0xb   :  { %s2663_s17 = smov 0   ;;  %s2665_s18 = smov 0  }
   0xc   :  { %s2667_s19 = smov 0  }
   0xd LB: > { %5310 = sst [smem:[#allocation11_spill]] %s2587_s11  ;;  %s2158_s20 = sadd.s32 4294967295, %s2619_s19   ;;  %s2619_s19 = sphi %s2667_s19, %s21_s19   ;;  %s2615_s18 = sphi %s2665_s18, %s5704_s18   ;;  %s2611_s17 = sphi %s2663_s17, %s5703_s17   ;;  %s2607_s16 = sphi %s2661_s16, %s5702_s16   ;;  %s2603_s15 = sphi %s2659_s15, %s5701_s15   ;;  %s2599_s14 = sphi %s2657_s14, %s5694_s14   ;;  %s2595_s13 = sphi %s2655_s13, %s5700_s13   ;;  %s2591_s12 = sphi %s2653_s12, %s5699_s12   ;;  %s2587_s11 = sphi %s2651_s11, %s5692_s11   ;;  %s2583_s10 = sphi %s2649_s10, %s5698_s10   ;;  %s2579_s9 = sphi %s2647_s9, %s5697_s9  }
   0xe   : > { %5311 = sst [smem:[#allocation12_spill]] %s2599_s14  ;;  %s2159_s21 = sadd.s32 4294967294, %s2619_s19  }
   0xf   : > { %s30_s22 = sadd.s32 1, %s2611_s17  ;;  %s33_s23 = sadd.s32 1, %s2615_s18 }
  0x10   : > { %p31_p0 = scmp.ge.s32.totalorder %s30_s22, 2  ;;  %s42_s24 = sadd.s32 1, %s2599_s14 }
  0x11   : > { %p49_p1 = scmp.ne.s32.totalorder %s2599_s14, %s2595_s13  ;;  %p50_p2 = scmp.eq.s32.totalorder %s2619_s19, 0 }
  0x12   : > { %s5706_s22 = smov (%p31_p0, %s30_s22), 0  ;;  %s5708_s23 = smov (!%p31_p0, %s33_s23), %s2615_s18 }
  0x13   : > { %5312 = sst [smem:[#allocation13_spill]] %s5706_s22  ;;  %s38_s25 = ssub.s32 %s2611_s17, %s5706_s22 }
  0x14   : > { %p2713_p3 = por %p50_p2, %p49_p1  ;;  %p35_p4 = scmp.ge.s32.totalorder %s5708_s23, 2 }
  0x15   : > { %p55_p5 = scmp.ne.s32.totalorder %s2595_s13, %s2591_s12  ;;  %p56_p6 = scmp.eq.s32.totalorder %s2158_s20, 0 }
  0x16   : > { %s96_s27 = sadd.s32 1, %s2587_s11  ;;  %s5710_s23 = smov (%p35_p4, %s5708_s23), 0 }
  0x17   : > { %5314 = sst [smem:[#allocation14_spill]] %s5710_s23  ;;  %p2721_p7 = por %p56_p6, %p55_p5 }
  0x18   : > { %p106_p8 = scmp.ne.s32.totalorder %s2587_s11, %s2583_s10  ;;  %s37_s29 = ssub.s32 %s2615_s18, %s5710_s23 }
  0x19   : > { %s5315_s28 = scalar_select %p2721_p7, 1, 0 }
  0x1a   : > { %p107_p9 = scmp.eq.s32.totalorder %s2158_s20, 3  ;;  %s39_s30 = sor.u32 %s38_s25, %s37_s29 }
  0x1b   : > { %p94_p10 = scmp.eq.s32.totalorder %s37_s29, 0  ;;  %p40_p11 = scmp.eq.s32.totalorder %s39_s30, 0 }
  0x1c   : > { %p2729_p12 = por %p107_p9, %p106_p8  ;;  %p112_p13 = scmp.ne.s32.totalorder %s2583_s10, %s2579_s9 }
  0x1d   : > { %s2734_s4 = scalar_select %p94_p10, %s2587_s11, %s96_s27  }
  0x1e   : > { %s5316_s3 = scalar_select %p2729_p12, 1, 0 }
  0x1f   : > { %5317 = sst [smem:[#allocation15_spill]] %s2734_s4  ;;  %p113_p0 = scmp.eq.s32.totalorder %s2159_s21, 3 }
  0x20   : > { %s2737_s5 = scalar_select %p40_p11, %s2599_s14, %s42_s24  }
  0x21   : > { %p2335_p1 = scmp.lt.s32.totalorder %s2619_s19, 4  ;;  %p2742_p2 = por %p113_p0, %p112_p13 }
  0x22   : > { %5318 = sst [smem:[#allocation16_spill]] %s2737_s5  ;;  %s2747_s7 = sand.u32 1, %s2599_s14  }
  0x23   : > { %s5319_s6 = scalar_select %p2742_p2, 1, 0 }
  0x24   : > { %s2315_s8 = smul.u32 228, %s2747_s7  ;;  %p2753_p4 = pnand %p2335_p1, %p2713_p3 }
  0x25   : > { %s2316_s12 = smul.u32 114, %s2615_s18  ;;  %s5321_s0 = sld [smem:[#allocation86_spill]] }
  0x26   : > { %s137_s21 = scalar_lea.vmem [#allocation2], %s2315_s8  ;;  %s134_s26 = scalar_lea.sflag [#allocation3], %s2747_s7 }
  0x27   : > { %s142_s24 = sadd.s32 %s2611_s17, %s2316_s12  ;;  %s145_s25 = sshll.u32 %s137_s21, 4  ;;  %s2758_s25 = int_to_ptr.vmem [resolvable:$true] %s145_s25 }
  0x28   : > { %s2162_s27 = sshll.u32 %s142_s24, 6  ;;  %p2435_p5 = pneg %p2753_p4 }
  0x2b   : > { %s2763_s23 = scalar_lea.hbm %s5321_s0, %s2162_s27  ;;  %s2438_s24 = scalar_lea.hbm %s5321_s0, 14592 }
  0x2c   : > { %s2433_s22 = scalar_lea.hbm %s2763_s23, 3648  ;;  %p2439_p9 = scmp.lt.u32.totalorder %s2763_s23, %s5321_s0 }
  0x2d   : > { %p2434_p3 = scmp.ne.s32.totalorder %s2763_s23, %s2433_s22  ;;  %p2440_p10 = scmp.lt.u32.totalorder %s2438_s24, %s2433_s22 }
  0x2e   : > { %p2442_p13 = scmp.lt.u32.totalorder %s2433_s22, %s2763_s23 }
  0x2f   : > { %p2436_p6 = pnand %p2435_p5, %p2434_p3  ;;  %p2441_p11 = por %p2440_p10, %p2439_p9 }
  0x31   : > { %p2437_p8 = pneg %p2436_p6  ;;  %p2443_p0 = por %p2442_p13, %p2441_p11 }
  0x33   : > { %p2444_p1 = pnand %p2443_p0, %p2437_p8 }
  0x35   : > { %2447 = shalt.err (!%p2444_p1)
}
  0x36   : > { %s2448_s29 = scalar_lea.vmem %s2758_s25, 3648  ;;  %s2621_s30 = smov [#allocation2]  }
  0x37   : > { %p2449_p3 = scmp.ne.s32.totalorder %s2758_s25, %s2448_s29  ;;  %s2453_s8 = sshll.u32 %s2621_s30, 4  ;;  %s2454_s8 = int_to_ptr.vmem [resolvable:$false] %s2453_s8 }
  0x38   : > { %s2455_s12 = scalar_lea.vmem %s2454_s8, 7296  ;;  %p2456_p12 = scmp.lt.s32.totalorder %s2758_s25, %s2454_s8 }
  0x39   : > { %p2451_p6 = pnand %p2449_p3, %p2435_p5  ;;  %p2457_p9 = scmp.lt.s32.totalorder %s2455_s12, %s2448_s29 }
  0x3b   : > { %p2452_p2 = pneg %p2451_p6  ;;  %p2458_p10 = por %p2457_p9, %p2456_p12 }
  0x3d   : > { %p2459_p11 = pnand %p2458_p10, %p2452_p2 }
  0x3f   : > { %2462 = shalt.err (!%p2459_p11)
}
  0x40   : > { %s2622_s22 = smov 128   ;;  %s2623_s24 = smov 64  }
  0x41   : > { %s2624_s21 = smov 4   ;;  %p2166_p12 = scmp.ge.s32.totalorder %s2619_s19, 1 }
  0x42   : > { %2327 = dma.hbm_to_vmem [thread:$0]  (!%p2753_p4), %s2763_s23, 3648, %s2758_s25, %s134_s26, %s2622_s22, %s2623_s24, %s2624_s21  }
  0x43   : > { %p175_p2 = scmp.lt.s32.totalorder %s2619_s19, 5  ;;  %s2163_s27 = sshll.u32 %s2747_s7, 3 }
  0x44   : > { %s2164_s30 = sshll.u32 %s2615_s18, 3  ;;  %s159_s8 = scalar_lea.vmem [#allocation5], %s2163_s27 }
  0x45   : > { %p2797_p8 = pnand %p2166_p12, %p175_p2  ;;  %s167_s12 = sshll.u32 %s159_s8, 4  ;;  %s2803_s12 = int_to_ptr.vmem [resolvable:$true] %s167_s12 }
  0x46   : > { %s164_s0 = sadd.s32 %s2611_s17, %s2164_s30  ;;  %s156_s23 = scalar_lea.sflag [#allocation6], %s2747_s7 }
  0x47   : > { %s2165_s5 = sshll.u32 %s164_s0, 5  ;;  %s2468_s0 = scalar_lea.hbm %s5054_s1, 512 }
  0x48   : > { %s2808_s11 = scalar_lea.hbm %s5054_s1, %s2165_s5 }
  0x49   : > { %s2463_s25 = scalar_lea.hbm %s2808_s11, 128  ;;  %p2469_p3 = scmp.lt.u32.totalorder %s2808_s11, %s5054_s1 }
  0x4a   : > { %p2464_p13 = scmp.ne.s32.totalorder %s2808_s11, %s2463_s25  ;;  %p2470_p6 = scmp.lt.u32.totalorder %s2468_s0, %s2463_s25 }
  0x4b   : > { %p2472_p10 = scmp.lt.u32.totalorder %s2463_s25, %s2808_s11 }
  0x4c   : > { %p2466_p0 = pnand %p2464_p13, %p2435_p5  ;;  %p2471_p9 = por %p2470_p6, %p2469_p3 }
  0x4e   : > { %p2467_p1 = pneg %p2466_p0  ;;  %p2473_p11 = por %p2472_p10, %p2471_p9 }
  0x50   : > { %p2474_p12 = pnand %p2473_p11, %p2467_p1 }
  0x52   : > { %2477 = shalt.err (!%p2474_p12)
}
  0x53   : > { %s2478_s14 = scalar_lea.vmem %s2803_s12, 128  ;;  %s2625_s4 = smov [#allocation5]  }
  0x54   : > { %p2479_p2 = scmp.ne.s32.totalorder %s2803_s12, %s2478_s14  ;;  %s2483_s5 = sshll.u32 %s2625_s4, 4  ;;  %s2484_s5 = int_to_ptr.vmem [resolvable:$false] %s2483_s5 }
  0x55   : > { %s2485_s30 = scalar_lea.vmem %s2484_s5, 256  ;;  %p2486_p7 = scmp.lt.s32.totalorder %s2803_s12, %s2484_s5 }
  0x56   : > { %p2481_p13 = pnand %p2479_p2, %p2435_p5  ;;  %p2487_p3 = scmp.lt.s32.totalorder %s2485_s30, %s2478_s14 }
  0x58   : > { %p2482_p0 = pneg %p2481_p13  ;;  %p2488_p6 = por %p2487_p3, %p2486_p7 }
  0x5a   : > { %p2489_p9 = pnand %p2488_p6, %p2482_p0 }
  0x5c   : > { %2492 = shalt.err (!%p2489_p9)
}
  0x5d   : > { %s2626_s8 = smov 32   ;;  %s2627_s25 = smov 2  }
  0x5e   : > { %2330 = dma.hbm_to_vmem [thread:$0]  (!%p2753_p4), %s2808_s11, 128, %s2803_s12, %s156_s23, %s2623_s24, %s2626_s8, %s2627_s25  }
  0x5f   : > { %179 = sbr.rel (%p2797_p8) target bundleno = 648 (0x288), region = 28 }
  0x66   : > { %s181_s26 = sand.u32 1, %s2595_s13   ;;  %p5323_p7 = scmp.ne.s32.totalorder %s5315_s28, 0 }
  0x67   : > { %s2317_s22 = smul.u32 228, %s181_s26  ;;  %s182_s0 = scalar_lea.sflag [#allocation3], %s181_s26 }
  0x69   : > { %s2840_s21 = scalar_lea.vmem [#allocation2], %s2317_s22 }
  0x6a   : > { %2566 = dma.done.wait (%p5323_p7), %s182_s0, 3648  }
  0x6b   : > { %2568 = vsyncadd (%p5323_p7), %s182_s0, 4294963648  ;;  %s2167_s20 = sshll.u32 %s181_s26, 3  ;;  %s191_s27 = scalar_lea.sflag [#allocation6], %s181_s26 }
  0x6c   : > { %s2846_s7 = scalar_lea.vmem [#allocation5], %s2167_s20 }
  0x6d   : > { %2570 = dma.done.wait (%p5323_p7), %s191_s27, 128  }
  0x6e   : > { %2572 = vsyncadd (%p5323_p7), %s191_s27, 4294967168  ;;  %s217_s11 = sand.u32 1, %s2583_s10   ;;  %p2169_p4 = scmp.ne.s32.totalorder %s2603_s15, 0 }
  0x6f   : > { %s2168_s24 = sshll.u32 %s217_s11, 4  ;;  %vm224_vm0 = vcmask (!%p2169_p4), 130048   ;;  %v2628_v0 = vmov (!%p2169_p4), 0.0  }
  0x70   : > { %s2855_s29 = scalar_lea.vmem [#allocation7], %s2168_s24  ;;  %223 = sbr.rel (%p2169_p4) target bundleno = 119 (0x77), region = 40 }
  0x71   : > { %225 = vst.msk [vmem:[%s2855_s29] sm:$0xff] (!%p2169_p4), %vm224_vm0, %v2628_v0  ;;  %226 = vst.msk [vmem:[%s2855_s29 + $0x8] sm:$0xff] (!%p2169_p4), %vm224_vm0, %v2628_v0 }
  0x77 PF: > { %v2861_v1 = vld [vmem:[%s2840_s21 + $0x8] sm:$0xff]   ;;  %v2864_v2 = vld [vmem:[%s2840_s21 + $0x10] sm:$0xff]   ;;  %v2290_v3 = vld [vmem:[%s2840_s21 + $0x18] sm:$0xff]   ;;  %v5062_v4 = vlaneseq  ;;  %vm1868_vm4 = vcmask 130112   ;;  %vm2005_vm5 = vcmask 1041409   ;;  %vm2007_vm6 = vcmask 1042434  }
  0x78   : > { %v2868_v5 = vunpack.c.h.bf16 %v2861_v1  ;;  %v2871_v6 = vunpack.c.l.bf16 %v2864_v2  ;;  %v2873_v7 = vunpack.c.l.bf16 %v2290_v3  ;;  %v2875_v8 = vunpack.c.h.bf16 %v2290_v3  ;;  %v2878_v9 = vld [vmem:[%s2840_s21 + $0x20] sm:$0xff]   ;;  %v2881_v10 = vld [vmem:[%s2840_s21 + $0x28] sm:$0xff]   ;;  %v2293_v11 = vld [vmem:[%s2840_s21 + $0x30] sm:$0xff]   ;;  %s2175_s15 = sshll.u32 %s2607_s16, 8  ;;  %s2047_s28 = sshll.u32 %s2855_s29, 4  ;;  %s4986_s28 = int_to_ptr.vmem [resolvable:$true] %s2047_s28 }
  0x79   : > { %v2885_v12 = vunpack.c.h.bf16 %v2878_v9  ;;  %v2888_v13 = vunpack.c.l.bf16 %v2881_v10  ;;  %v2890_v14 = vunpack.c.l.bf16 %v2293_v11  ;;  %v2892_v15 = vunpack.c.h.bf16 %v2293_v11  ;;  %v341_v16 = vld [vmem:[%s2846_s7] sm:$0x3]  ;;  %v342_v17 = vld [vmem:[%s2846_s7 + $0x2] sm:$0x3]  ;;  %v343_v18 = vld [vmem:[%s2846_s7 + $0x4] sm:$0x3]  ;;  %s4984_s14 = scalar_lea.hbm %s5055_s2, %s2175_s15 }
  0x7a   : > { %5324 = vst [vmem:[#allocation17_spill] sm:$0xff] %v2873_v7  ;;  %v344_v19 = vld [vmem:[%s2846_s7 + $0x6] sm:$0x3]  ;;  %v2898_v20 = vunpack.c.l.bf16 %v341_v16  ;;  %v2900_v21 = vunpack.c.l.bf16 %v342_v17  ;;  %v2902_v22 = vunpack.c.l.bf16 %v343_v18  ;;  %v2905_v23 = vshrl.u32 %v5062_v4, 7  ;;  %s4992_s16 = scalar_lea.sflag [#allocation4], %s217_s11  ;;  %s2493_s4 = scalar_lea.vmem %s4986_s28, 256 }
  0x7b   : > { %5325 = vst [vmem:[#allocation18_spill] sm:$0xff] %v2885_v12  ;;  %5326 = vst [vmem:[#allocation19_spill] sm:$0xff] %v2888_v13  ;;  %v2907_v24 = vunpack.c.l.bf16 %v344_v19  ;;  %v622_v25 = vrot.slane %v2868_v5, 1  ;;  %v623_v26 = vrot.slane %v2873_v7, 1  ;;  %v624_v27 = vrot.slane %v2885_v12, 1  ;;  %p2494_p5 = scmp.ne.s32.totalorder %s4986_s28, %s2493_s4  ;;  %p5689_p8 = scmp.ne.s32.totalorder %s5316_s3, 0 }
  0x7c   : > { %5327 = vst [vmem:[#allocation20_spill] sm:$0xff] %v2890_v14  ;;  %5328 = vst [vmem:[#allocation21_spill] sm:$0xff] %v2892_v15  ;;  %v351_v28 = vsub.s32 0, %v2905_v23  ;;  %v625_v29 = vrot.slane %v2890_v14, 1  ;;  %v5076_v30 = vrot.slane %v2871_v6, 1  ;;  %v5074_v31 = vrot.slane %v2875_v8, 1 }
  0x7d   : > { %v5073_v32 = vrot.slane %v2888_v13, 1  ;;  %v5071_v33 = vrot.slane %v2892_v15, 1  ;;  %vm680_vm1 = vcmp.lt.s32.totalorder %v2905_v23, 7  ;;  %v721_v34 = vsub.s32 1, %v2905_v23  ;;  %p2495_p1 = pnand %p2494_p5, %p5689_p8  ;;  %s2629_s5 = smov [#allocation7]  }
  0x7e   : > { %v2921_v35 = vrot.slane %v2898_v20, %v351_v28  ;;  %v2924_v36 = vrot.slane %v2900_v21, %v351_v28  ;;  %v2927_v37 = vrot.slane %v2902_v22, %v351_v28  ;;  %v2930_v38 = vrot.slane %v2907_v24, %v351_v28  ;;  %s2497_s30 = sshll.u32 %s2629_s5, 4  ;;  %s2498_s30 = int_to_ptr.vmem [resolvable:$false] %s2497_s30 }
  0x7f   : > { %v2936_v39 = vsel %vm680_vm1, %v622_v25, %v5076_v30  ;;  %v2948_v43 = vsel %vm680_vm1, %v623_v26, %v5074_v31  ;;  %v2956_v45 = vsel %vm680_vm1, %v624_v27, %v5073_v32  ;;  %v2962_v46 = vsel %vm680_vm1, %v625_v29, %v5071_v33  ;;  %p2496_p10 = pneg %p2495_p1  ;;  %s2499_s8 = scalar_lea.vmem %s2498_s30, 512 }
  0x80   : > { %v355_v40 = vmul.f32 %v2868_v5, %v2921_v35  ;;  %v423_v41 = vmul.f32 %v2873_v7, %v2924_v36  ;;  %v491_v42 = vmul.f32 %v2885_v12, %v2927_v37  ;;  %5329 = vst [vmem:[#allocation22_spill] sm:$0xff] %v2948_v43  ;;  %v559_v44 = vmul.f32 %v2890_v14, %v2930_v38  ;;  %p2500_p11 = scmp.lt.s32.totalorder %s4986_s28, %s2498_s30  ;;  %p2501_p12 = scmp.lt.s32.totalorder %s2499_s8, %s2493_s4 }
  0x81   : > { %5330 = vst [vmem:[#allocation23_spill] sm:$0xff] %v2956_v45  ;;  %5331 = vst [vmem:[#allocation24_spill] sm:$0xff] %v2962_v46  ;;  %v2965_v47 = vrot.slane %v2898_v20, %v721_v34  ;;  %v2968_v49 = vrot.slane %v2900_v21, %v721_v34  ;;  %v2971_v50 = vrot.slane %v2902_v22, %v721_v34  ;;  %v992_v53 = vrot.slane %v2868_v5, 2 }
  0x82   : > { %v455_v48 = vadd.f32 %v423_v41, %v355_v40  ;;  %v2974_v51 = vrot.slane %v2907_v24, %v721_v34  ;;  %v993_v54 = vrot.slane %v2873_v7, 2  ;;  %v994_v55 = vrot.slane %v2885_v12, 2  ;;  %v2177_v41 = vld [vmem:[%s2840_s21] sm:$0xff]   ;;  %p2502_p2 = por %p2501_p12, %p2500_p11 }
  0x83   : > { %v725_v52 = vmul.f32 %v2965_v47, %v2936_v39  ;;  %v995_v57 = vrot.slane %v2890_v14, 2  ;;  %v5066_v58 = vrot.slane %v2871_v6, 2  ;;  %v5065_v59 = vrot.slane %v2875_v8, 2 }
  0x84   : > { %v523_v56 = vadd.f32 %v491_v42, %v455_v48  ;;  %v5064_v60 = vrot.slane %v2888_v13, 2  ;;  %v5063_v61 = vrot.slane %v2892_v15, 2  ;;  %vm1048_vm2 = vcmp.lt.s32.totalorder %v2905_v23, 6  ;;  %p2503_p13 = pnand %p2502_p2, %p2496_p10 }
  0x85   : > { %v1089_v62 = vsub.s32 2, %v2905_v23  ;;  %v793_v0 = vmul.f32 %v2968_v49, %v2948_v43  ;;  %v861_v3 = vmul.f32 %v2971_v50, %v2956_v45  ;;  %v929_v11 = vmul.f32 %v2974_v51, %v2962_v46 }
  0x86   : > { %v591_v63 = vadd.f32 %v559_v44, %v523_v56  ;;  %v2998_v16 = vsel %vm1048_vm2, %v992_v53, %v5066_v58  ;;  %v3004_v17 = vsel %vm1048_vm2, %v993_v54, %v5065_v59  ;;  %v3013_v25 = vsel %vm1048_vm2, %v994_v55, %v5064_v60 }
  0x87   : > { %5332 = vst [vmem:[#allocation25_spill] sm:$0xff] %v3004_v17  ;;  %v3007_v18 = vrot.slane %v2898_v20, %v1089_v62  ;;  %5333 = vst [vmem:[#allocation26_spill] sm:$0xff] %v3013_v25  ;;  %v3019_v26 = vsel %vm1048_vm2, %v995_v57, %v5063_v61  ;;  %v1360_v27 = vrot.slane %v2868_v5, 3  ;;  %v3023_v28 = vrot.slane %v2900_v21, %v1089_v62 }
  0x88   : > { %v757_v19 = vadd.f32 %v725_v52, %v591_v63  ;;  %5334 = vst [vmem:[#allocation27_spill] sm:$0xff] %v3019_v26  ;;  %v3026_v29 = vrot.slane %v2902_v22, %v1089_v62  ;;  %v3029_v34 = vrot.slane %v2907_v24, %v1089_v62  ;;  %v1361_v40 = vrot.slane %v2873_v7, 3 }
  0x89   : > { %v1093_v44 = vmul.f32 %v3007_v18, %v2998_v16  ;;  %v1362_v48 = vrot.slane %v2885_v12, 3  ;;  %v5070_v52 = vrot.slane %v2871_v6, 3  ;;  %v1363_v53 = vrot.slane %v2890_v14, 3 }
  0x8a   : > { %v825_v42 = vadd.f32 %v793_v0, %v757_v19  ;;  %v5068_v54 = vrot.slane %v2875_v8, 3  ;;  %v5067_v55 = vrot.slane %v2888_v13, 3  ;;  %vm1416_vm3 = vcmp.lt.s32.totalorder %v2905_v23, 5 }
  0x8b   : > { %v5069_v57 = vrot.slane %v2892_v15, 3  ;;  %v1457_v62 = vsub.s32 3, %v2905_v23  ;;  %v2178_v63 = vunpack.c.l.bf16 %v2177_v41  ;;  %v1161_v0 = vmul.f32 %v3023_v28, %v3004_v17 }
  0x8c   : > { %v893_v56 = vadd.f32 %v861_v3, %v825_v42  ;;  %v1229_v19 = vmul.f32 %v3026_v29, %v3013_v25  ;;  %v1297_v61 = vmul.f32 %v3029_v34, %v3019_v26  ;;  %v3053_v3 = vsel %vm1416_vm3, %v1360_v27, %v5070_v52 }
  0x8d   : > { %v3055_v42 = vunpack.c.h.bf16 %v2177_v41  ;;  %v3061_v60 = vsel %vm1416_vm3, %v1361_v40, %v5068_v54  ;;  %v3064_v59 = vrot.slane %v2898_v20, %v1457_v62  ;;  %v3073_v27 = vsel %vm1416_vm3, %v1362_v48, %v5067_v55 }
  0x8e   : > { %v961_v4 = vadd.f32 %v929_v11, %v893_v56  ;;  %5335 = vst [vmem:[#allocation28_spill] sm:$0xff] %v3061_v60  ;;  %v353_v11 = vmul.f32 %v2178_v63, %v2921_v35  ;;  %v421_v56 = vmul.f32 %v2868_v5, %v2924_v36  ;;  %5336 = vst [vmem:[#allocation29_spill] sm:$0xff] %v3073_v27  ;;  %v621_v54 = vrot.slane %v2178_v63, 1 }
  0x8f   : > { %v3079_v40 = vsel %vm1416_vm3, %v1363_v53, %v5069_v57  ;;  %v3082_v20 = vrot.slane %v2900_v21, %v1457_v62  ;;  %v3085_v41 = vrot.slane %v2902_v22, %v1457_v62  ;;  %v3092_v55 = vrot.slane %v2907_v24, %v1457_v62 }
  0x90   : > { %v1125_v58 = vadd.f32 %v1093_v44, %v961_v4  ;;  %5337 = vst [vmem:[#allocation30_spill] sm:$0xff] %v3079_v40  ;;  %v453_v5 = vadd.f32 %v421_v56, %v353_v11  ;;  %v489_v4 = vmul.f32 %v2873_v7, %v2927_v37  ;;  %v557_v44 = vmul.f32 %v2885_v12, %v2930_v38 }
  0x91   : > { %v5072_v53 = vrot.slane %v3055_v42, 1  ;;  %v1461_v21 = vmul.f32 %v3064_v59, %v3053_v3  ;;  %v3099_v22 = vmul.f32 %v3055_v42, %v2921_v35  ;;  %v991_v56 = vrot.slane %v2178_v63, 2 }
  0x92   : > { %v1193_v48 = vadd.f32 %v1161_v0, %v1125_v58  ;;  %v521_v11 = vadd.f32 %v489_v4, %v453_v5  ;;  %v1529_v58 = vmul.f32 %v3082_v20, %v3061_v60  ;;  %v5075_v62 = vrot.slane %v3055_v42, 2 }
  0x93   : > { %v700_v24 = vsel %vm680_vm1, %v621_v54, %v5072_v53  ;;  %v1597_v0 = vmul.f32 %v3085_v41, %v3073_v27  ;;  %v1665_v4 = vmul.f32 %v3092_v55, %v3079_v40  ;;  %v927_v54 = vmul.f32 %v2974_v51, %v2956_v45 }
  0x94   : > { %v1261_v57 = vadd.f32 %v1229_v19, %v1193_v48  ;;  %v589_v52 = vadd.f32 %v557_v44, %v521_v11  ;;  %v723_v33 = vmul.f32 %v2965_v47, %v700_v24  ;;  %v791_v19 = vmul.f32 %v2968_v49, %v2936_v39  ;;  %v3125_v39 = vld [vmem:[%s2840_s21 + $0x38] sm:$0xff]  }
  0x95   : > { %v859_v48 = vmul.f32 %v2971_v50, %v2948_v43  ;;  %v1068_v44 = vsel %vm1048_vm2, %v991_v56, %v5075_v62  ;;  %v1359_v11 = vrot.slane %v2178_v63, 3  ;;  %v5077_v24 = vrot.slane %v3055_v42, 3 }
  0x96   : > { %v1329_v5 = vadd.f32 %v1297_v61, %v1261_v57  ;;  %v755_v53 = vadd.f32 %v723_v33, %v589_v52  ;;  %v1159_v57 = vmul.f32 %v3023_v28, %v2998_v16  ;;  %v1227_v32 = vmul.f32 %v3026_v29, %v3004_v17 }
  0x97   : > { %v3132_v31 = vunpack.c.h.bf16 %v2864_v2  ;;  %v1295_v52 = vmul.f32 %v3029_v34, %v3013_v25  ;;  %v3137_v63 = vunpack.c.l.bf16 %v2878_v9  ;;  %v3140_v56 = vunpack.c.h.bf16 %v2881_v10 }
  0x98   : > { %v1493_v61 = vadd.f32 %v1461_v21, %v1329_v5  ;;  %v823_v33 = vadd.f32 %v791_v19, %v755_v53  ;;  %v1091_v5 = vmul.f32 %v3007_v18, %v1068_v44  ;;  %v3144_v16 = vunpack.c.l.bf16 %v3125_v39 }
  0x99   : > { %v356_v2 = vmul.f32 %v2871_v6, %v2921_v35  ;;  %v1436_v53 = vsel %vm1416_vm3, %v1359_v11, %v5077_v24  ;;  %v424_v9 = vmul.f32 %v2875_v8, %v2924_v36  ;;  %v492_v10 = vmul.f32 %v2888_v13, %v2927_v37 }
  0x9a   : > { %v1561_v21 = vadd.f32 %v1529_v58, %v1493_v61  ;;  %v891_v62 = vadd.f32 %v859_v48, %v823_v33  ;;  %v660_v19 = vrot.slane %v3132_v31, 1  ;;  %v661_v44 = vrot.slane %v3137_v63, 1 }
  0x9b   : > { %v662_v61 = vrot.slane %v3140_v56, 1  ;;  %v456_v48 = vadd.f32 %v424_v9, %v356_v2  ;;  %v560_v33 = vmul.f32 %v2892_v15, %v2930_v38  ;;  %v663_v11 = vrot.slane %v3144_v16, 1 }
  0x9c   : > { %v1629_v58 = vadd.f32 %v1597_v0, %v1561_v21  ;;  %v959_v30 = vadd.f32 %v927_v54, %v891_v62  ;;  %v5338_v40 = vrot.slane %v2871_v6, 1  ;;  %v5339_v0 = vrot.slane %v2875_v8, 1 }
  0x9d   : > { %v1030_v62 = vrot.slane %v3132_v31, 2  ;;  %v524_v2 = vadd.f32 %v492_v10, %v456_v48  ;;  %v5341_v9 = vrot.slane %v2888_v13, 1  ;;  %v1032_v48 = vrot.slane %v3140_v56, 2 }
  0x9e   : > { %v1697_v24 = vadd.f32 %v1665_v4, %v1629_v58  ;;  %v682_v26 = vsel %vm680_vm1, %v5338_v40, %v660_v19  ;;  %v3170_v21 = vsel %vm680_vm1, %v5339_v0, %v661_v44  ;;  %v1123_v54 = vadd.f32 %v1091_v5, %v959_v30 }
  0x9f   : > { %5340 = vst [vmem:[#allocation31_spill] sm:$0xff] %v3170_v21  ;;  %v3177_v4 = vsel %vm680_vm1, %v5341_v9, %v662_v61  ;;  %v726_v58 = vmul.f32 %v2965_v47, %v682_v26  ;;  %v1527_v40 = vmul.f32 %v3082_v20, %v3053_v3  ;;  %v5343_v19 = vrot.slane %v2892_v15, 1 }
  0xa0   : > { %5342 = vst [vmem:[#allocation32_spill] sm:$0xff] %v3177_v4  ;;  %1733 = vadd.xlane.f32.xlu1 %v1697_v24  ;;  %v794_v30 = vmul.f32 %v2968_v49, %v3170_v21  ;;  %v1031_v5 = vrot.slane %v3137_v63, 2  ;;  %v1191_v10 = vadd.f32 %v1159_v57, %v1123_v54  ;;  %v592_v61 = vadd.f32 %v560_v33, %v524_v2 }
  0xa1   : > { %v3186_v44 = vsel %vm680_vm1, %v5343_v19, %v663_v11  ;;  %v1033_v24 = vrot.slane %v3144_v16, 2  ;;  %v1459_v0 = vmul.f32 %v3064_v59, %v1436_v53  ;;  %v1595_v3 = vmul.f32 %v3085_v41, %v3061_v60 }
  0xa2   : > { %5344 = vst [vmem:[#allocation33_spill] sm:$0xff] %v3186_v44  ;;  %v1663_v11 = vmul.f32 %v3092_v55, %v3073_v27  ;;  %v862_v9 = vmul.f32 %v2971_v50, %v3177_v4  ;;  %v1259_v19 = vadd.f32 %v1227_v32, %v1191_v10  ;;  %v758_v25 = vadd.f32 %v726_v58, %v592_v61 }
  0xa3   : > { %v5345_v57 = vrot.slane %v2871_v6, 2  ;;  %v1398_v54 = vrot.slane %v3132_v31, 3  ;;  %v930_v53 = vmul.f32 %v2974_v51, %v3186_v44  ;;  %v5346_v2 = vrot.slane %v2875_v8, 2 }
  0xa4   : > { %v5348_v60 = vrot.slane %v2888_v13, 2  ;;  %v1399_v58 = vrot.slane %v3137_v63, 3  ;;  %v826_v10 = vadd.f32 %v794_v30, %v758_v25  ;;  %v5350_v31 = vrot.slane %v2892_v15, 2 }
  0xa5   : > { %v1050_v33 = vsel %vm1048_vm2, %v5345_v57, %v1030_v62  ;;  %v3211_v27 = vsel %vm1048_vm2, %v5346_v2, %v1031_v5  ;;  %v1327_v62 = vadd.f32 %v1295_v52, %v1259_v19  ;;  %v1400_v57 = vrot.slane %v3140_v56, 3 }
  0xa6   : > { %5347 = vst [vmem:[#allocation34_spill] sm:$0xff] %v3211_v27  ;;  %v3217_v32 = vsel %vm1048_vm2, %v5348_v60, %v1032_v48  ;;  %v3224_v61 = vsel %vm1048_vm2, %v5350_v31, %v1033_v24  ;;  %v1094_v5 = vmul.f32 %v3007_v18, %v1050_v33  ;;  %v1401_v2 = vrot.slane %v3144_v16, 3 }
  0xa7   : > { %5349 = vst [vmem:[#allocation35_spill] sm:$0xff] %v3217_v32  ;;  %5351 = vst [vmem:[#allocation36_spill] sm:$0xff] %v3224_v61  ;;  %v2182_v17 = vunpack.c.l.bf16 %v2861_v1  ;;  %v422_v60 = vmul.f32 %v2871_v6, %v2924_v36  ;;  %v1491_v63 = vadd.f32 %v1459_v0, %v1327_v62  ;;  %v894_v52 = vadd.f32 %v862_v9, %v826_v10 }
  0xa8   : > { %v1162_v25 = vmul.f32 %v3023_v28, %v3211_v27  ;;  %v5352_v30 = vrot.slane %v2871_v6, 3  ;;  %v1230_v56 = vmul.f32 %v3026_v29, %v3217_v32  ;;  %v1298_v16 = vmul.f32 %v3029_v34, %v3224_v61 }
  0xa9   : > { %v5353_v1 = vrot.slane %v2875_v8, 3  ;;  %v5355_v0 = vrot.slane %v2888_v13, 3  ;;  %v1559_v9 = vadd.f32 %v1527_v40, %v1491_v63  ;;  %v962_v19 = vadd.f32 %v930_v53, %v894_v52 }
  0xaa   : > { %v1418_v48 = vsel %vm1416_vm3, %v5352_v30, %v1398_v54  ;;  %v454_v54 = vadd.f32 %v422_v60, %v3099_v22  ;;  %v490_v62 = vmul.f32 %v2875_v8, %v2927_v37  ;;  %v5357_v10 = vrot.slane %v2892_v15, 3 }
  0xab   : > { %v3246_v24 = vsel %vm1416_vm3, %v5353_v1, %v1399_v58  ;;  %v3252_v6 = vsel %vm1416_vm3, %v5355_v0, %v1400_v57  ;;  %v1462_v58 = vmul.f32 %v3064_v59, %v1418_v48  ;;  %v558_v57 = vmul.f32 %v2888_v13, %v2930_v38 }
  0xac   : > { %5354 = vst [vmem:[#allocation37_spill] sm:$0xff] %v3246_v24  ;;  %5356 = vst [vmem:[#allocation38_spill] sm:$0xff] %v3252_v6  ;;  %v3261_v31 = vsel %vm1416_vm3, %v5357_v10, %v1401_v2  ;;  %v659_v30 = vrot.slane %v2182_v17, 1  ;;  %v1627_v40 = vadd.f32 %v1595_v3, %v1559_v9  ;;  %v1126_v53 = vadd.f32 %v1094_v5, %v962_v19  ;;  %v3277_v19 = vld [vmem:[%s2840_s21 + $0x60] sm:$0xff]  }
  0xad   : > { %5358 = vst [vmem:[#allocation39_spill] sm:$0xff] %v3261_v31  ;;  %v1530_v22 = vmul.f32 %v3082_v20, %v3246_v24  ;;  %v522_v60 = vadd.f32 %v490_v62, %v454_v54  ;;  %v1598_v63 = vmul.f32 %v3085_v41, %v3252_v6  ;;  %v5359_v52 = vrot.slane %v3055_v42, 1 }
  0xae   : > { %v792_v1 = vmul.f32 %v2968_v49, %v682_v26  ;;  %v1029_v0 = vrot.slane %v2182_v17, 2  ;;  %v1695_v10 = vadd.f32 %v1663_v11, %v1627_v40  ;;  %v1194_v3 = vadd.f32 %v1162_v25, %v1126_v53  ;;  %v2301_v53 = vld [vmem:[%s2840_s21 + $0x70] sm:$0xff]  }
  0xaf   : > { %v681_v2 = vsel %vm680_vm1, %v5359_v52, %v659_v30  ;;  %v590_v5 = vadd.f32 %v558_v57, %v522_v60  ;;  %v1666_v54 = vmul.f32 %v3092_v55, %v3261_v31  ;;  %v860_v62 = vmul.f32 %v2971_v50, %v3170_v21  ;;  %v3292_v60 = vld [vmem:[%s2840_s21 + $0x78] sm:$0xff]   ;;  %v3311_v31 = vld [vmem:[%s2840_s21 + $0x68] sm:$0xff]  }
  0xb0   : > { %v724_v9 = vmul.f32 %v2965_v47, %v681_v2  ;;  %v5360_v30 = vrot.slane %v3055_v42, 2  ;;  %v1397_v52 = vrot.slane %v2182_v17, 3  ;;  %1729 = vadd.xlane.f32.xlu0 %v1695_v10  ;;  %v1262_v11 = vadd.f32 %v1230_v56, %v1194_v3  ;;  %v2304_v10 = vld [vmem:[%s2840_s21 + $0x88] sm:$0xff]  }
  0xb1   : > { %v928_v57 = vmul.f32 %v2974_v51, %v3177_v4  ;;  %v1160_v40 = vmul.f32 %v3023_v28, %v1050_v33  ;;  %v1228_v2 = vmul.f32 %v3026_v29, %v3211_v27  ;;  %v3299_v17 = vmul.f32 %v3082_v20, %v1418_v48 }
  0xb2   : > { %v1049_v26 = vsel %vm1048_vm2, %v5360_v30, %v1029_v0  ;;  %v756_v25 = vadd.f32 %v724_v9, %v590_v5  ;;  %v1296_v0 = vmul.f32 %v3029_v34, %v3217_v32  ;;  %v3302_v56 = vunpack.c.h.bf16 %v3277_v19 }
  0xb3   : > { %v1330_v3 = vadd.f32 %v1298_v16, %v1262_v11  ;;  %v1092_v33 = vmul.f32 %v3007_v18, %v1049_v26  ;;  %v5362_v9 = vrot.slane %v3055_v42, 3  ;;  %v3314_v46 = vunpack.c.l.bf16 %v3311_v31  ;;  %v3324_v16 = vld [vmem:[%s2840_s21 + $0x80] sm:$0xff]  }
  0xb4   : > { %5361 = vst [vmem:[#allocation40_spill] sm:$0xff] %v3302_v56  ;;  %v824_v5 = vadd.f32 %v792_v1, %v756_v25  ;;  %v3316_v48 = vunpack.c.l.bf16 %v2301_v53  ;;  %v3318_v45 = vunpack.c.h.bf16 %v2301_v53  ;;  %v3321_v61 = vunpack.c.h.bf16 %v3292_v60 }
  0xb5   : > { %v1417_v30 = vsel %vm1416_vm3, %v5362_v9, %v1397_v52  ;;  %v1494_v1 = vadd.f32 %v1462_v58, %v1330_v3  ;;  %v3327_v42 = vunpack.c.l.bf16 %v3324_v16  ;;  %v3329_v52 = vunpack.c.l.bf16 %v2304_v10 }
  0xb6   : > { %5363 = vst [vmem:[#allocation41_spill] sm:$0xff] %v3316_v48  ;;  %5364 = vst [vmem:[#allocation42_spill] sm:$0xff] %v3321_v61  ;;  %v892_v26 = vadd.f32 %v860_v62, %v824_v5  ;;  %v3331_v11 = vunpack.c.h.bf16 %v2304_v10  ;;  %v370_v25 = vmul.f32 %v3302_v56, %v2921_v35  ;;  %v438_v53 = vmul.f32 %v3316_v48, %v2924_v36 }
  0xb7   : > { %5365 = vst [vmem:[#allocation43_spill] sm:$0xff] %v3329_v52  ;;  %v506_v9 = vmul.f32 %v3321_v61, %v2927_v37  ;;  %v1562_v43 = vadd.f32 %v1530_v22, %v1494_v1  ;;  %v574_v58 = vmul.f32 %v3329_v52, %v2930_v38  ;;  %v5112_v62 = vrot.slane %v3302_v56, 1 }
  0xb8   : > { %v960_v32 = vadd.f32 %v928_v57, %v892_v26  ;;  %v470_v3 = vadd.f32 %v438_v53, %v370_v25  ;;  %v5108_v10 = vrot.slane %v3316_v48, 1  ;;  %v5107_v5 = vrot.slane %v3321_v61, 1 }
  0xb9   : > { %v1630_v14 = vadd.f32 %v1598_v63, %v1562_v43  ;;  %v667_v7 = vrot.slane %v3314_v46, 1  ;;  %v668_v44 = vrot.slane %v3318_v45, 1  ;;  %v1460_v22 = vmul.f32 %v3064_v59, %v1417_v30 }
  0xba   : > { %v1124_v12 = vadd.f32 %v1092_v33, %v960_v32  ;;  %v538_v57 = vadd.f32 %v506_v9, %v470_v3  ;;  %v669_v1 = vrot.slane %v3327_v42, 1  ;;  %v670_v26 = vrot.slane %v3331_v11, 1 }
  0xbb   : > { %v1698_v25 = vadd.f32 %v1666_v54, %v1630_v14  ;;  %v3354_v27 = vsel %vm680_vm1, %v5112_v62, %v667_v7  ;;  %v3360_v43 = vsel %vm680_vm1, %v5108_v10, %v668_v44  ;;  %v5110_v14 = vrot.slane %v3302_v56, 2 }
  0xbc   : > { %v1192_v53 = vadd.f32 %v1160_v40, %v1124_v12  ;;  %5366 = vst [vmem:[#allocation44_spill] sm:$0xff] %v3354_v27  ;;  %5367 = vst [vmem:[#allocation45_spill] sm:$0xff] %v3360_v43  ;;  %v606_v32 = vadd.f32 %v574_v58, %v538_v57  ;;  %v3366_v63 = vsel %vm680_vm1, %v5107_v5, %v669_v1  ;;  %v5369_v54 = vrot.slane %v3329_v52, 1 }
  0xbd   : > { %5368 = vst [vmem:[#allocation46_spill] sm:$0xff] %v3366_v63  ;;  %v740_v12 = vmul.f32 %v2965_v47, %v3354_v27  ;;  %1735 = vadd.xlane.f32.xlu1 %v1698_v25  ;;  %v808_v40 = vmul.f32 %v2968_v49, %v3360_v43  ;;  %v876_v33 = vmul.f32 %v2971_v50, %v3366_v63  ;;  %v5109_v9 = vrot.slane %v3316_v48, 2 }
  0xbe   : > { %v1260_v7 = vadd.f32 %v1228_v2, %v1192_v53  ;;  %v3375_v44 = vsel %vm680_vm1, %v5369_v54, %v670_v26  ;;  %v5111_v58 = vrot.slane %v3321_v61, 2  ;;  %v5113_v3 = vrot.slane %v3329_v52, 2 }
  0xbf   : > { %5370 = vst [vmem:[#allocation47_spill] sm:$0xff] %v3375_v44  ;;  %v772_v30 = vadd.f32 %v740_v12, %v606_v32  ;;  %v1037_v57 = vrot.slane %v3314_v46, 2  ;;  %v1038_v1 = vrot.slane %v3318_v45, 2  ;;  %v1039_v26 = vrot.slane %v3327_v42, 2 }
  0xc0   : > { %v1328_v2 = vadd.f32 %v1296_v0, %v1260_v7  ;;  %v1596_v25 = vmul.f32 %v3085_v41, %v3246_v24  ;;  %v944_v32 = vmul.f32 %v2974_v51, %v3375_v44  ;;  %v1040_v12 = vrot.slane %v3331_v11, 2 }
  0xc1   : > { %v840_v53 = vadd.f32 %v808_v40, %v772_v30  ;;  %v1664_v5 = vmul.f32 %v3092_v55, %v3252_v6  ;;  %v3398_v0 = vsel %vm1048_vm2, %v5110_v14, %v1037_v57  ;;  %v3404_v7 = vsel %vm1048_vm2, %v5109_v9, %v1038_v1 }
  0xc2   : > { %v1492_v54 = vadd.f32 %v1460_v22, %v1328_v2  ;;  %5371 = vst [vmem:[#allocation48_spill] sm:$0xff] %v3398_v0  ;;  %5372 = vst [vmem:[#allocation49_spill] sm:$0xff] %v3404_v7  ;;  %v1108_v30 = vmul.f32 %v3007_v18, %v3398_v0  ;;  %v5116_v22 = vrot.slane %v3302_v56, 3  ;;  %v5115_v2 = vrot.slane %v3316_v48, 3 }
  0xc3   : > { %v908_v40 = vadd.f32 %v876_v33, %v840_v53  ;;  %v3415_v57 = vsel %vm1048_vm2, %v5111_v58, %v1039_v26  ;;  %v3421_v33 = vsel %vm1048_vm2, %v5113_v3, %v1040_v12  ;;  %v1176_v1 = vmul.f32 %v3023_v28, %v3404_v7 }
  0xc4   : > { %v1560_v10 = vadd.f32 %v3299_v17, %v1492_v54  ;;  %5373 = vst [vmem:[#allocation50_spill] sm:$0xff] %v3415_v57  ;;  %5374 = vst [vmem:[#allocation51_spill] sm:$0xff] %v3421_v33  ;;  %v5114_v9 = vrot.slane %v3321_v61, 3  ;;  %v1405_v17 = vrot.slane %v3314_v46, 3  ;;  %v1406_v54 = vrot.slane %v3318_v45, 3 }
  0xc5   : > { %v976_v53 = vadd.f32 %v944_v32, %v908_v40  ;;  %v3429_v26 = vunpack.c.h.bf16 %v3311_v31  ;;  %v1407_v58 = vrot.slane %v3327_v42, 3  ;;  %v3433_v62 = vunpack.c.l.bf16 %v3277_v19 }
  0xc6   : > { %v1628_v14 = vadd.f32 %v1596_v25, %v1560_v10  ;;  %v1244_v3 = vmul.f32 %v3026_v29, %v3415_v57  ;;  %v3441_v46 = vsel %vm1416_vm3, %v5116_v22, %v1405_v17  ;;  %v3444_v45 = vunpack.c.l.bf16 %v3292_v60 }
  0xc7   : > { %5375 = vst [vmem:[#allocation52_spill] sm:$0xff] %v3429_v26  ;;  %5376 = vst [vmem:[#allocation53_spill] sm:$0xff] %v3433_v62  ;;  %v1140_v12 = vadd.f32 %v1108_v30, %v976_v53  ;;  %v3447_v10 = vunpack.c.h.bf16 %v3324_v16  ;;  %v1312_v19 = vmul.f32 %v3029_v34, %v3421_v33  ;;  %v5117_v42 = vrot.slane %v3329_v52, 3 }
  0xc8   : > { %5377 = vst [vmem:[#allocation54_spill] sm:$0xff] %v3441_v46  ;;  %5378 = vst [vmem:[#allocation55_spill] sm:$0xff] %v3444_v45  ;;  %v1696_v31 = vadd.f32 %v1664_v5, %v1628_v14  ;;  %v1408_v32 = vrot.slane %v3331_v11, 3  ;;  %v3457_v40 = vsel %vm1416_vm3, %v5115_v2, %v1406_v54  ;;  %v3463_v60 = vsel %vm1416_vm3, %v5114_v9, %v1407_v58 }
  0xc9   : > { %v1208_v25 = vadd.f32 %v1176_v1, %v1140_v12  ;;  %5379 = vst [vmem:[#allocation56_spill] sm:$0xff] %v3457_v40  ;;  %5380 = vst [vmem:[#allocation57_spill] sm:$0xff] %v3463_v60  ;;  %v1476_v16 = vmul.f32 %v3064_v59, %v3441_v46  ;;  %v369_v5 = vmul.f32 %v3433_v62, %v2921_v35  ;;  %v629_v1 = vrot.slane %v3433_v62, 1 }
  0xca   : > { %1731 = vadd.xlane.f32.xlu0 %v1696_v31  ;;  %v437_v11 = vmul.f32 %v3429_v26, %v2924_v36  ;;  %v505_v14 = vmul.f32 %v3444_v45, %v2927_v37  ;;  %v630_v53 = vrot.slane %v3429_v26, 1  ;;  %v631_v58 = vrot.slane %v3444_v45, 1 }
  0xcb   : > { %v1276_v30 = vadd.f32 %v1244_v3, %v1208_v25  ;;  %v1544_v17 = vmul.f32 %v3082_v20, %v3457_v40  ;;  %v573_v12 = vmul.f32 %v3447_v10, %v2930_v38  ;;  %v632_v9 = vrot.slane %v3447_v10, 1 }
  0xcc   : > { %v469_v54 = vadd.f32 %v437_v11, %v369_v5  ;;  %v5381_v2 = vrot.slane %v3302_v56, 1  ;;  %v5383_v25 = vrot.slane %v3316_v48, 1  ;;  %v3497_v5 = vsel %vm1416_vm3, %v5117_v42, %v1408_v32 }
  0xcd   : > { %v1344_v31 = vadd.f32 %v1312_v19, %v1276_v30  ;;  %5385 = vst [vmem:[#allocation60_spill] sm:$0xff] %v3497_v5  ;;  %v1612_v19 = vmul.f32 %v3085_v41, %v3463_v60  ;;  %v1000_v32 = vrot.slane %v3429_v26, 2  ;;  %v1002_v0 = vrot.slane %v3447_v10, 2 }
  0xce   : > { %v3485_v3 = vsel %vm680_vm1, %v629_v1, %v5381_v2  ;;  %v3491_v22 = vsel %vm680_vm1, %v630_v53, %v5383_v25  ;;  %v537_v11 = vadd.f32 %v505_v14, %v469_v54  ;;  %v5386_v1 = vrot.slane %v3321_v61, 1 }
  0xcf   : > { %5382 = vst [vmem:[#allocation58_spill] sm:$0xff] %v3485_v3  ;;  %5384 = vst [vmem:[#allocation59_spill] sm:$0xff] %v3491_v22  ;;  %v739_v2 = vmul.f32 %v2965_v47, %v3485_v3  ;;  %v1508_v30 = vadd.f32 %v1476_v16, %v1344_v31  ;;  %v999_v25 = vrot.slane %v3433_v62, 2  ;;  %v807_v46 = vmul.f32 %v2968_v49, %v3491_v22 }
  0xd0   : > { %v3507_v53 = vsel %vm680_vm1, %v631_v58, %v5386_v1  ;;  %v605_v42 = vadd.f32 %v573_v12, %v537_v11  ;;  %v1680_v54 = vmul.f32 %v3092_v55, %v3497_v5  ;;  %v5388_v16 = vrot.slane %v3329_v52, 1  ;;  %v2305_v12 = vld [vmem:[%s2840_s21 + $0x90] sm:$0xff]  }
  0xd1   : > { %5387 = vst [vmem:[#allocation61_spill] sm:$0xff] %v3507_v53  ;;  %v1576_v14 = vadd.f32 %v1544_v17, %v1508_v30  ;;  %v875_v1 = vmul.f32 %v2971_v50, %v3507_v53  ;;  %v1001_v3 = vrot.slane %v3444_v45, 2  ;;  %v5390_v17 = vrot.slane %v3302_v56, 2 }
  0xd2   : > { %v3519_v31 = vsel %vm680_vm1, %v632_v9, %v5388_v16  ;;  %v771_v58 = vadd.f32 %v739_v2, %v605_v42  ;;  %v5392_v27 = vrot.slane %v3316_v48, 2  ;;  %v2306_v16 = vld [vmem:[%s2840_s21 + $0x98] sm:$0xff]   ;;  %v1368_v6 = vrot.slane %v3429_v26, 3 }
  0xd3   : > { %5389 = vst [vmem:[#allocation62_spill] sm:$0xff] %v3519_v31  ;;  %v1644_v11 = vadd.f32 %v1612_v19, %v1576_v14  ;;  %v3530_v30 = vsel %vm1048_vm2, %v999_v25, %v5390_v17  ;;  %v943_v2 = vmul.f32 %v2974_v51, %v3519_v31  ;;  %v1367_v14 = vrot.slane %v3433_v62, 3 }
  0xd4   : > { %5391 = vst [vmem:[#allocation63_spill] sm:$0xff] %v3530_v30  ;;  %v3536_v9 = vsel %vm1048_vm2, %v1000_v32, %v5392_v27  ;;  %v839_v42 = vadd.f32 %v807_v46, %v771_v58  ;;  %v3543_v24 = vunpack.c.h.bf16 %v2305_v12  ;;  %v5395_v17 = vrot.slane %v3321_v61, 2 }
  0xd5   : > { %5393 = vst [vmem:[#allocation64_spill] sm:$0xff] %v3536_v9  ;;  %v1712_v19 = vadd.f32 %v1680_v54, %v1644_v11  ;;  %v1107_v27 = vmul.f32 %v3007_v18, %v3530_v30  ;;  %v1175_v46 = vmul.f32 %v3023_v28, %v3536_v9  ;;  %v5397_v32 = vrot.slane %v3329_v52, 2 }
  0xd6   : > { %5394 = vst [vmem:[#allocation65_spill] sm:$0xff] %v3543_v24  ;;  %v907_v25 = vadd.f32 %v875_v1, %v839_v42  ;;  %v3549_v4 = vsel %vm1048_vm2, %v1001_v3, %v5395_v17  ;;  %v1369_v58 = vrot.slane %v3444_v45, 3  ;;  %v3562_v1 = vunpack.c.l.bf16 %v2306_v16 }
  0xd7   : > { %5396 = vst [vmem:[#allocation66_spill] sm:$0xff] %v3549_v4  ;;  %1763 = vadd.xlane.f32.xlu1 %v1712_v19  ;;  %v3559_v54 = vsel %vm1048_vm2, %v1002_v0, %v5397_v32  ;;  %v372_v3 = vmul.f32 %v3316_v48, %v2921_v35  ;;  %v1370_v42 = vrot.slane %v3447_v10, 3  ;;  %v440_v17 = vmul.f32 %v3321_v61, %v2924_v36 }
  0xd8   : > { %5398 = vst [vmem:[#allocation67_spill] sm:$0xff] %v3559_v54  ;;  %v975_v11 = vadd.f32 %v943_v2, %v907_v25  ;;  %v508_v19 = vmul.f32 %v3329_v52, %v2927_v37  ;;  %v1243_v0 = vmul.f32 %v3026_v29, %v3549_v4  ;;  %v5399_v32 = vrot.slane %v3302_v56, 3 }
  0xd9   : > { %v5401_v62 = vrot.slane %v3316_v48, 3  ;;  %v576_v25 = vmul.f32 %v3543_v24, %v2930_v38  ;;  %v472_v9 = vadd.f32 %v440_v17, %v372_v3  ;;  %v652_v5 = vrot.slane %v3543_v24, 1 }
  0xda   : > { %v3577_v30 = vsel %vm1416_vm3, %v1367_v14, %v5399_v32  ;;  %v1139_v21 = vadd.f32 %v1107_v27, %v975_v11  ;;  %v671_v4 = vrot.slane %v3562_v1, 1  ;;  %v3590_v56 = vunpack.c.h.bf16 %v3125_v39 }
  0xdb   : > { %5400 = vst [vmem:[#allocation68_spill] sm:$0xff] %v3577_v30  ;;  %v3583_v2 = vsel %vm1416_vm3, %v1368_v6, %v5401_v62  ;;  %v1311_v14 = vmul.f32 %v3029_v34, %v3559_v54  ;;  %v5404_v32 = vrot.slane %v3321_v61, 3  ;;  %v5406_v27 = vrot.slane %v3329_v52, 3 }
  0xdc   : > { %5402 = vst [vmem:[#allocation69_spill] sm:$0xff] %v3583_v2  ;;  %5403 = vst [vmem:[#allocation70_spill] sm:$0xff] %v3590_v56  ;;  %v1207_v62 = vadd.f32 %v1175_v46, %v1139_v21  ;;  %v540_v11 = vadd.f32 %v508_v19, %v472_v9  ;;  %v742_v39 = vmul.f32 %v2965_v47, %v3360_v43  ;;  %v1041_v21 = vrot.slane %v3562_v1, 2 }
  0xdd   : > { %v3598_v6 = vsel %vm1416_vm3, %v1369_v58, %v5404_v32  ;;  %v3604_v3 = vsel %vm1416_vm3, %v1370_v42, %v5406_v27  ;;  %v1475_v17 = vmul.f32 %v3064_v59, %v3577_v30  ;;  %v1543_v48 = vmul.f32 %v3082_v20, %v3583_v2 }
  0xde   : > { %5405 = vst [vmem:[#allocation71_spill] sm:$0xff] %v3598_v6  ;;  %v1275_v46 = vadd.f32 %v1243_v0, %v1207_v62  ;;  %v608_v32 = vadd.f32 %v576_v25, %v540_v11  ;;  %v3616_v42 = vsel %vm680_vm1, %v652_v5, %v671_v4  ;;  %v810_v9 = vmul.f32 %v2968_v49, %v3366_v63 }
  0xdf   : > { %5407 = vst [vmem:[#allocation72_spill] sm:$0xff] %v3616_v42  ;;  %v1611_v19 = vmul.f32 %v3085_v41, %v3598_v6  ;;  %v1679_v27 = vmul.f32 %v3092_v55, %v3604_v3  ;;  %v3624_v43 = vunpack.c.l.bf16 %v2305_v12  ;;  %v371_v58 = vmul.f32 %v3429_v26, %v2921_v35 }
  0xe0   : > { %v1343_v0 = vadd.f32 %v1311_v14, %v1275_v46  ;;  %v774_v25 = vadd.f32 %v742_v39, %v608_v32  ;;  %v878_v4 = vmul.f32 %v2971_v50, %v3375_v44  ;;  %v439_v62 = vmul.f32 %v3444_v45, %v2924_v36 }
  0xe1   : > { %5408 = vst [vmem:[#allocation73_spill] sm:$0xff] %v3624_v43  ;;  %v3632_v11 = vunpack.c.h.bf16 %v2306_v16  ;;  %v946_v30 = vmul.f32 %v2974_v51, %v3616_v42  ;;  %v5410_v63 = vrot.slane %v3543_v24, 2  ;;  %v507_v14 = vmul.f32 %v3447_v10, %v2927_v37 }
  0xe2   : > { %v1507_v39 = vadd.f32 %v1475_v17, %v1343_v0  ;;  %v842_v46 = vadd.f32 %v810_v9, %v774_v25  ;;  %v471_v32 = vadd.f32 %v439_v62, %v371_v58  ;;  %v575_v26 = vmul.f32 %v3624_v43, %v2930_v38 }
  0xe3   : > { %5409 = vst [vmem:[#allocation74_spill] sm:$0xff] %v3632_v11  ;;  %v3640_v12 = vsel %vm1048_vm2, %v5410_v63, %v1041_v21  ;;  %v1110_v16 = vmul.f32 %v3007_v18, %v3404_v7  ;;  %v1390_v11 = vrot.slane %v3543_v24, 3  ;;  %v1409_v45 = vrot.slane %v3562_v1, 3  ;;  %v5417_v7 = vld [vmem:[#allocation31_spill] sm:$0xff] }
  0xe4   : > { %5411 = vst [vmem:[#allocation75_spill] sm:$0xff] %v3640_v12  ;;  %v633_v63 = vrot.slane %v3624_v43, 1  ;;  %v1575_v21 = vadd.f32 %v1543_v48, %v1507_v39  ;;  %v910_v42 = vadd.f32 %v878_v4, %v842_v46  ;;  %v539_v44 = vadd.f32 %v507_v14, %v471_v32  ;;  %v2295_v14 = vld [vmem:[%s2840_s21 + $0x40] sm:$0xff]  }
  0xe5   : > { %v741_v17 = vmul.f32 %v2965_v47, %v3491_v22  ;;  %v1178_v58 = vmul.f32 %v3023_v28, %v3415_v57  ;;  %v1246_v9 = vmul.f32 %v3026_v29, %v3421_v33  ;;  %v1314_v0 = vmul.f32 %v3029_v34, %v3640_v12 }
  0xe6   : > { %v1478_v1 = vmul.f32 %v3064_v59, %v3457_v40  ;;  %v1643_v25 = vadd.f32 %v1611_v19, %v1575_v21  ;;  %v978_v62 = vadd.f32 %v946_v30, %v910_v42  ;;  %v607_v48 = vadd.f32 %v575_v26, %v539_v44 }
  0xe7   : > { %v809_v4 = vmul.f32 %v2968_v49, %v3507_v53  ;;  %v3666_v39 = vsel %vm1416_vm3, %v1390_v11, %v1409_v45  ;;  %v1546_v46 = vmul.f32 %v3082_v20, %v3463_v60  ;;  %v3672_v32 = vsel %vm680_vm1, %v633_v63, %v652_v5 }
  0xe8   : > { %5412 = vst [vmem:[#allocation76_spill] sm:$0xff] %v3666_v39  ;;  %5413 = vst [vmem:[#allocation77_spill] sm:$0xff] %v3672_v32  ;;  %v877_v19 = vmul.f32 %v2971_v50, %v3519_v31  ;;  %v1711_v30 = vadd.f32 %v1679_v27, %v1643_v25  ;;  %v1142_v44 = vadd.f32 %v1110_v16, %v978_v62  ;;  %v1003_v42 = vrot.slane %v3624_v43, 2 }
  0xe9   : > { %v773_v26 = vadd.f32 %v741_v17, %v607_v48  ;;  %v3677_v21 = vunpack.c.l.bf16 %v2295_v14  ;;  %v3679_v40 = vunpack.c.h.bf16 %v2295_v14  ;;  %v358_v45 = vmul.f32 %v2875_v8, %v2921_v35  ;;  %v5415_v14 = vld [vmem:[#allocation60_spill] sm:$0xff] }
  0xea   : > { %v426_v22 = vmul.f32 %v2888_v13, %v2924_v36  ;;  %1761 = vadd.xlane.f32.xlu0 %v1711_v30  ;;  %v1210_v5 = vadd.f32 %v1178_v58, %v1142_v44  ;;  %v945_v27 = vmul.f32 %v2974_v51, %v3672_v32  ;;  %v494_v16 = vmul.f32 %v2892_v15, %v2927_v37 }
  0xeb   : > { %5414 = vst [vmem:[#allocation78_spill] sm:$0xff] %v3677_v21  ;;  %v841_v63 = vadd.f32 %v809_v4, %v773_v26  ;;  %v562_v25 = vmul.f32 %v3677_v21, %v2930_v38  ;;  %v645_v62 = vrot.slane %v3677_v21, 1  ;;  %v664_v8 = vrot.slane %v3679_v40, 1  ;;  %v5416_v4 = vld [vmem:[#allocation64_spill] sm:$0xff] }
  0xec   : > { %v458_v17 = vadd.f32 %v426_v22, %v358_v45  ;;  %v1278_v48 = vadd.f32 %v1246_v9, %v1210_v5  ;;  %v1614_v30 = vmul.f32 %v3085_v41, %v5415_v14  ;;  %v1109_v44 = vmul.f32 %v3007_v18, %v5416_v4 }
  0xed   : > { %v909_v58 = vadd.f32 %v877_v19, %v841_v63  ;;  %v1682_v26 = vmul.f32 %v3092_v55, %v3666_v39  ;;  %v1371_v22 = vrot.slane %v3624_v43, 3  ;;  %v728_v15 = vmul.f32 %v2965_v47, %v5417_v7  ;;  %v5420_v19 = vld [vmem:[#allocation66_spill] sm:$0xff]  ;;  %v5422_v7 = vld [vmem:[#allocation32_spill] sm:$0xff] }
  0xee   : > { %v526_v45 = vadd.f32 %v494_v16, %v458_v17  ;;  %v1346_v13 = vadd.f32 %v1314_v0, %v1278_v48  ;;  %v5418_v9 = vrot.slane %v3543_v24, 2  ;;  %v1177_v63 = vmul.f32 %v3023_v28, %v5420_v19 }
  0xef   : > { %v977_v32 = vadd.f32 %v945_v27, %v909_v58  ;;  %v1245_v4 = vmul.f32 %v3026_v29, %v3559_v54  ;;  %v3714_v16 = vsel %vm680_vm1, %v645_v62, %v664_v8  ;;  %v796_v0 = vmul.f32 %v2968_v49, %v5422_v7 }
  0xf0   : > { %v3706_v5 = vsel %vm1048_vm2, %v1003_v42, %v5418_v9  ;;  %v594_v39 = vadd.f32 %v562_v25, %v526_v45  ;;  %5421 = vst [vmem:[#allocation79_spill] sm:$0xff] %v3714_v16  ;;  %v1510_v27 = vadd.f32 %v1478_v1, %v1346_v13  ;;  %v1034_v42 = vrot.slane %v3679_v40, 2  ;;  %v5424_v45 = vld [vmem:[#allocation33_spill] sm:$0xff] }
  0xf1   : > { %5419 = vst [vmem:[#allocation31_spill] sm:$0xff] %v3706_v5  ;;  %v1141_v17 = vadd.f32 %v1109_v44, %v977_v32  ;;  %v1313_v58 = vmul.f32 %v3029_v34, %v3706_v5  ;;  %v3724_v9 = vsel %vm1416_vm3, %v1371_v22, %v1390_v11  ;;  %v864_v8 = vmul.f32 %v2971_v50, %v5424_v45  ;;  %v5425_v1 = vld [vmem:[#allocation17_spill] sm:$0xff]  ;;  %v5426_v5 = vld [vmem:[#allocation18_spill] sm:$0xff] }
  0xf2   : > { %5423 = vst [vmem:[#allocation32_spill] sm:$0xff] %v3724_v9  ;;  %v760_v25 = vadd.f32 %v728_v15, %v594_v39  ;;  %v1578_v54 = vadd.f32 %v1546_v46, %v1510_v27  ;;  %v1477_v13 = vmul.f32 %v3064_v59, %v3583_v2  ;;  %v357_v32 = vmul.f32 %v5425_v1, %v2921_v35  ;;  %v5427_v15 = vld [vmem:[#allocation20_spill] sm:$0xff]  ;;  %v5430_v27 = vld [vmem:[#allocation34_spill] sm:$0xff] }
  0xf3   : > { %v1209_v19 = vadd.f32 %v1177_v63, %v1141_v17  ;;  %v932_v48 = vmul.f32 %v2974_v51, %v3714_v16  ;;  %v425_v11 = vmul.f32 %v5426_v5, %v2924_v36  ;;  %v493_v39 = vmul.f32 %v5427_v15, %v2927_v37 }
  0xf4   : > { %v828_v44 = vadd.f32 %v796_v0, %v760_v25  ;;  %v1646_v22 = vadd.f32 %v1614_v30, %v1578_v54  ;;  %v5428_v46 = vrot.slane %v3677_v21, 2  ;;  %v1096_v0 = vmul.f32 %v3007_v18, %v5430_v27 }
  0xf5   : > { %v1277_v45 = vadd.f32 %v1245_v4, %v1209_v19  ;;  %v457_v25 = vadd.f32 %v425_v11, %v357_v32  ;;  %v561_v1 = vmul.f32 %v3590_v56, %v2930_v38  ;;  %v626_v2 = vrot.slane %v3590_v56, 1  ;;  %v5431_v19 = vld [vmem:[#allocation35_spill] sm:$0xff]  ;;  %v5432_v32 = vld [vmem:[#allocation22_spill] sm:$0xff] }
  0xf6   : > { %v3742_v63 = vsel %vm1048_vm2, %v5428_v46, %v1034_v42  ;;  %v896_v17 = vadd.f32 %v864_v8, %v828_v44  ;;  %v1714_v5 = vadd.f32 %v1682_v26, %v1646_v22  ;;  %v1545_v54 = vmul.f32 %v3082_v20, %v3598_v6 }
  0xf7   : > { %5429 = vst [vmem:[#allocation17_spill] sm:$0xff] %v3742_v63  ;;  %v1345_v15 = vadd.f32 %v1313_v58, %v1277_v45  ;;  %v1613_v30 = vmul.f32 %v3085_v41, %v3604_v3  ;;  %v1164_v42 = vmul.f32 %v3023_v28, %v5431_v19  ;;  %v525_v8 = vadd.f32 %v493_v39, %v457_v25  ;;  %v5433_v58 = vld [vmem:[#allocation36_spill] sm:$0xff]  ;;  %v5435_v39 = vld [vmem:[#allocation23_spill] sm:$0xff] }
  0xf8   : > { %v964_v4 = vadd.f32 %v932_v48, %v896_v17  ;;  %v727_v44 = vmul.f32 %v2965_v47, %v5432_v32  ;;  %1767 = vadd.xlane.f32.xlu1 %v1714_v5  ;;  %v1681_v26 = vmul.f32 %v3092_v55, %v3724_v9  ;;  %v1232_v45 = vmul.f32 %v3026_v29, %v5433_v58  ;;  %v2307_v5 = vld [vmem:[%s2840_s21 + $0xa0] sm:$0xff]   ;;  %v5436_v32 = vld [vmem:[#allocation37_spill] sm:$0xff] }
  0xf9   : > { %v1509_v11 = vadd.f32 %v1477_v13, %v1345_v15  ;;  %v1300_v22 = vmul.f32 %v3029_v34, %v3742_v63  ;;  %v593_v48 = vadd.f32 %v561_v1, %v525_v8  ;;  %v3765_v27 = vsel %vm680_vm1, %v626_v2, %v645_v62  ;;  %v5437_v63 = vld [vmem:[#allocation38_spill] sm:$0xff] }
  0xfa   : > { %v1128_v46 = vadd.f32 %v1096_v0, %v964_v4  ;;  %5434 = vst [vmem:[#allocation34_spill] sm:$0xff] %v3765_v27  ;;  %v795_v17 = vmul.f32 %v2968_v49, %v5435_v39  ;;  %v1383_v15 = vrot.slane %v3677_v21, 3  ;;  %v1402_v25 = vrot.slane %v3679_v40, 3  ;;  %v5438_v4 = vld [vmem:[#allocation24_spill] sm:$0xff] }
  0xfb   : > { %v1577_v13 = vadd.f32 %v1545_v54, %v1509_v11  ;;  %v1464_v58 = vmul.f32 %v3064_v59, %v5436_v32  ;;  %v1532_v0 = vmul.f32 %v3082_v20, %v5437_v63  ;;  %v759_v1 = vadd.f32 %v727_v44, %v593_v48  ;;  %v5440_v44 = vld [vmem:[#allocation39_spill] sm:$0xff] }
  0xfc   : > { %v1196_v9 = vadd.f32 %v1164_v42, %v1128_v46  ;;  %v863_v2 = vmul.f32 %v2971_v50, %v5438_v4  ;;  %v931_v8 = vmul.f32 %v2974_v51, %v3765_v27  ;;  %v996_v54 = vrot.slane %v3590_v56, 2  ;;  %v5449_v27 = vld [vmem:[#allocation29_spill] sm:$0xff]  ;;  %v5450_v63 = vld [vmem:[#allocation47_spill] sm:$0xff] }
  0xfd   : > { %v1645_v62 = vadd.f32 %v1613_v30, %v1577_v13  ;;  %v3781_v11 = vunpack.c.l.bf16 %v2307_v5  ;;  %v827_v39 = vadd.f32 %v795_v17, %v759_v1  ;;  %v3783_v19 = vunpack.c.h.bf16 %v2307_v5  ;;  %v5442_v17 = vld [vmem:[#allocation25_spill] sm:$0xff] }
  0xfe   : > { %v1264_v40 = vadd.f32 %v1232_v45, %v1196_v9  ;;  %v374_v42 = vmul.f32 %v3321_v61, %v2921_v35  ;;  %v1600_v48 = vmul.f32 %v3085_v41, %v5440_v44  ;;  %v442_v30 = vmul.f32 %v3329_v52, %v2924_v36  ;;  %v5447_v52 = vld [vmem:[#allocation46_spill] sm:$0xff] }
  0xff   : > { %5439 = vst [vmem:[#allocation22_spill] sm:$0xff] %v3781_v11  ;;  %v1713_v46 = vadd.f32 %v1681_v26, %v1645_v62  ;;  %v510_v13 = vmul.f32 %v3543_v24, %v2927_v37  ;;  %v3795_v9 = vsel %vm1416_vm3, %v1383_v15, %v1402_v25  ;;  %v895_v45 = vadd.f32 %v863_v2, %v827_v39  ;;  %v5445_v62 = vld [vmem:[#allocation26_spill] sm:$0xff] }
 0x100   : > { %v1332_v32 = vadd.f32 %v1300_v22, %v1264_v40  ;;  %5441 = vst [vmem:[#allocation37_spill] sm:$0xff] %v3795_v9  ;;  %v1095_v5 = vmul.f32 %v3007_v18, %v5442_v17  ;;  %v5443_v26 = vrot.slane %v3677_v21, 2  ;;  %v1163_v61 = vmul.f32 %v3023_v28, %v5445_v62  ;;  %v5446_v17 = vld [vmem:[#allocation27_spill] sm:$0xff] }
 0x101   : > { %1765 = vadd.xlane.f32.xlu0 %v1713_v46  ;;  %v474_v24 = vadd.f32 %v442_v30, %v374_v42  ;;  %v578_v22 = vmul.f32 %v3781_v11, %v2930_v38  ;;  %v963_v40 = vadd.f32 %v931_v8, %v895_v45  ;;  %v653_v39 = vrot.slane %v3781_v11, 1 }
 0x102   : > { %v3803_v1 = vsel %vm1048_vm2, %v996_v54, %v5443_v26  ;;  %v1496_v25 = vadd.f32 %v1464_v58, %v1332_v32  ;;  %v672_v2 = vrot.slane %v3783_v19, 1  ;;  %v1668_v46 = vmul.f32 %v3092_v55, %v3795_v9  ;;  %v5448_v32 = vld [vmem:[#allocation28_spill] sm:$0xff] }
 0x103   : > { %5444 = vst [vmem:[#allocation25_spill] sm:$0xff] %v3803_v1  ;;  %v1231_v54 = vmul.f32 %v3026_v29, %v5446_v17  ;;  %v542_v26 = vadd.f32 %v510_v13, %v474_v24  ;;  %v744_v62 = vmul.f32 %v2965_v47, %v5447_v52  ;;  %v1127_v30 = vadd.f32 %v1095_v5, %v963_v40  ;;  %v5451_v52 = vld [vmem:[#allocation30_spill] sm:$0xff]  ;;  %v5452_v40 = vld [vmem:[#allocation72_spill] sm:$0xff] }
 0x104   : > { %v1564_v42 = vadd.f32 %v1532_v0, %v1496_v25  ;;  %v1299_v58 = vmul.f32 %v3029_v34, %v3803_v1  ;;  %v1364_v8 = vrot.slane %v3590_v56, 3  ;;  %v1463_v45 = vmul.f32 %v3064_v59, %v5448_v32 }
 0x105   : > { %v1531_v9 = vmul.f32 %v3082_v20, %v5449_v27  ;;  %v610_v44 = vadd.f32 %v578_v22, %v542_v26  ;;  %v812_v24 = vmul.f32 %v2968_v49, %v5450_v63  ;;  %v1195_v17 = vadd.f32 %v1163_v61, %v1127_v30 }
 0x106   : > { %v1632_v13 = vadd.f32 %v1600_v48, %v1564_v42  ;;  %v1599_v0 = vmul.f32 %v3085_v41, %v5451_v52  ;;  %v3830_v5 = vsel %vm680_vm1, %v653_v39, %v672_v2  ;;  %v880_v32 = vmul.f32 %v2971_v50, %v5452_v40  ;;  %v5454_v48 = vld [vmem:[#allocation55_spill] sm:$0xff] }
 0x107   : > { %v776_v25 = vadd.f32 %v744_v62, %v610_v44  ;;  %v1023_v1 = vrot.slane %v3781_v11, 2  ;;  %v1042_v22 = vrot.slane %v3783_v19, 2  ;;  %v1263_v27 = vadd.f32 %v1231_v54, %v1195_v17 }
 0x108   : > { %v1700_v26 = vadd.f32 %v1668_v46, %v1632_v13  ;;  %v3838_v61 = vsel %vm1416_vm3, %v1364_v8, %v1383_v15  ;;  %v373_v42 = vmul.f32 %v5454_v48, %v2921_v35  ;;  %v948_v44 = vmul.f32 %v2974_v51, %v3830_v5 }
 0x109   : > { %5453 = vst [vmem:[#allocation28_spill] sm:$0xff] %v3838_v61  ;;  %v844_v30 = vadd.f32 %v812_v24, %v776_v25  ;;  %v441_v62 = vmul.f32 %v3447_v10, %v2924_v36  ;;  %v509_v2 = vmul.f32 %v3624_v43, %v2927_v37  ;;  %v1331_v46 = vadd.f32 %v1299_v58, %v1263_v27  ;;  %v5456_v25 = vld [vmem:[#allocation74_spill] sm:$0xff] }
 0x10a   : > { %1739 = vadd.xlane.f32.xlu1 %v1700_v26  ;;  %v1112_v15 = vmul.f32 %v3007_v18, %v3415_v57  ;;  %v1410_v54 = vrot.slane %v3783_v19, 3  ;;  %v3854_v24 = vsel %vm1048_vm2, %v1023_v1, %v1042_v22  ;;  %v577_v48 = vmul.f32 %v5456_v25, %v2930_v38 }
 0x10b   : > { %v912_v8 = vadd.f32 %v880_v32, %v844_v30  ;;  %5455 = vst [vmem:[#allocation47_spill] sm:$0xff] %v3854_v24  ;;  %v473_v13 = vadd.f32 %v441_v62, %v373_v42  ;;  %v1495_v26 = vadd.f32 %v1463_v45, %v1331_v46  ;;  %v1667_v27 = vmul.f32 %v3092_v55, %v3838_v61  ;;  %v2296_v30 = vld [vmem:[%s2840_s21 + $0x48] sm:$0xff]  }
 0x10c   : > { %v1180_v58 = vmul.f32 %v3023_v28, %v3421_v33  ;;  %v634_v17 = vrot.slane %v5456_v25, 1  ;;  %v1248_v32 = vmul.f32 %v3026_v29, %v3640_v12  ;;  %v743_v42 = vmul.f32 %v2965_v47, %v3507_v53  ;;  %v5461_v33 = vld [vmem:[#allocation77_spill] sm:$0xff] }
 0x10d   : > { %v980_v19 = vadd.f32 %v948_v44, %v912_v8  ;;  %v541_v22 = vadd.f32 %v509_v2, %v473_v13  ;;  %v1563_v62 = vadd.f32 %v1531_v9, %v1495_v26  ;;  %v1316_v45 = vmul.f32 %v3029_v34, %v3854_v24  ;;  %v3879_v8 = vld [vmem:[%s2840_s21 + $0x50] sm:$0xff]  }
 0x10e   : > { %v5457_v46 = vrot.slane %v3781_v11, 3  ;;  %v1480_v44 = vmul.f32 %v3064_v59, %v3463_v60  ;;  %v1548_v13 = vmul.f32 %v3082_v20, %v5415_v14  ;;  %v811_v9 = vmul.f32 %v2968_v49, %v3519_v31 }
 0x10f   : > { %v1144_v2 = vadd.f32 %v1112_v15, %v980_v19  ;;  %v609_v53 = vadd.f32 %v577_v48, %v541_v22  ;;  %v1631_v26 = vadd.f32 %v1599_v0, %v1563_v62  ;;  %v3887_v24 = vsel %vm680_vm1, %v634_v17, %v653_v39  ;;  %v5462_v22 = vld [vmem:[#allocation76_spill] sm:$0xff]  ;;  %v5463_v62 = vld [vmem:[#allocation19_spill] sm:$0xff]  ;;  %v5464_v17 = vld [vmem:[#allocation21_spill] sm:$0xff] }
 0x110   : > { %v3874_v57 = vsel %vm1416_vm3, %v5457_v46, %v1410_v54  ;;  %5459 = vst [vmem:[#allocation72_spill] sm:$0xff] %v3887_v24  ;;  %v1004_v54 = vrot.slane %v5456_v25, 2  ;;  %v3890_v46 = vunpack.c.h.bf16 %v2296_v30  ;;  %v879_v15 = vmul.f32 %v2971_v50, %v5461_v33 }
 0x111   : > { %5458 = vst [vmem:[#allocation30_spill] sm:$0xff] %v3874_v57  ;;  %v1212_v60 = vadd.f32 %v1180_v58, %v1144_v2  ;;  %v775_v12 = vadd.f32 %v743_v42, %v609_v53  ;;  %v3895_v19 = vunpack.c.l.bf16 %v3879_v8  ;;  %v1699_v48 = vadd.f32 %v1667_v27, %v1631_v26  ;;  %v5466_v42 = vld [vmem:[#allocation66_spill] sm:$0xff] }
 0x112   : > { %5460 = vst [vmem:[#allocation80_spill] sm:$0xff] %v3890_v46  ;;  %v1616_v0 = vmul.f32 %v3085_v41, %v5462_v22  ;;  %v360_v39 = vmul.f32 %v5463_v62, %v2921_v35  ;;  %v428_v14 = vmul.f32 %v5464_v17, %v2924_v36  ;;  %v947_v53 = vmul.f32 %v2974_v51, %v3887_v24  ;;  %v5468_v17 = vld [vmem:[#allocation31_spill] sm:$0xff]  ;;  %v5469_v24 = vld [vmem:[#allocation33_spill] sm:$0xff] }
 0x113   : > { %v1280_v31 = vadd.f32 %v1248_v32, %v1212_v60  ;;  %v843_v43 = vadd.f32 %v811_v9, %v775_v12  ;;  %v496_v58 = vmul.f32 %v3677_v21, %v2927_v37  ;;  %1737 = vadd.xlane.f32.xlu0 %v1699_v48  ;;  %v3909_v27 = vsel %vm1048_vm2, %v1004_v54, %v1023_v1  ;;  %v5467_v21 = vld [vmem:[#allocation67_spill] sm:$0xff] }
 0x114   : > { %5465 = vst [vmem:[#allocation19_spill] sm:$0xff] %v3909_v27  ;;  %v1111_v2 = vmul.f32 %v3007_v18, %v5466_v42  ;;  %v460_v26 = vadd.f32 %v428_v14, %v360_v39  ;;  %v564_v62 = vmul.f32 %v3890_v46, %v2930_v38  ;;  %v646_v32 = vrot.slane %v3890_v46, 1 }
 0x115   : > { %v1348_v60 = vadd.f32 %v1316_v45, %v1280_v31  ;;  %v911_v12 = vadd.f32 %v879_v15, %v843_v43  ;;  %v665_v9 = vrot.slane %v3895_v19, 1  ;;  %v1684_v48 = vmul.f32 %v3092_v55, %v3874_v57 }
 0x116   : > { %v1179_v1 = vmul.f32 %v3023_v28, %v5467_v21  ;;  %v528_v54 = vadd.f32 %v496_v58, %v460_v26  ;;  %v730_v42 = vmul.f32 %v2965_v47, %v5422_v7  ;;  %v1247_v31 = vmul.f32 %v3026_v29, %v5468_v17 }
 0x117   : > { %v1512_v14 = vadd.f32 %v1480_v44, %v1348_v60  ;;  %v979_v39 = vadd.f32 %v947_v53, %v911_v12  ;;  %v1372_v43 = vrot.slane %v5456_v25, 3  ;;  %v1315_v45 = vmul.f32 %v3029_v34, %v3909_v27  ;;  %v5475_v12 = vld [vmem:[#allocation20_spill] sm:$0xff] }
 0x118   : > { %v1479_v15 = vmul.f32 %v3064_v59, %v3598_v6  ;;  %v596_v57 = vadd.f32 %v564_v62, %v528_v54  ;;  %v798_v58 = vmul.f32 %v2968_v49, %v5469_v24  ;;  %v1547_v7 = vmul.f32 %v3082_v20, %v3604_v3 }
 0x119   : > { %v1580_v26 = vadd.f32 %v1548_v13, %v1512_v14  ;;  %v1143_v21 = vadd.f32 %v1111_v2, %v979_v39  ;;  %v3936_v44 = vsel %vm680_vm1, %v646_v32, %v665_v9  ;;  %v866_v60 = vmul.f32 %v2971_v50, %v3714_v16 }
 0x11a   : > { %5470 = vst [vmem:[#allocation31_spill] sm:$0xff] %v3936_v44  ;;  %v762_v53 = vadd.f32 %v730_v42, %v596_v57  ;;  %v1035_v62 = vrot.slane %v3895_v19, 2  ;;  %v5471_v13 = vrot.slane %v3781_v11, 3  ;;  %v3948_v14 = vunpack.c.l.bf16 %v2296_v30  ;;  %v5474_v42 = vld [vmem:[#allocation18_spill] sm:$0xff] }
 0x11b   : > { %v1648_v54 = vadd.f32 %v1616_v0, %v1580_v26  ;;  %v1211_v6 = vadd.f32 %v1179_v1, %v1143_v21  ;;  %v934_v57 = vmul.f32 %v2974_v51, %v3936_v44  ;;  %v359_v39 = vmul.f32 %v5474_v42, %v2921_v35  ;;  %v5476_v1 = vld [vmem:[#allocation35_spill] sm:$0xff] }
 0x11c   : > { %v3946_v2 = vsel %vm1416_vm3, %v1372_v43, %v5471_v13  ;;  %5473 = vst [vmem:[#allocation81_spill] sm:$0xff] %v3948_v14  ;;  %v830_v9 = vadd.f32 %v798_v58, %v762_v53  ;;  %v427_v16 = vmul.f32 %v5475_v12, %v2924_v36  ;;  %v1098_v26 = vmul.f32 %v3007_v18, %v5476_v1  ;;  %v5480_v1 = vld [vmem:[#allocation36_spill] sm:$0xff] }
 0x11d   : > { %5472 = vst [vmem:[#allocation33_spill] sm:$0xff] %v3946_v2  ;;  %v1716_v0 = vadd.f32 %v1684_v48, %v1648_v54  ;;  %v1279_v21 = vadd.f32 %v1247_v31, %v1211_v6  ;;  %v495_v43 = vmul.f32 %v3590_v56, %v2927_v37  ;;  %v5477_v58 = vrot.slane %v3890_v46, 2  ;;  %v5479_v6 = vld [vmem:[#allocation32_spill] sm:$0xff] }
 0x11e   : > { %v898_v30 = vadd.f32 %v866_v60, %v830_v9  ;;  %v459_v13 = vadd.f32 %v427_v16, %v359_v39  ;;  %v563_v42 = vmul.f32 %v3948_v14, %v2930_v38  ;;  %v1615_v31 = vmul.f32 %v3085_v41, %v5479_v6  ;;  %v5481_v39 = vld [vmem:[#allocation23_spill] sm:$0xff] }
 0x11f   : > { %v3964_v53 = vsel %vm1048_vm2, %v5477_v58, %v1035_v62  ;;  %1771 = vadd.xlane.f32.xlu1 %v1716_v0  ;;  %v1347_v48 = vadd.f32 %v1315_v45, %v1279_v21  ;;  %v1683_v54 = vmul.f32 %v3092_v55, %v3946_v2  ;;  %v627_v60 = vrot.slane %v3948_v14, 1  ;;  %v5483_v21 = vld [vmem:[#allocation17_spill] sm:$0xff] }
 0x120   : > { %5478 = vst [vmem:[#allocation18_spill] sm:$0xff] %v3964_v53  ;;  %v966_v9 = vadd.f32 %v934_v57, %v898_v30  ;;  %v1166_v62 = vmul.f32 %v3023_v28, %v5480_v1  ;;  %v527_v16 = vadd.f32 %v495_v43, %v459_v13  ;;  %v729_v58 = vmul.f32 %v2965_v47, %v5481_v39  ;;  %v2308_v13 = vld [vmem:[%s2840_s21 + $0xa8] sm:$0xff]  }
 0x121   : > { %v1511_v0 = vadd.f32 %v1479_v15, %v1347_v48  ;;  %v3978_v45 = vunpack.c.h.bf16 %v3879_v8  ;;  %v1234_v56 = vmul.f32 %v3026_v29, %v5483_v21  ;;  %v1302_v12 = vmul.f32 %v3029_v34, %v3964_v53  ;;  %v5484_v48 = vld [vmem:[#allocation38_spill] sm:$0xff]  ;;  %v3996_v21 = vld [vmem:[%s2840_s21 + $0xb0] sm:$0xff]  }
 0x122   : > { %v1130_v2 = vadd.f32 %v1098_v26, %v966_v9  ;;  %v1384_v57 = vrot.slane %v3890_v46, 3  ;;  %v595_v30 = vadd.f32 %v563_v42, %v527_v16  ;;  %v797_v43 = vmul.f32 %v2968_v49, %v5438_v4  ;;  %5486 = vst [vmem:[#allocation38_spill] sm:$0xff] %v3996_v21  ;;  %v5487_v9 = vld [vmem:[#allocation39_spill] sm:$0xff]  ;;  %v5488_v53 = vld [vmem:[#allocation34_spill] sm:$0xff] }
 0x123   : > { %5482 = vst [vmem:[#allocation35_spill] sm:$0xff] %v3978_v45  ;;  %v1579_v1 = vadd.f32 %v1547_v7, %v1511_v0  ;;  %v1403_v15 = vrot.slane %v3895_v19, 3  ;;  %v1466_v8 = vmul.f32 %v3064_v59, %v5484_v48  ;;  %v3993_v39 = vsel %vm680_vm1, %v627_v60, %v646_v32  ;;  %v5489_v0 = vld [vmem:[#allocation37_spill] sm:$0xff] }
 0x124   : > { %5485 = vst [vmem:[#allocation23_spill] sm:$0xff] %v3993_v39  ;;  %v1198_v26 = vadd.f32 %v1166_v62, %v1130_v2  ;;  %v1534_v42 = vmul.f32 %v3082_v20, %v5487_v9  ;;  %v761_v16 = vadd.f32 %v729_v58, %v595_v30  ;;  %v865_v4 = vmul.f32 %v2971_v50, %v5488_v53  ;;  %v5491_v30 = vld [vmem:[#allocation43_spill] sm:$0xff] }
 0x125   : > { %v1647_v7 = vadd.f32 %v1615_v31, %v1579_v1  ;;  %v1602_v19 = vmul.f32 %v3085_v41, %v5489_v0  ;;  %v997_v48 = vrot.slane %v3948_v14, 2  ;;  %v4005_v45 = vunpack.c.h.bf16 %v2308_v13  ;;  %v5492_v31 = vld [vmem:[#allocation65_spill] sm:$0xff] }
 0x126   : > { %v1266_v32 = vadd.f32 %v1234_v56, %v1198_v26  ;;  %v829_v60 = vadd.f32 %v797_v43, %v761_v16  ;;  %v933_v2 = vmul.f32 %v2974_v51, %v3993_v39  ;;  %v4010_v62 = vunpack.c.l.bf16 %v3996_v21  ;;  %v5494_v26 = vld [vmem:[#allocation26_spill] sm:$0xff] }
 0x127   : > { %5490 = vst [vmem:[#allocation82_spill] sm:$0xff] %v4005_v45  ;;  %v1715_v58 = vadd.f32 %v1683_v54, %v1647_v7  ;;  %v376_v9 = vmul.f32 %v5491_v30, %v2921_v35  ;;  %v444_v1 = vmul.f32 %v5492_v31, %v2924_v36  ;;  %v512_v0 = vmul.f32 %v3781_v11, %v2927_v37  ;;  %v5497_v30 = vld [vmem:[#allocation27_spill] sm:$0xff] }
 0x128   : > { %v1334_v53 = vadd.f32 %v1302_v12, %v1266_v32  ;;  %v4020_v56 = vsel %vm1416_vm3, %v1384_v57, %v1403_v15  ;;  %v897_v43 = vadd.f32 %v865_v4, %v829_v60  ;;  %v1097_v16 = vmul.f32 %v3007_v18, %v5494_v26  ;;  %v5498_v26 = vld [vmem:[#allocation25_spill] sm:$0xff] }
 0x129   : > { %5493 = vst [vmem:[#allocation43_spill] sm:$0xff] %v4020_v56  ;;  %1769 = vadd.xlane.f32.xlu0 %v1715_v58  ;;  %v5495_v54 = vrot.slane %v3890_v46, 2  ;;  %v1165_v21 = vmul.f32 %v3023_v28, %v5497_v30  ;;  %v476_v11 = vadd.f32 %v444_v1, %v376_v9  ;;  %v580_v12 = vmul.f32 %v4005_v45, %v2930_v38 }
 0x12a   : > { %v1498_v15 = vadd.f32 %v1466_v8, %v1334_v53  ;;  %v965_v32 = vadd.f32 %v933_v2, %v897_v43  ;;  %v654_v4 = vrot.slane %v4005_v45, 1  ;;  %v673_v60 = vrot.slane %v4010_v62, 1  ;;  %v5499_v2 = vld [vmem:[#allocation29_spill] sm:$0xff] }
 0x12b   : > { %v4028_v7 = vsel %vm1048_vm2, %v997_v48, %v5495_v54  ;;  %v1670_v58 = vmul.f32 %v3092_v55, %v4020_v56  ;;  %v1233_v48 = vmul.f32 %v3026_v29, %v5498_v26  ;;  %v544_v54 = vadd.f32 %v512_v0, %v476_v11 }
 0x12c   : > { %5496 = vst [vmem:[#allocation26_spill] sm:$0xff] %v4028_v7  ;;  %v746_v30 = vmul.f32 %v2965_v47, %v5450_v63  ;;  %v1566_v9 = vadd.f32 %v1534_v42, %v1498_v15  ;;  %v1129_v1 = vadd.f32 %v1097_v16, %v965_v32  ;;  %v1301_v53 = vmul.f32 %v3029_v34, %v4028_v7 }
 0x12d   : > { %v1365_v8 = vrot.slane %v3948_v14, 3  ;;  %v1465_v43 = vmul.f32 %v3064_v59, %v5499_v2  ;;  %v612_v31 = vadd.f32 %v580_v12, %v544_v54  ;;  %v814_v56 = vmul.f32 %v2968_v49, %v5452_v40 }
 0x12e   : > { %v1634_v11 = vadd.f32 %v1602_v19, %v1566_v9  ;;  %v1197_v0 = vadd.f32 %v1165_v21, %v1129_v1  ;;  %v4052_v63 = vsel %vm680_vm1, %v654_v4, %v673_v60  ;;  %v1043_v42 = vrot.slane %v4010_v62, 2 }
 0x12f   : > { %5500 = vst [vmem:[#allocation29_spill] sm:$0xff] %v4052_v63  ;;  %v1533_v16 = vmul.f32 %v3082_v20, %v5451_v52  ;;  %v1601_v15 = vmul.f32 %v3085_v41, %v3838_v61  ;;  %v778_v12 = vadd.f32 %v746_v30, %v612_v31  ;;  %v882_v32 = vmul.f32 %v2971_v50, %v3830_v5  ;;  %v5503_v31 = vld [vmem:[#allocation73_spill] sm:$0xff] }
 0x130   : > { %v1702_v54 = vadd.f32 %v1670_v58, %v1634_v11  ;;  %v1265_v2 = vadd.f32 %v1233_v48, %v1197_v0  ;;  %v4063_v21 = vsel %vm1416_vm3, %v1365_v8, %v1384_v57  ;;  %v4065_v19 = vunpack.c.l.bf16 %v2308_v13  ;;  %v5506_v13 = vld [vmem:[#allocation51_spill] sm:$0xff]  ;;  %v2298_v61 = vld [vmem:[%s2840_s21 + $0x58] sm:$0xff]  }
 0x131   : > { %5501 = vst [vmem:[#allocation83_spill] sm:$0xff] %v4063_v21  ;;  %v846_v60 = vadd.f32 %v814_v56, %v778_v12  ;;  %v950_v9 = vmul.f32 %v2974_v51, %v4052_v63  ;;  %v375_v1 = vmul.f32 %v3447_v10, %v2921_v35  ;;  %v443_v30 = vmul.f32 %v5503_v31, %v2924_v36 }
 0x132   : > { %5502 = vst [vmem:[#allocation84_spill] sm:$0xff] %v4065_v19  ;;  %1743 = vadd.xlane.f32.xlu1 %v1702_v54  ;;  %v1333_v26 = vadd.f32 %v1301_v53, %v1265_v2  ;;  %v5504_v58 = vrot.slane %v4005_v45, 2  ;;  %v1114_v56 = vmul.f32 %v3007_v18, %v5506_v13  ;;  %v511_v48 = vmul.f32 %v5456_v25, %v2927_v37  ;;  %v5509_v25 = vld [vmem:[#allocation47_spill] sm:$0xff] }
 0x133   : > { %v914_v8 = vadd.f32 %v882_v32, %v846_v60  ;;  %v475_v10 = vadd.f32 %v443_v30, %v375_v1  ;;  %v579_v11 = vmul.f32 %v4065_v19, %v2930_v38  ;;  %v635_v53 = vrot.slane %v4065_v19, 1  ;;  %v5508_v60 = vld [vmem:[#allocation62_spill] sm:$0xff] }
 0x134   : > { %v4077_v57 = vsel %vm1048_vm2, %v5504_v58, %v1043_v42  ;;  %v1497_v0 = vadd.f32 %v1465_v43, %v1333_v26  ;;  %v1669_v12 = vmul.f32 %v3092_v55, %v4063_v21  ;;  %v1392_v42 = vrot.slane %v4005_v45, 3  ;;  %v5507_v58 = vld [vmem:[#allocation75_spill] sm:$0xff]  ;;  %v5510_v43 = vld [vmem:[#allocation60_spill] sm:$0xff] }
 0x135   : > { %5505 = vst [vmem:[#allocation85_spill] sm:$0xff] %v4077_v57  ;;  %v1411_v54 = vrot.slane %v4010_v62, 3  ;;  %v982_v2 = vadd.f32 %v950_v9, %v914_v8  ;;  %v1182_v13 = vmul.f32 %v3023_v28, %v5507_v58  ;;  %v543_v32 = vadd.f32 %v511_v48, %v475_v10 }
 0x136   : > { %v745_v1 = vmul.f32 %v2965_v47, %v5508_v60  ;;  %v1565_v30 = vadd.f32 %v1533_v16, %v1497_v0  ;;  %v1250_v31 = vmul.f32 %v3026_v29, %v5509_v25  ;;  %v1318_v26 = vmul.f32 %v3029_v34, %v4077_v57  ;;  %v5516_v57 = vld [vmem:[#allocation78_spill] sm:$0xff] }
 0x137   : > { %v1482_v21 = vmul.f32 %v3064_v59, %v5510_v43  ;;  %v1146_v62 = vadd.f32 %v1114_v56, %v982_v2  ;;  %v611_v9 = vadd.f32 %v579_v11, %v543_v32  ;;  %v4103_v8 = vsel %vm680_vm1, %v635_v53, %v654_v4  ;;  %v5513_v11 = vld [vmem:[#allocation72_spill] sm:$0xff] }
 0x138   : > { %5511 = vst [vmem:[#allocation51_spill] sm:$0xff] %v4103_v8  ;;  %v813_v48 = vmul.f32 %v2968_v49, %v5461_v33  ;;  %v1633_v16 = vadd.f32 %v1601_v15, %v1565_v30  ;;  %v4109_v10 = vsel %vm1416_vm3, %v1392_v42, %v1411_v54  ;;  %v1550_v0 = vmul.f32 %v3082_v20, %v5462_v22  ;;  %v5515_v54 = vld [vmem:[#allocation21_spill] sm:$0xff] }
 0x139   : > { %5512 = vst [vmem:[#allocation75_spill] sm:$0xff] %v4109_v10  ;;  %v1005_v60 = vrot.slane %v4065_v19, 2  ;;  %v1214_v43 = vadd.f32 %v1182_v13, %v1146_v62  ;;  %v777_v56 = vadd.f32 %v745_v1, %v611_v9  ;;  %v881_v2 = vmul.f32 %v2971_v50, %v5513_v11  ;;  %v5517_v62 = vld [vmem:[#allocation30_spill] sm:$0xff] }
 0x13a   : > { %v4116_v4 = vunpack.c.l.bf16 %v2298_v61  ;;  %v1701_v53 = vadd.f32 %v1669_v12, %v1633_v16  ;;  %v949_v15 = vmul.f32 %v2974_v51, %v4103_v8  ;;  %v4120_v32 = vunpack.c.h.bf16 %v2298_v61 }
 0x13b   : > { %v362_v30 = vmul.f32 %v5515_v54, %v2921_v35  ;;  %v1282_v33 = vadd.f32 %v1250_v31, %v1214_v43  ;;  %v845_v22 = vadd.f32 %v813_v48, %v777_v56  ;;  %v430_v13 = vmul.f32 %v5516_v57, %v2924_v36  ;;  %v5520_v31 = vld [vmem:[#allocation67_spill] sm:$0xff] }
 0x13c   : > { %5514 = vst [vmem:[#allocation62_spill] sm:$0xff] %v4116_v4  ;;  %v498_v1 = vmul.f32 %v3890_v46, %v2927_v37  ;;  %1741 = vadd.xlane.f32.xlu0 %v1701_v53  ;;  %v1618_v12 = vmul.f32 %v3085_v41, %v5517_v62  ;;  %v1686_v9 = vmul.f32 %v3092_v55, %v4109_v10  ;;  %v5518_v61 = vrot.slane %v4005_v45, 2 }
 0x13d   : > { %v1113_v48 = vmul.f32 %v3007_v18, %v5520_v31  ;;  %v1350_v43 = vadd.f32 %v1318_v26, %v1282_v33  ;;  %v913_v56 = vadd.f32 %v881_v2, %v845_v22  ;;  %v462_v54 = vadd.f32 %v430_v13, %v362_v30 }
 0x13e   : > { %v4136_v16 = vsel %vm1048_vm2, %v1005_v60, %v5518_v61  ;;  %v566_v53 = vmul.f32 %v4116_v4, %v2930_v38  ;;  %v1181_v62 = vmul.f32 %v3023_v28, %v5468_v17  ;;  %v1373_v10 = vrot.slane %v4065_v19, 3 }
 0x13f   : > { %5519 = vst [vmem:[#allocation47_spill] sm:$0xff] %v4136_v16  ;;  %v647_v46 = vrot.slane %v4116_v4, 1  ;;  %v666_v8 = vrot.slane %v4120_v32, 1  ;;  %v1514_v60 = vadd.f32 %v1482_v21, %v1350_v43  ;;  %v981_v61 = vadd.f32 %v949_v15, %v913_v56  ;;  %v5521_v15 = vld [vmem:[#allocation79_spill] sm:$0xff] }
 0x140   : > { %v530_v57 = vadd.f32 %v498_v1, %v462_v54  ;;  %v732_v33 = vmul.f32 %v2965_v47, %v5469_v24  ;;  %v1249_v22 = vmul.f32 %v3026_v29, %v3909_v27  ;;  %v1317_v26 = vmul.f32 %v3029_v34, %v4136_v16 }
 0x141   : > { %v1481_v2 = vmul.f32 %v3064_v59, %v3604_v3  ;;  %v1549_v30 = vmul.f32 %v3082_v20, %v5479_v6  ;;  %v1582_v13 = vadd.f32 %v1550_v0, %v1514_v60  ;;  %v1145_v31 = vadd.f32 %v1113_v48, %v981_v61  ;;  %v5526_v61 = vld [vmem:[#allocation70_spill] sm:$0xff] }
 0x142   : > { %v598_v21 = vadd.f32 %v566_v53, %v530_v57  ;;  %v800_v1 = vmul.f32 %v2968_v49, %v5521_v15  ;;  %v4161_v24 = vsel %vm1416_vm3, %v1373_v10, %v1392_v42  ;;  %v4165_v43 = vsel %vm680_vm1, %v647_v46, %v666_v8  ;;  %v5524_v53 = vld [vmem:[#allocation33_spill] sm:$0xff]  ;;  %v5525_v42 = vld [vmem:[#allocation20_spill] sm:$0xff] }
 0x143   : > { %5522 = vst [vmem:[#allocation60_spill] sm:$0xff] %v4161_v24  ;;  %5523 = vst [vmem:[#allocation21_spill] sm:$0xff] %v4165_v43  ;;  %v868_v3 = vmul.f32 %v2971_v50, %v3936_v44  ;;  %v1017_v56 = vrot.slane %v4116_v4, 2  ;;  %v1650_v54 = vadd.f32 %v1618_v12, %v1582_v13  ;;  %v1213_v0 = vadd.f32 %v1181_v62, %v1145_v31  ;;  %v5527_v13 = vld [vmem:[#allocation35_spill] sm:$0xff] }
 0x144   : > { %v764_v48 = vadd.f32 %v732_v33, %v598_v21  ;;  %v1036_v57 = vrot.slane %v4120_v32, 2  ;;  %v1617_v60 = vmul.f32 %v3085_v41, %v5524_v53  ;;  %v361_v10 = vmul.f32 %v5525_v42, %v2921_v35 }
 0x145   : > { %v429_v8 = vmul.f32 %v5526_v61, %v2924_v36  ;;  %v497_v6 = vmul.f32 %v3948_v14, %v2927_v37  ;;  %v1718_v44 = vadd.f32 %v1686_v9, %v1650_v54  ;;  %v1281_v16 = vadd.f32 %v1249_v22, %v1213_v0  ;;  %v5529_v22 = vld [vmem:[#allocation36_spill] sm:$0xff] }
 0x146   : > { %v832_v27 = vadd.f32 %v800_v1, %v764_v48  ;;  %v936_v62 = vmul.f32 %v2974_v51, %v4165_v43  ;;  %v1685_v12 = vmul.f32 %v3092_v55, %v4161_v24  ;;  %v565_v31 = vmul.f32 %v5527_v13, %v2930_v38 }
 0x147   : > { %v461_v33 = vadd.f32 %v429_v8, %v361_v10  ;;  %v628_v21 = vrot.slane %v5527_v13, 1  ;;  %1775 = vadd.xlane.f32.xlu1 %v1718_v44  ;;  %v1349_v42 = vadd.f32 %v1317_v26, %v1281_v16  ;;  %v4188_v9 = vsel %vm1048_vm2, %v1017_v56, %v1036_v57  ;;  %v5530_v10 = vld [vmem:[#allocation24_spill] sm:$0xff]  ;;  %v5531_v16 = vld [vmem:[#allocation17_spill] sm:$0xff]  ;;  %v5532_v26 = vld [vmem:[#allocation18_spill] sm:$0xff] }
 0x148   : > { %v900_v53 = vadd.f32 %v868_v3, %v832_v27  ;;  %5528 = vst [vmem:[#allocation67_spill] sm:$0xff] %v4188_v9  ;;  %v1100_v1 = vmul.f32 %v3007_v18, %v5529_v22  ;;  %v1385_v54 = vrot.slane %v4116_v4, 3  ;;  %v1404_v0 = vrot.slane %v4120_v32, 3 }
 0x149   : > { %v529_v48 = vadd.f32 %v497_v6, %v461_v33  ;;  %v731_v8 = vmul.f32 %v2965_v47, %v5530_v10  ;;  %v1513_v24 = vadd.f32 %v1481_v2, %v1349_v42  ;;  %v1168_v27 = vmul.f32 %v3023_v28, %v5531_v16  ;;  %v5534_v6 = vld [vmem:[#allocation34_spill] sm:$0xff]  ;;  %v5536_v10 = vld [vmem:[#allocation37_spill] sm:$0xff] }
 0x14a   : > { %v968_v44 = vadd.f32 %v936_v62, %v900_v53  ;;  %v1236_v3 = vmul.f32 %v3026_v29, %v5532_v26  ;;  %v1304_v57 = vmul.f32 %v3029_v34, %v4188_v9  ;;  %v4204_v43 = vsel %vm680_vm1, %v628_v21, %v647_v46  ;;  %v2310_v33 = vld [vmem:[%s2840_s21 + $0xb8] sm:$0xff]   ;;  %v5535_v62 = vld [vmem:[#allocation39_spill] sm:$0xff] }
 0x14b   : > { %v597_v22 = vadd.f32 %v565_v31, %v529_v48  ;;  %5533 = vst [vmem:[#allocation79_spill] sm:$0xff] %v4204_v43  ;;  %v799_v32 = vmul.f32 %v2968_v49, %v5534_v6  ;;  %v1581_v2 = vadd.f32 %v1549_v30, %v1513_v24  ;;  %v1468_v42 = vmul.f32 %v3064_v59, %v5535_v62  ;;  %v5539_v62 = vld [vmem:[#allocation65_spill] sm:$0xff]  ;;  %v5541_v6 = vld [vmem:[#allocation27_spill] sm:$0xff] }
 0x14c   : > { %v1132_v53 = vadd.f32 %v1100_v1, %v968_v44  ;;  %v1536_v26 = vmul.f32 %v3082_v20, %v5536_v10  ;;  %v4215_v9 = vsel %vm1416_vm3, %v1385_v54, %v1404_v0  ;;  %v867_v46 = vmul.f32 %v2971_v50, %v3993_v39 }
 0x14d   : > { %5537 = vst [vmem:[#allocation20_spill] sm:$0xff] %v4215_v9  ;;  %v763_v31 = vadd.f32 %v731_v8, %v597_v22  ;;  %v998_v21 = vrot.slane %v5527_v13, 2  ;;  %v1649_v48 = vadd.f32 %v1617_v60, %v1581_v2  ;;  %v935_v30 = vmul.f32 %v2974_v51, %v4204_v43  ;;  %v5540_v8 = vld [vmem:[#allocation22_spill] sm:$0xff] }
 0x14e   : > { %v1200_v16 = vadd.f32 %v1168_v27, %v1132_v53  ;;  %v4222_v24 = vunpack.c.l.bf16 %v2310_v33  ;;  %v4224_v44 = vunpack.c.h.bf16 %v2310_v33  ;;  %v378_v0 = vmul.f32 %v5539_v62, %v2921_v35  ;;  %v5542_v53 = vld [vmem:[#allocation25_spill] sm:$0xff] }
 0x14f   : > { %v831_v1 = vadd.f32 %v799_v32, %v763_v31  ;;  %v446_v22 = vmul.f32 %v5540_v8, %v2924_v36  ;;  %v1717_v10 = vadd.f32 %v1685_v12, %v1649_v48  ;;  %v1099_v60 = vmul.f32 %v3007_v18, %v5541_v6 }
 0x150   : > { %5538 = vst [vmem:[#allocation70_spill] sm:$0xff] %v4222_v24  ;;  %v1268_v39 = vadd.f32 %v1236_v3, %v1200_v16  ;;  %v514_v27 = vmul.f32 %v4005_v45, %v2927_v37  ;;  %v1167_v32 = vmul.f32 %v3023_v28, %v5542_v53  ;;  %v582_v31 = vmul.f32 %v4222_v24, %v2930_v38 }
 0x151   : > { %v899_v2 = vadd.f32 %v867_v46, %v831_v1  ;;  %v478_v33 = vadd.f32 %v446_v22, %v378_v0  ;;  %1773 = vadd.xlane.f32.xlu0 %v1717_v10  ;;  %v4240_v12 = vsel %vm1048_vm2, %v998_v21, %v1017_v56  ;;  %v655_v16 = vrot.slane %v4222_v24, 1  ;;  %v5544_v0 = vld [vmem:[#allocation38_spill] sm:$0xff] }
 0x152   : > { %v1336_v62 = vadd.f32 %v1304_v57, %v1268_v39  ;;  %5543 = vst [vmem:[#allocation36_spill] sm:$0xff] %v4240_v12  ;;  %v674_v3 = vrot.slane %v4224_v44, 1  ;;  %v1366_v46 = vrot.slane %v5527_v13, 3  ;;  %v748_v1 = vmul.f32 %v2965_v47, %v5452_v40  ;;  %v5545_v39 = vld [vmem:[#allocation43_spill] sm:$0xff] }
 0x153   : > { %v967_v6 = vadd.f32 %v935_v30, %v899_v2  ;;  %v546_v48 = vadd.f32 %v514_v27, %v478_v33  ;;  %v4248_v22 = vunpack.c.h.bf16 %v5544_v0  ;;  %v1604_v57 = vmul.f32 %v3085_v41, %v5545_v39 }
 0x154   : > { %v1500_v10 = vadd.f32 %v1468_v42, %v1336_v62  ;;  %v1672_v56 = vmul.f32 %v3092_v55, %v4215_v9  ;;  %v1235_v30 = vmul.f32 %v3026_v29, %v4028_v7  ;;  %v816_v27 = vmul.f32 %v2968_v49, %v3830_v5 }
 0x155   : > { %v1131_v21 = vadd.f32 %v1099_v60, %v967_v6  ;;  %v614_v2 = vadd.f32 %v582_v31, %v546_v48  ;;  %v1303_v40 = vmul.f32 %v3029_v34, %v4240_v12  ;;  %v1467_v42 = vmul.f32 %v3064_v59, %v5451_v52  ;;  %v5547_v48 = vld [vmem:[#allocation28_spill] sm:$0xff] }
 0x156   : > { %v1568_v33 = vadd.f32 %v1536_v26, %v1500_v10  ;;  %v4264_v62 = vsel %vm680_vm1, %v655_v16, %v674_v3  ;;  %v4268_v60 = vsel %vm1416_vm3, %v1366_v46, %v1385_v54  ;;  %v884_v6 = vmul.f32 %v2971_v50, %v4052_v63  ;;  %v5548_v54 = vld [vmem:[#allocation73_spill] sm:$0xff] }
 0x157   : > { %v1199_v0 = vadd.f32 %v1167_v32, %v1131_v21  ;;  %5546 = vst [vmem:[#allocation24_spill] sm:$0xff] %v4268_v60  ;;  %v780_v31 = vadd.f32 %v748_v1, %v614_v2  ;;  %v1535_v10 = vmul.f32 %v3082_v20, %v5547_v48  ;;  %v1025_v12 = vrot.slane %v4222_v24, 2  ;;  %v5549_v21 = vld [vmem:[#allocation83_spill] sm:$0xff] }
 0x158   : > { %v1636_v26 = vadd.f32 %v1604_v57, %v1568_v33  ;;  %v1044_v52 = vrot.slane %v4224_v44, 2  ;;  %v952_v32 = vmul.f32 %v2974_v51, %v4264_v62  ;;  %v377_v46 = vmul.f32 %v5548_v54, %v2921_v35  ;;  %v5550_v57 = vld [vmem:[#allocation74_spill] sm:$0xff] }
 0x159   : > { %v1267_v7 = vadd.f32 %v1235_v30, %v1199_v0  ;;  %v848_v3 = vadd.f32 %v816_v27, %v780_v31  ;;  %v1603_v2 = vmul.f32 %v3085_v41, %v5549_v21  ;;  %v445_v33 = vmul.f32 %v5550_v57, %v2924_v36 }
 0x15a   : > { %v1704_v1 = vadd.f32 %v1672_v56, %v1636_v26  ;;  %v513_v48 = vmul.f32 %v4065_v19, %v2927_v37  ;;  %v1116_v30 = vmul.f32 %v3007_v18, %v5507_v58  ;;  %v1184_v27 = vmul.f32 %v3023_v28, %v5509_v25  ;;  %v5552_v19 = vld [vmem:[#allocation77_spill] sm:$0xff] }
 0x15b   : > { %v1335_v63 = vadd.f32 %v1303_v40, %v1267_v7  ;;  %v916_v9 = vadd.f32 %v884_v6, %v848_v3  ;;  %v4292_v56 = vsel %vm1048_vm2, %v1025_v12, %v1044_v52  ;;  %v477_v0 = vadd.f32 %v445_v33, %v377_v46  ;;  %v5551_v3 = vld [vmem:[#allocation85_spill] sm:$0xff] }
 0x15c   : > { %1747 = vadd.xlane.f32.xlu1 %v1704_v1  ;;  %v581_v31 = vmul.f32 %v4248_v22, %v2930_v38  ;;  %v636_v26 = vrot.slane %v4248_v22, 1  ;;  %v1393_v40 = vrot.slane %v4222_v24, 3  ;;  %v1412_v58 = vrot.slane %v4224_v44, 3 }
 0x15d   : > { %v1499_v54 = vadd.f32 %v1467_v42, %v1335_v63  ;;  %v984_v7 = vadd.f32 %v952_v32, %v916_v9  ;;  %v1671_v6 = vmul.f32 %v3092_v55, %v4268_v60  ;;  %v1252_v1 = vmul.f32 %v3026_v29, %v5551_v3  ;;  %v5553_v9 = vld [vmem:[#allocation76_spill] sm:$0xff] }
 0x15e   : > { %v545_v52 = vadd.f32 %v513_v48, %v477_v0  ;;  %v747_v46 = vmul.f32 %v2965_v47, %v5552_v19  ;;  %v1320_v63 = vmul.f32 %v3029_v34, %v4292_v56  ;;  %v1484_v42 = vmul.f32 %v3064_v59, %v5553_v9 }
 0x15f   : > { %v1567_v33 = vadd.f32 %v1535_v10, %v1499_v54  ;;  %v1148_v57 = vadd.f32 %v1116_v30, %v984_v7  ;;  %v4311_v44 = vsel %vm680_vm1, %v636_v26, %v655_v16  ;;  %v815_v3 = vmul.f32 %v2968_v49, %v5513_v11  ;;  %v5556_v30 = vld [vmem:[#allocation78_spill] sm:$0xff]  ;;  %v5558_v16 = vld [vmem:[#allocation80_spill] sm:$0xff] }
 0x160   : > { %v613_v32 = vadd.f32 %v581_v31, %v545_v52  ;;  %5554 = vst [vmem:[#allocation39_spill] sm:$0xff] %v4311_v44  ;;  %v1006_v48 = vrot.slane %v4248_v22, 2  ;;  %v4318_v10 = vsel %vm1416_vm3, %v1393_v40, %v1412_v58  ;;  %v364_v54 = vmul.f32 %v5556_v30, %v2921_v35  ;;  %v5557_v31 = vld [vmem:[#allocation51_spill] sm:$0xff]  ;;  %v5561_v30 = vld [vmem:[#allocation40_spill] sm:$0xff] }
 0x161   : > { %v1635_v0 = vadd.f32 %v1603_v2, %v1567_v33  ;;  %v1216_v19 = vadd.f32 %v1184_v27, %v1148_v57  ;;  %5555 = vst [vmem:[#allocation65_spill] sm:$0xff] %v4318_v10  ;;  %v883_v52 = vmul.f32 %v2971_v50, %v5557_v31  ;;  %v432_v26 = vmul.f32 %v5558_v16, %v2924_v36  ;;  %v5559_v57 = vld [vmem:[#allocation30_spill] sm:$0xff] }
 0x162   : > { %v779_v7 = vadd.f32 %v747_v46, %v613_v32  ;;  %v500_v9 = vmul.f32 %v4116_v4, %v2927_v37  ;;  %v1552_v27 = vmul.f32 %v3082_v20, %v5559_v57  ;;  %v951_v58 = vmul.f32 %v2974_v51, %v4311_v44  ;;  %v5562_v4 = vld [vmem:[#allocation75_spill] sm:$0xff] }
 0x163   : > { %v1703_v11 = vadd.f32 %v1671_v6, %v1635_v0  ;;  %v1284_v2 = vadd.f32 %v1252_v1, %v1216_v19  ;;  %v4334_v46 = vsel %vm1048_vm2, %v1006_v48, %v1025_v12  ;;  %v464_v32 = vadd.f32 %v432_v26, %v364_v54 }
 0x164   : > { %v847_v33 = vadd.f32 %v815_v3, %v779_v7  ;;  %5560 = vst [vmem:[#allocation22_spill] sm:$0xff] %v4334_v46  ;;  %v568_v16 = vmul.f32 %v5561_v30, %v2930_v38  ;;  %v1620_v6 = vmul.f32 %v3085_v41, %v5562_v4  ;;  %v1688_v1 = vmul.f32 %v3092_v55, %v4318_v10  ;;  %v5563_v7 = vld [vmem:[#allocation19_spill] sm:$0xff]  ;;  %v5565_v30 = vld [vmem:[#allocation32_spill] sm:$0xff] }
 0x165   : > { %1745 = vadd.xlane.f32.xlu0 %v1703_v11  ;;  %v1352_v31 = vadd.f32 %v1320_v63, %v1284_v2  ;;  %v1115_v0 = vmul.f32 %v3007_v18, %v5468_v17  ;;  %v1374_v19 = vrot.slane %v4248_v22, 3  ;;  %v532_v12 = vadd.f32 %v500_v9, %v464_v32  ;;  %v5564_v63 = vld [vmem:[#allocation47_spill] sm:$0xff] }
 0x166   : > { %v915_v3 = vadd.f32 %v883_v52, %v847_v33  ;;  %v734_v48 = vmul.f32 %v2965_v47, %v5521_v15  ;;  %v1183_v11 = vmul.f32 %v3023_v28, %v5563_v7  ;;  %v1251_v26 = vmul.f32 %v3026_v29, %v5564_v63  ;;  %v5566_v33 = vld [vmem:[#allocation31_spill] sm:$0xff] }
 0x167   : > { %v1516_v54 = vadd.f32 %v1484_v42, %v1352_v31  ;;  %v1319_v2 = vmul.f32 %v3029_v34, %v4334_v46  ;;  %v1483_v17 = vmul.f32 %v3064_v59, %v5565_v30  ;;  %v600_v52 = vadd.f32 %v568_v16, %v532_v12  ;;  %v5568_v30 = vld [vmem:[#allocation21_spill] sm:$0xff] }
 0x168   : > { %v983_v10 = vadd.f32 %v951_v58, %v915_v3  ;;  %v802_v9 = vmul.f32 %v2968_v49, %v5566_v33  ;;  %v363_v15 = vmul.f32 %v5526_v61, %v2921_v35  ;;  %v431_v42 = vmul.f32 %v3948_v14, %v2924_v36  ;;  %v5569_v12 = vld [vmem:[#allocation33_spill] sm:$0xff] }
 0x169   : > { %v1584_v32 = vadd.f32 %v1552_v27, %v1516_v54  ;;  %v499_v31 = vmul.f32 %v5527_v13, %v2927_v37  ;;  %v4365_v58 = vsel %vm1416_vm3, %v1374_v19, %v1393_v40  ;;  %v766_v16 = vadd.f32 %v734_v48, %v600_v52  ;;  %v5570_v14 = vld [vmem:[#allocation53_spill] sm:$0xff]  ;;  %v5572_v40 = vld [vmem:[#allocation44_spill] sm:$0xff] }
 0x16a   : > { %v1147_v63 = vadd.f32 %v1115_v0, %v983_v10  ;;  %5567 = vst [vmem:[#allocation27_spill] sm:$0xff] %v4365_v58  ;;  %v870_v27 = vmul.f32 %v2971_v50, %v5568_v30  ;;  %v1551_v61 = vmul.f32 %v3082_v20, %v5569_v12  ;;  %v463_v54 = vadd.f32 %v431_v42, %v363_v15  ;;  %v5571_v10 = vld [vmem:[#allocation60_spill] sm:$0xff]  ;;  %v4382_v15 = vld [vmem:[%s2840_s21 + $0xc0] sm:$0xff]  }
 0x16b   : > { %v1652_v3 = vadd.f32 %v1620_v6, %v1584_v32  ;;  %v567_v46 = vmul.f32 %v5570_v14, %v2930_v38  ;;  %v1619_v0 = vmul.f32 %v3085_v41, %v5571_v10  ;;  %v834_v33 = vadd.f32 %v802_v9, %v766_v16  ;;  %v5573_v32 = vld [vmem:[#allocation34_spill] sm:$0xff]  ;;  %v4385_v42 = vld [vmem:[%s2840_s21 + $0xc8] sm:$0xff]   ;;  %v5574_v14 = vld [vmem:[#allocation17_spill] sm:$0xff] }
 0x16c   : > { %v1215_v13 = vadd.f32 %v1183_v11, %v1147_v63  ;;  %v938_v19 = vmul.f32 %v2974_v51, %v5572_v40  ;;  %v1687_v52 = vmul.f32 %v3092_v55, %v4365_v58  ;;  %v531_v6 = vadd.f32 %v499_v31, %v463_v54  ;;  %v5575_v16 = vld [vmem:[#allocation18_spill] sm:$0xff]  ;;  %v5577_v31 = vld [vmem:[#allocation48_spill] sm:$0xff]  ;;  %v5578_v58 = vld [vmem:[#allocation23_spill] sm:$0xff] }
 0x16d   : > { %v1720_v48 = vadd.f32 %v1688_v1, %v1652_v3  ;;  %v733_v30 = vmul.f32 %v2965_v47, %v5573_v32  ;;  %v902_v63 = vadd.f32 %v870_v27, %v834_v33  ;;  %v1102_v9 = vmul.f32 %v3007_v18, %v5574_v14  ;;  %v5576_v1 = vld [vmem:[#allocation67_spill] sm:$0xff] }
 0x16e   : > { %v1283_v11 = vadd.f32 %v1251_v26, %v1215_v13  ;;  %v1170_v10 = vmul.f32 %v3023_v28, %v5575_v16  ;;  %v1238_v3 = vmul.f32 %v3026_v29, %v5576_v1  ;;  %v1306_v54 = vmul.f32 %v3029_v34, %v5577_v31  ;;  %v5581_v1 = vld [vmem:[#allocation58_spill] sm:$0xff] }
 0x16f   : > { %1779 = vadd.xlane.f32.xlu1 %v1720_v48  ;;  %v599_v32 = vadd.f32 %v567_v46, %v531_v6  ;;  %v801_v40 = vmul.f32 %v2968_v49, %v5578_v58  ;;  %v970_v13 = vadd.f32 %v938_v19, %v902_v63  ;;  %v4398_v26 = vunpack.c.h.bf16 %v4382_v15 }
 0x170   : > { %v1351_v12 = vadd.f32 %v1319_v2, %v1283_v11  ;;  %v4401_v14 = vunpack.c.l.bf16 %v4385_v42  ;;  %v869_v27 = vmul.f32 %v2971_v50, %v4204_v43  ;;  %v380_v48 = vmul.f32 %v5540_v8, %v2921_v35  ;;  %v5580_v2 = vld [vmem:[#allocation37_spill] sm:$0xff] }
 0x171   : > { %5579 = vst [vmem:[#allocation25_spill] sm:$0xff] %v4398_v26  ;;  %v765_v33 = vadd.f32 %v733_v30, %v599_v32  ;;  %v448_v46 = vmul.f32 %v4005_v45, %v2924_v36  ;;  %v1134_v31 = vadd.f32 %v1102_v9, %v970_v13  ;;  %v1470_v19 = vmul.f32 %v3064_v59, %v5580_v2  ;;  %v5585_v45 = vld [vmem:[#allocation54_spill] sm:$0xff] }
 0x172   : > { %v1515_v6 = vadd.f32 %v1483_v17, %v1351_v12  ;;  %v516_v11 = vmul.f32 %v4222_v24, %v2927_v37  ;;  %v937_v30 = vmul.f32 %v2974_v51, %v5581_v1  ;;  %v584_v43 = vmul.f32 %v4398_v26, %v2930_v38 }
 0x173   : > { %v833_v63 = vadd.f32 %v801_v40, %v765_v33  ;;  %v480_v32 = vadd.f32 %v448_v46, %v380_v48  ;;  %v1202_v58 = vadd.f32 %v1170_v10, %v1134_v31  ;;  %v675_v17 = vrot.slane %v4401_v14, 1  ;;  %v5582_v46 = vld [vmem:[#allocation20_spill] sm:$0xff]  ;;  %v5583_v31 = vld [vmem:[#allocation26_spill] sm:$0xff] }
 0x174   : > { %v1583_v8 = vadd.f32 %v1551_v61, %v1515_v6  ;;  %v1101_v9 = vmul.f32 %v3007_v18, %v5542_v53  ;;  %v750_v40 = vmul.f32 %v2965_v47, %v3830_v5  ;;  %v1538_v48 = vmul.f32 %v3082_v20, %v5545_v39 }
 0x175   : > { %v901_v12 = vadd.f32 %v869_v27, %v833_v63  ;;  %v548_v13 = vadd.f32 %v516_v11, %v480_v32  ;;  %v1270_v2 = vadd.f32 %v1238_v3, %v1202_v58  ;;  %v1606_v61 = vmul.f32 %v3085_v41, %v5582_v46  ;;  %v5584_v63 = vld [vmem:[#allocation29_spill] sm:$0xff] }
 0x176   : > { %v1651_v33 = vadd.f32 %v1619_v0, %v1583_v8  ;;  %v1169_v6 = vmul.f32 %v3023_v28, %v5583_v31  ;;  %v818_v53 = vmul.f32 %v2968_v49, %v5584_v63  ;;  %v1674_v5 = vmul.f32 %v3092_v55, %v5585_v45 }
 0x177   : > { %v969_v10 = vadd.f32 %v937_v30, %v901_v12  ;;  %v616_v27 = vadd.f32 %v584_v43, %v548_v13  ;;  %v1338_v32 = vadd.f32 %v1306_v54, %v1270_v2  ;;  %v5586_v58 = vrot.slane %v4398_v26, 1  ;;  %v5588_v30 = vld [vmem:[#allocation36_spill] sm:$0xff]  ;;  %v5589_v54 = vld [vmem:[#allocation63_spill] sm:$0xff] }
 0x178   : > { %v1719_v11 = vadd.f32 %v1687_v52, %v1651_v33  ;;  %v1237_v8 = vmul.f32 %v3026_v29, %v5588_v30  ;;  %v886_v43 = vmul.f32 %v2971_v50, %v4264_v62  ;;  %v1305_v13 = vmul.f32 %v3029_v34, %v5589_v54  ;;  %v5590_v33 = vld [vmem:[#allocation28_spill] sm:$0xff] }
 0x179   : > { %v4437_v0 = vsel %vm680_vm1, %v5586_v58, %v675_v17  ;;  %v1133_v3 = vadd.f32 %v1101_v9, %v969_v10  ;;  %v782_v12 = vadd.f32 %v750_v40, %v616_v27  ;;  %v1502_v52 = vadd.f32 %v1470_v19, %v1338_v32 }
 0x17a   : > { %5587 = vst [vmem:[#allocation38_spill] sm:$0xff] %v4437_v0  ;;  %1777 = vadd.xlane.f32.xlu0 %v1719_v11  ;;  %v1469_v2 = vmul.f32 %v3064_v59, %v5590_v33  ;;  %v1026_v45 = vrot.slane %v4398_v26, 2  ;;  %v954_v9 = vmul.f32 %v2974_v51, %v4437_v0  ;;  %v1045_v40 = vrot.slane %v4401_v14, 2  ;;  %v5592_v0 = vld [vmem:[#allocation85_spill] sm:$0xff] }
 0x17b   : > { %v1201_v17 = vadd.f32 %v1169_v6, %v1133_v3  ;;  %v850_v58 = vadd.f32 %v818_v53, %v782_v12  ;;  %v1570_v10 = vadd.f32 %v1538_v48, %v1502_v52  ;;  %v1537_v27 = vmul.f32 %v3082_v20, %v5549_v21  ;;  %v5591_v53 = vld [vmem:[#allocation74_spill] sm:$0xff]  ;;  %v5593_v52 = vld [vmem:[#allocation84_spill] sm:$0xff] }
 0x17c   : > { %v1605_v19 = vmul.f32 %v3085_v41, %v4268_v60  ;;  %v4456_v11 = vunpack.c.l.bf16 %v4382_v15  ;;  %v1118_v6 = vmul.f32 %v3007_v18, %v5509_v25  ;;  %v379_v3 = vmul.f32 %v5591_v53, %v2921_v35 }
 0x17d   : > { %v1269_v32 = vadd.f32 %v1237_v8, %v1201_v17  ;;  %v918_v33 = vadd.f32 %v886_v43, %v850_v58  ;;  %v1638_v12 = vadd.f32 %v1606_v61, %v1570_v10  ;;  %v1186_v48 = vmul.f32 %v3023_v28, %v5592_v0 }
 0x17e   : > { %v447_v21 = vmul.f32 %v5593_v52, %v2924_v36  ;;  %v515_v60 = vmul.f32 %v4248_v22, %v2927_v37  ;;  %v4470_v8 = vsel %vm1048_vm2, %v1026_v45, %v1045_v40  ;;  %v1254_v25 = vmul.f32 %v3026_v29, %v4292_v56 }
 0x17f   : > { %v1337_v15 = vadd.f32 %v1305_v13, %v1269_v32  ;;  %v986_v54 = vadd.f32 %v954_v9, %v918_v33  ;;  %5594 = vst [vmem:[#allocation43_spill] sm:$0xff] %v4470_v8  ;;  %v1706_v43 = vadd.f32 %v1674_v5, %v1638_v12  ;;  %v583_v17 = vmul.f32 %v4456_v11, %v2930_v38  ;;  %v5595_v9 = vld [vmem:[#allocation68_spill] sm:$0xff] }
 0x180   : > { %v479_v61 = vadd.f32 %v447_v21, %v379_v3  ;;  %v637_v58 = vrot.slane %v4456_v11, 1  ;;  %v1394_v0 = vrot.slane %v4398_v26, 3  ;;  %v1413_v13 = vrot.slane %v4401_v14, 3  ;;  %v5596_v21 = vld [vmem:[#allocation72_spill] sm:$0xff] }
 0x181   : > { %v1501_v10 = vadd.f32 %v1469_v2, %v1337_v15  ;;  %v1150_v53 = vadd.f32 %v1118_v6, %v986_v54  ;;  %1751 = vadd.xlane.f32.xlu1 %v1706_v43  ;;  %v1673_v40 = vmul.f32 %v3092_v55, %v5595_v9  ;;  %v4482_v32 = vunpack.c.h.bf16 %v4385_v42  ;;  %v5599_v42 = vld [vmem:[#allocation51_spill] sm:$0xff] }
 0x182   : > { %v547_v5 = vadd.f32 %v515_v60, %v479_v61  ;;  %v749_v33 = vmul.f32 %v2965_v47, %v5596_v21  ;;  %v1322_v54 = vmul.f32 %v3029_v34, %v4470_v8  ;;  %v1486_v2 = vmul.f32 %v3064_v59, %v5559_v57 }
 0x183   : > { %v1569_v3 = vadd.f32 %v1537_v27, %v1501_v10  ;;  %v1218_v12 = vadd.f32 %v1186_v48, %v1150_v53  ;;  %v5597_v6 = vrot.slane %v4398_v26, 1  ;;  %v817_v60 = vmul.f32 %v2968_v49, %v5599_v42 }
 0x184   : > { %v615_v14 = vadd.f32 %v583_v17, %v547_v5  ;;  %v1007_v43 = vrot.slane %v4456_v11, 2  ;;  %v4501_v61 = vsel %vm1416_vm3, %v1394_v0, %v1413_v13  ;;  %v1554_v57 = vmul.f32 %v3082_v20, %v5562_v4  ;;  %v5602_v5 = vld [vmem:[#allocation62_spill] sm:$0xff]  ;;  %v5603_v13 = vld [vmem:[#allocation40_spill] sm:$0xff]  ;;  %v5605_v4 = vld [vmem:[#allocation41_spill] sm:$0xff] }
 0x185   : > { %v4494_v15 = vsel %vm680_vm1, %v637_v58, %v5597_v6  ;;  %v1637_v27 = vadd.f32 %v1605_v19, %v1569_v3  ;;  %v1286_v48 = vadd.f32 %v1254_v25, %v1218_v12  ;;  %5600 = vst [vmem:[#allocation77_spill] sm:$0xff] %v4501_v61  ;;  %v885_v10 = vmul.f32 %v2971_v50, %v4311_v44  ;;  %v5601_v58 = vld [vmem:[#allocation80_spill] sm:$0xff] }
 0x186   : > { %5598 = vst [vmem:[#allocation73_spill] sm:$0xff] %v4494_v15  ;;  %v781_v17 = vadd.f32 %v749_v33, %v615_v14  ;;  %v366_v53 = vmul.f32 %v5601_v58, %v2921_v35  ;;  %v434_v21 = vmul.f32 %v5602_v5, %v2924_v36  ;;  %v953_v25 = vmul.f32 %v2974_v51, %v4494_v15  ;;  %v5606_v5 = vld [vmem:[#allocation65_spill] sm:$0xff]  ;;  %v5619_v15 = vld [vmem:[#allocation27_spill] sm:$0xff] }
 0x187   : > { %v1705_v6 = vadd.f32 %v1673_v40, %v1637_v27  ;;  %v1354_v19 = vadd.f32 %v1322_v54, %v1286_v48  ;;  %v502_v3 = vmul.f32 %v5603_v13, %v2927_v37  ;;  %v4517_v33 = vsel %vm1048_vm2, %v1007_v43, %v1026_v45  ;;  %v5607_v43 = vld [vmem:[#allocation31_spill] sm:$0xff]  ;;  %v5610_v13 = vld [vmem:[#allocation33_spill] sm:$0xff] }
 0x188   : > { %v849_v12 = vadd.f32 %v817_v60, %v781_v17  ;;  %5604 = vst [vmem:[#allocation76_spill] sm:$0xff] %v4517_v33  ;;  %v466_v14 = vadd.f32 %v434_v21, %v366_v53  ;;  %v570_v58 = vmul.f32 %v5605_v4, %v2930_v38  ;;  %v1622_v40 = vmul.f32 %v3085_v41, %v5606_v5  ;;  %v5608_v21 = vld [vmem:[#allocation47_spill] sm:$0xff] }
 0x189   : > { %1749 = vadd.xlane.f32.xlu0 %v1705_v6  ;;  %v1518_v44 = vadd.f32 %v1486_v2, %v1354_v19  ;;  %v1690_v54 = vmul.f32 %v3092_v55, %v4501_v61  ;;  %v1375_v27 = vrot.slane %v4456_v11, 3  ;;  %v1117_v60 = vmul.f32 %v3007_v18, %v5563_v7  ;;  %v5609_v6 = vld [vmem:[#allocation22_spill] sm:$0xff]  ;;  %v5611_v7 = vld [vmem:[#allocation21_spill] sm:$0xff] }
 0x18a   : > { %v917_v48 = vadd.f32 %v885_v10, %v849_v12  ;;  %v534_v45 = vadd.f32 %v502_v3, %v466_v14  ;;  %v736_v17 = vmul.f32 %v2965_v47, %v5607_v43  ;;  %v1185_v2 = vmul.f32 %v3023_v28, %v5608_v21 }
 0x18b   : > { %v1586_v53 = vadd.f32 %v1554_v57, %v1518_v44  ;;  %v1253_v19 = vmul.f32 %v3026_v29, %v5609_v6  ;;  %v1321_v61 = vmul.f32 %v3029_v34, %v4517_v33  ;;  %v1485_v10 = vmul.f32 %v3064_v59, %v5610_v13  ;;  %v5613_v57 = vld [vmem:[#allocation81_spill] sm:$0xff]  ;;  %v5614_v6 = vld [vmem:[#allocation35_spill] sm:$0xff] }
 0x18c   : > { %v985_v4 = vadd.f32 %v953_v25, %v917_v48  ;;  %v602_v12 = vadd.f32 %v570_v58, %v534_v45  ;;  %v804_v3 = vmul.f32 %v2968_v49, %v5611_v7  ;;  %v4542_v44 = vsel %vm1416_vm3, %v1375_v27, %v1394_v0  ;;  %v5615_v48 = vld [vmem:[#allocation44_spill] sm:$0xff]  ;;  %v5616_v58 = vld [vmem:[#allocation53_spill] sm:$0xff] }
 0x18d   : > { %v1654_v14 = vadd.f32 %v1622_v40, %v1586_v53  ;;  %5612 = vst [vmem:[#allocation78_spill] sm:$0xff] %v4542_v44  ;;  %v365_v43 = vmul.f32 %v5613_v57, %v2921_v35  ;;  %v433_v21 = vmul.f32 %v5614_v6, %v2924_v36  ;;  %v872_v13 = vmul.f32 %v2971_v50, %v5615_v48  ;;  %v5617_v53 = vld [vmem:[#allocation60_spill] sm:$0xff]  ;;  %v5625_v6 = vld [vmem:[#allocation79_spill] sm:$0xff] }
 0x18e   : > { %v1149_v33 = vadd.f32 %v1117_v60, %v985_v4  ;;  %v768_v25 = vadd.f32 %v736_v17, %v602_v12  ;;  %v501_v45 = vmul.f32 %v5616_v58, %v2927_v37  ;;  %v1553_v0 = vmul.f32 %v3082_v20, %v5617_v53  ;;  %v5618_v7 = vld [vmem:[#allocation52_spill] sm:$0xff]  ;;  %v5620_v17 = vld [vmem:[#allocation45_spill] sm:$0xff] }
 0x18f   : > { %v1722_v40 = vadd.f32 %v1690_v54, %v1654_v14  ;;  %v465_v27 = vadd.f32 %v433_v21, %v365_v43  ;;  %v569_v57 = vmul.f32 %v5618_v7, %v2930_v38  ;;  %v1621_v4 = vmul.f32 %v3085_v41, %v5619_v15  ;;  %v5621_v21 = vld [vmem:[#allocation23_spill] sm:$0xff]  ;;  %v2313_v53 = vld [vmem:[%s2840_s21 + $0xd0] sm:$0xff]  }
 0x190   : > { %v1217_v5 = vadd.f32 %v1185_v2, %v1149_v33  ;;  %v836_v60 = vadd.f32 %v804_v3, %v768_v25  ;;  %v940_v12 = vmul.f32 %v2974_v51, %v5620_v17  ;;  %v1689_v58 = vmul.f32 %v3092_v55, %v4542_v44  ;;  %v5622_v7 = vld [vmem:[#allocation67_spill] sm:$0xff]  ;;  %v5623_v25 = vld [vmem:[#allocation48_spill] sm:$0xff] }
 0x191   : > { %1783 = vadd.xlane.f32.xlu1 %v1722_v40  ;;  %v1104_v54 = vmul.f32 %v3007_v18, %v5575_v16  ;;  %v533_v14 = vadd.f32 %v501_v45, %v465_v27  ;;  %v735_v43 = vmul.f32 %v2965_v47, %v5621_v21  ;;  %v1172_v3 = vmul.f32 %v3023_v28, %v5622_v7  ;;  %v5624_v40 = vld [vmem:[#allocation49_spill] sm:$0xff] }
 0x192   : > { %v1285_v33 = vadd.f32 %v1253_v19, %v1217_v5  ;;  %v904_v2 = vadd.f32 %v872_v13, %v836_v60  ;;  %v1240_v15 = vmul.f32 %v3026_v29, %v5623_v25  ;;  %v1308_v17 = vmul.f32 %v3029_v34, %v5624_v40  ;;  %v5626_v60 = vld [vmem:[#allocation82_spill] sm:$0xff] }
 0x193   : > { %v601_v44 = vadd.f32 %v569_v57, %v533_v14  ;;  %v803_v16 = vmul.f32 %v2968_v49, %v5625_v6  ;;  %v871_v45 = vmul.f32 %v2971_v50, %v5581_v1  ;;  %v4577_v5 = vunpack.c.l.bf16 %v2313_v53 }
 0x194   : > { %v1353_v27 = vadd.f32 %v1321_v61, %v1285_v33  ;;  %v972_v21 = vadd.f32 %v940_v12, %v904_v2  ;;  %v4579_v19 = vunpack.c.h.bf16 %v2313_v53  ;;  %v382_v25 = vmul.f32 %v5626_v60, %v2921_v35  ;;  %v5627_v33 = vld [vmem:[#allocation59_spill] sm:$0xff] }
 0x195   : > { %v767_v13 = vadd.f32 %v735_v43, %v601_v44  ;;  %v450_v40 = vmul.f32 %v4222_v24, %v2924_v36  ;;  %v518_v57 = vmul.f32 %v4398_v26, %v2927_v37  ;;  %v1472_v61 = vmul.f32 %v3064_v59, %v5545_v39 }
 0x196   : > { %v1517_v14 = vadd.f32 %v1485_v10, %v1353_v27  ;;  %v1136_v7 = vadd.f32 %v1104_v54, %v972_v21  ;;  %v1540_v12 = vmul.f32 %v3082_v20, %v5582_v46  ;;  %v939_v44 = vmul.f32 %v2974_v51, %v5627_v33  ;;  %v5629_v46 = vld [vmem:[#allocation56_spill] sm:$0xff] }
 0x197   : > { %v835_v53 = vadd.f32 %v803_v16, %v767_v13  ;;  %v482_v43 = vadd.f32 %v450_v40, %v382_v25  ;;  %v586_v2 = vmul.f32 %v4577_v5, %v2930_v38  ;;  %v5301_v26 = vrot.slane %v4577_v5, 1  ;;  %v5628_v25 = vld [vmem:[#allocation54_spill] sm:$0xff] }
 0x198   : > { %v1585_v60 = vadd.f32 %v1553_v0, %v1517_v14  ;;  %v1204_v24 = vadd.f32 %v1172_v3, %v1136_v7  ;;  %v676_v10 = vrot.slane %v4579_v19, 1  ;;  %v1103_v39 = vmul.f32 %v3007_v18, %v5583_v31 }
 0x199   : > { %v903_v54 = vadd.f32 %v871_v45, %v835_v53  ;;  %v550_v27 = vadd.f32 %v518_v57, %v482_v43  ;;  %v752_v16 = vmul.f32 %v2965_v47, %v5584_v63  ;;  %v1608_v40 = vmul.f32 %v3085_v41, %v5628_v25  ;;  %v5630_v53 = vld [vmem:[#allocation63_spill] sm:$0xff] }
 0x19a   : > { %v1653_v21 = vadd.f32 %v1621_v4, %v1585_v60  ;;  %v1272_v13 = vadd.f32 %v1240_v15, %v1204_v24  ;;  %v1676_v7 = vmul.f32 %v3092_v55, %v5629_v46  ;;  %v1171_v3 = vmul.f32 %v3023_v28, %v5588_v30  ;;  %v5631_v4 = vld [vmem:[#allocation64_spill] sm:$0xff] }
 0x19b   : > { %v971_v0 = vadd.f32 %v939_v44, %v903_v54  ;;  %v618_v45 = vadd.f32 %v586_v2, %v550_v27  ;;  %v820_v31 = vmul.f32 %v2968_v49, %v4264_v62  ;;  %v1239_v63 = vmul.f32 %v3026_v29, %v5630_v53  ;;  %v5632_v2 = vld [vmem:[#allocation38_spill] sm:$0xff]  ;;  %v5634_v27 = vld [vmem:[#allocation24_spill] sm:$0xff] }
 0x19c   : > { %v1721_v57 = vadd.f32 %v1689_v58, %v1653_v21  ;;  %v1340_v14 = vadd.f32 %v1308_v17, %v1272_v13  ;;  %v4615_v24 = vsel %vm680_vm1, %v5301_v26, %v676_v10  ;;  %v1307_v44 = vmul.f32 %v3029_v34, %v5631_v4  ;;  %v5633_v17 = vld [vmem:[#allocation83_spill] sm:$0xff] }
 0x19d   : > { %v1135_v15 = vadd.f32 %v1103_v39, %v971_v0  ;;  %v784_v43 = vadd.f32 %v752_v16, %v618_v45  ;;  %v888_v60 = vmul.f32 %v2971_v50, %v5632_v2  ;;  %v1471_v54 = vmul.f32 %v3064_v59, %v5633_v17 }
 0x19e   : > { %1781 = vadd.xlane.f32.xlu0 %v1721_v57  ;;  %v1504_v58 = vadd.f32 %v1472_v61, %v1340_v14  ;;  %v1539_v21 = vmul.f32 %v3082_v20, %v5634_v27  ;;  %v1607_v10 = vmul.f32 %v3085_v41, %v5595_v9  ;;  %v956_v0 = vmul.f32 %v2974_v51, %v4615_v24  ;;  %v5635_v27 = vld [vmem:[#allocation85_spill] sm:$0xff] }
 0x19f   : > { %v1203_v13 = vadd.f32 %v1171_v3, %v1135_v15  ;;  %v852_v39 = vadd.f32 %v820_v31, %v784_v43  ;;  %v1027_v16 = vrot.slane %v4577_v5, 2  ;;  %v1046_v57 = vrot.slane %v4579_v19, 2 }
 0x1a0   : > { %v1572_v45 = vadd.f32 %v1540_v12, %v1504_v58  ;;  %v381_v61 = vmul.f32 %v5593_v52, %v2921_v35  ;;  %v449_v14 = vmul.f32 %v4248_v22, %v2924_v36  ;;  %v1120_v3 = vmul.f32 %v3007_v18, %v5635_v27 }
 0x1a1   : > { %v1271_v17 = vadd.f32 %v1239_v63, %v1203_v13  ;;  %v920_v26 = vadd.f32 %v888_v60, %v852_v39  ;;  %v517_v31 = vmul.f32 %v4456_v11, %v2927_v37  ;;  %v1188_v12 = vmul.f32 %v3023_v28, %v4292_v56 }
 0x1a2   : > { %v1640_v15 = vadd.f32 %v1608_v40, %v1572_v45  ;;  %v481_v43 = vadd.f32 %v449_v14, %v381_v61  ;;  %v585_v58 = vmul.f32 %v4482_v32, %v2930_v38  ;;  %v1256_v63 = vmul.f32 %v3026_v29, %v4470_v8 }
 0x1a3   : > { %v1339_v52 = vadd.f32 %v1307_v44, %v1271_v17  ;;  %v988_v9 = vadd.f32 %v956_v0, %v920_v26  ;;  %v638_v60 = vrot.slane %v4482_v32, 1  ;;  %v4648_v27 = vsel %vm1048_vm2, %v1027_v16, %v1046_v57  ;;  %v5637_v44 = vld [vmem:[#allocation69_spill] sm:$0xff] }
 0x1a4   : > { %v1708_v13 = vadd.f32 %v1676_v7, %v1640_v15  ;;  %5636 = vst [vmem:[#allocation30_spill] sm:$0xff] %v4648_v27  ;;  %v549_v40 = vadd.f32 %v517_v31, %v481_v43  ;;  %v751_v39 = vmul.f32 %v2965_v47, %v5599_v42  ;;  %v5304_v14 = vrot.slane %v4577_v5, 3  ;;  %v5638_v7 = vld [vmem:[#allocation39_spill] sm:$0xff]  ;;  %v5642_v43 = vld [vmem:[#allocation73_spill] sm:$0xff] }
 0x1a5   : > { %v1503_v45 = vadd.f32 %v1471_v54, %v1339_v52  ;;  %v1152_v61 = vadd.f32 %v1120_v3, %v988_v9  ;;  %v1414_v26 = vrot.slane %v4579_v19, 3  ;;  %v1675_v0 = vmul.f32 %v3092_v55, %v5637_v44  ;;  %v5641_v19 = vld [vmem:[#allocation75_spill] sm:$0xff] }
 0x1a6   : > { %1755 = vadd.xlane.f32.xlu1 %v1708_v13  ;;  %v617_v17 = vadd.f32 %v585_v58, %v549_v40  ;;  %v819_v15 = vmul.f32 %v2968_v49, %v5638_v7  ;;  %v1324_v31 = vmul.f32 %v3029_v34, %v4648_v27  ;;  %v5639_v42 = vrot.slane %v4577_v5, 1  ;;  %v5651_v27 = vld [vmem:[#allocation21_spill] sm:$0xff] }
 0x1a7   : > { %v1571_v57 = vadd.f32 %v1539_v21, %v1503_v45  ;;  %v1220_v8 = vadd.f32 %v1188_v12, %v1152_v61  ;;  %v1488_v54 = vmul.f32 %v3064_v59, %v5641_v19  ;;  %v887_v58 = vmul.f32 %v2971_v50, %v5642_v43  ;;  %v5643_v12 = vld [vmem:[#allocation65_spill] sm:$0xff] }
 0x1a8   : > { %v4664_v9 = vsel %vm680_vm1, %v638_v60, %v5639_v42  ;;  %v783_v3 = vadd.f32 %v751_v39, %v617_v17  ;;  %v4674_v21 = vsel %vm1416_vm3, %v5304_v14, %v1414_v26  ;;  %v1556_v40 = vmul.f32 %v3082_v20, %v5643_v12  ;;  %v5644_v39 = vld [vmem:[#allocation62_spill] sm:$0xff]  ;;  %v5645_v17 = vld [vmem:[#allocation40_spill] sm:$0xff]  ;;  %v5646_v26 = vld [vmem:[#allocation41_spill] sm:$0xff] }
 0x1a9   : > { %5640 = vst [vmem:[#allocation19_spill] sm:$0xff] %v4664_v9  ;;  %v1639_v52 = vadd.f32 %v1607_v10, %v1571_v57  ;;  %v1288_v13 = vadd.f32 %v1256_v63, %v1220_v8  ;;  %v955_v45 = vmul.f32 %v2974_v51, %v4664_v9  ;;  %v368_v61 = vmul.f32 %v5644_v39, %v2921_v35  ;;  %v5647_v14 = vld [vmem:[#allocation47_spill] sm:$0xff]  ;;  %v5648_v12 = vld [vmem:[#allocation42_spill] sm:$0xff]  ;;  %v5649_v43 = vld [vmem:[#allocation77_spill] sm:$0xff] }
 0x1aa   : > { %v851_v60 = vadd.f32 %v819_v15, %v783_v3  ;;  %v436_v10 = vmul.f32 %v5645_v17, %v2924_v36  ;;  %v1008_v57 = vrot.slane %v4482_v32, 2  ;;  %v504_v42 = vmul.f32 %v5646_v26, %v2927_v37 }
 0x1ab   : > { %v1707_v8 = vadd.f32 %v1675_v0, %v1639_v52  ;;  %v1356_v63 = vadd.f32 %v1324_v31, %v1288_v13  ;;  %v1119_v15 = vmul.f32 %v3007_v18, %v5647_v14  ;;  %v572_v9 = vmul.f32 %v5648_v12, %v2930_v38  ;;  %v5650_v31 = vld [vmem:[#allocation22_spill] sm:$0xff] }
 0x1ac   : > { %v919_v19 = vadd.f32 %v887_v58, %v851_v60  ;;  %v468_v3 = vadd.f32 %v436_v10, %v368_v61  ;;  %v1624_v17 = vmul.f32 %v3085_v41, %v5649_v43  ;;  %v1187_v52 = vmul.f32 %v3023_v28, %v5650_v31 }
 0x1ad   : > { %1753 = vadd.xlane.f32.xlu0 %v1707_v8  ;;  %v1520_v39 = vadd.f32 %v1488_v54, %v1356_v63  ;;  %v738_v58 = vmul.f32 %v2965_v47, %v5651_v27  ;;  %v1692_v14 = vmul.f32 %v3092_v55, %v4674_v21  ;;  %v4701_v12 = vsel %vm1048_vm2, %v1008_v57, %v1027_v16  ;;  %v5653_v54 = vld [vmem:[#allocation76_spill] sm:$0xff]  ;;  %v5654_v27 = vld [vmem:[#allocation35_spill] sm:$0xff] }
 0x1ae   : > { %v987_v0 = vadd.f32 %v955_v45, %v919_v19  ;;  %v536_v13 = vadd.f32 %v504_v42, %v468_v3  ;;  %5652 = vst [vmem:[#allocation32_spill] sm:$0xff] %v4701_v12  ;;  %v1255_v61 = vmul.f32 %v3026_v29, %v5653_v54  ;;  %v1376_v45 = vrot.slane %v4482_v32, 3  ;;  %v5655_v42 = vld [vmem:[#allocation53_spill] sm:$0xff]  ;;  %v5656_v16 = vld [vmem:[#allocation52_spill] sm:$0xff] }
 0x1af   : > { %v1588_v60 = vadd.f32 %v1556_v40, %v1520_v39  ;;  %v806_v63 = vmul.f32 %v2968_v49, %v5615_v48  ;;  %v367_v40 = vmul.f32 %v5654_v27, %v2921_v35  ;;  %v435_v19 = vmul.f32 %v5655_v42, %v2924_v36  ;;  %v5659_v54 = vld [vmem:[#allocation60_spill] sm:$0xff] }
 0x1b0   : > { %v1151_v10 = vadd.f32 %v1119_v15, %v987_v0  ;;  %v604_v8 = vadd.f32 %v572_v9, %v536_v13  ;;  %v503_v57 = vmul.f32 %v5656_v16, %v2927_v37  ;;  %v1323_v15 = vmul.f32 %v3029_v34, %v4701_v12  ;;  %v5657_v9 = vld [vmem:[#allocation45_spill] sm:$0xff]  ;;  %v5660_v16 = vld [vmem:[#allocation46_spill] sm:$0xff] }
 0x1b1   : > { %v1656_v26 = vadd.f32 %v1624_v17, %v1588_v60  ;;  %v874_v48 = vmul.f32 %v2971_v50, %v5657_v9  ;;  %v520_v17 = vmul.f32 %v4577_v5, %v2927_v37  ;;  %v467_v13 = vadd.f32 %v435_v19, %v367_v40  ;;  %v5658_v60 = vld [vmem:[#allocation55_spill] sm:$0xff]  ;;  %v5664_v19 = vld [vmem:[#allocation78_spill] sm:$0xff] }
 0x1b2   : > { %v1219_v3 = vadd.f32 %v1187_v52, %v1151_v10  ;;  %v770_v39 = vadd.f32 %v738_v58, %v604_v8  ;;  %v571_v27 = vmul.f32 %v5658_v60, %v2930_v38  ;;  %v1487_v52 = vmul.f32 %v3064_v59, %v5659_v54  ;;  %v2314_v8 = vld [vmem:[%s2840_s21 + $0xd8] sm:$0xff]   ;;  %v283_v54 = vld [vmem:[%s2840_s21 + $0xe0] sm:$0xf]  ;;  %v5666_v60 = vld [vmem:[#allocation48_spill] sm:$0xff] }
 0x1b3   : > { %v1724_v0 = vadd.f32 %v1692_v14, %v1656_v26  ;;  %v942_v58 = vmul.f32 %v2974_v51, %v5660_v16  ;;  %v5661_v9 = vrot.slane %v4577_v5, 3  ;;  %v5663_v14 = vld [vmem:[#allocation27_spill] sm:$0xff]  ;;  %v535_v40 = vadd.f32 %v503_v57, %v467_v13 }
 0x1b4   : > { %v1287_v42 = vadd.f32 %v1255_v61, %v1219_v3  ;;  %v838_v10 = vadd.f32 %v806_v63, %v770_v39  ;;  %v1555_v26 = vmul.f32 %v3082_v20, %v5663_v14  ;;  %v737_v61 = vmul.f32 %v2965_v47, %v5625_v6 }
 0x1b5   : > { %1787 = vadd.xlane.f32.xlu1 %v1724_v0  ;;  %v4731_v12 = vsel %vm1416_vm3, %v1376_v45, %v5661_v9  ;;  %v1623_v3 = vmul.f32 %v3085_v41, %v5664_v19  ;;  %v5665_v0 = vld [vmem:[#allocation67_spill] sm:$0xff]  ;;  %v1174_v45 = vmul.f32 %v3023_v28, %v5666_v60  ;;  %v603_v16 = vadd.f32 %v571_v27, %v535_v40  ;;  %v5668_v27 = vld [vmem:[#allocation25_spill] sm:$0xff] }
 0x1b6   : > { %5662 = vst [vmem:[#allocation34_spill] sm:$0xff] %v4731_v12  ;;  %v1355_v63 = vadd.f32 %v1323_v15, %v1287_v42  ;;  %v906_v39 = vadd.f32 %v874_v48, %v838_v10  ;;  %v1106_v5 = vmul.f32 %v3007_v18, %v5665_v0  ;;  %v805_v9 = vmul.f32 %v2968_v49, %v5581_v1  ;;  %v5667_v15 = vld [vmem:[#allocation70_spill] sm:$0xff]  ;;  %v5669_v19 = vld [vmem:[#allocation49_spill] sm:$0xff] }
 0x1b7   : > { %v4746_v57 = vunpack.c.h.bf16 %v2314_v8  ;;  %v4748_v14 = vunpack.c.l.bf16 %v283_v54  ;;  %v384_v42 = vmul.f32 %v5667_v15, %v2921_v35  ;;  %v1691_v48 = vmul.f32 %v3092_v55, %v4731_v12 }
 0x1b8   : > { %v1519_v13 = vadd.f32 %v1487_v52, %v1355_v63  ;;  %v974_v6 = vadd.f32 %v942_v58, %v906_v39  ;;  %v769_v10 = vadd.f32 %v737_v61, %v603_v16  ;;  %v873_v0 = vmul.f32 %v2971_v50, %v5627_v33  ;;  %v5670_v58 = vld [vmem:[#allocation50_spill] sm:$0xff]  ;;  %v5671_v39 = vld [vmem:[#allocation61_spill] sm:$0xff] }
 0x1b9   : > { %v452_v40 = vmul.f32 %v5668_v27, %v2924_v36  ;;  %v1242_v52 = vmul.f32 %v3026_v29, %v5669_v19  ;;  %v1310_v54 = vmul.f32 %v3029_v34, %v5670_v58  ;;  %v941_v15 = vmul.f32 %v2974_v51, %v5671_v39  ;;  %v5674_v58 = vld [vmem:[#allocation66_spill] sm:$0xff] }
 0x1ba   : > { %v1587_v1 = vadd.f32 %v1555_v26, %v1519_v13  ;;  %v1138_v60 = vadd.f32 %v1106_v5, %v974_v6  ;;  %v837_v63 = vadd.f32 %v805_v9, %v769_v10  ;;  %v588_v61 = vmul.f32 %v4746_v57, %v2930_v38 }
 0x1bb   : > { %v484_v12 = vadd.f32 %v452_v40, %v384_v42  ;;  %v658_v27 = vrot.slane %v4746_v57, 1  ;;  %v677_v26 = vrot.slane %v4748_v14, 1  ;;  %v1105_v19 = vmul.f32 %v3007_v18, %v5588_v30  ;;  %v5672_v40 = vld [vmem:[#allocation20_spill] sm:$0xff] }
 0x1bc   : > { %v1655_v33 = vadd.f32 %v1623_v3, %v1587_v1  ;;  %v1206_v16 = vadd.f32 %v1174_v45, %v1138_v60  ;;  %v905_v5 = vadd.f32 %v873_v0, %v837_v63  ;;  %v754_v9 = vmul.f32 %v2965_v47, %v4264_v62 }
 0x1bd   : > { %v552_v13 = vadd.f32 %v520_v17, %v484_v12  ;;  %v519_v6 = vmul.f32 %v4482_v32, %v2927_v37  ;;  %v1474_v3 = vmul.f32 %v3064_v59, %v5672_v40  ;;  %v1173_v1 = vmul.f32 %v3023_v28, %v5630_v53 }
 0x1be   : > { %v1723_v42 = vadd.f32 %v1691_v48, %v1655_v33  ;;  %v1274_v10 = vadd.f32 %v1242_v52, %v1206_v16  ;;  %v973_v45 = vadd.f32 %v941_v15, %v905_v5  ;;  %v822_v30 = vmul.f32 %v2968_v49, %v5632_v2  ;;  %v5673_v52 = vld [vmem:[#allocation57_spill] sm:$0xff]  ;;  %v5675_v5 = vld [vmem:[#allocation24_spill] sm:$0xff] }
 0x1bf   : > { %v620_v0 = vadd.f32 %v588_v61, %v552_v13  ;;  %v1542_v62 = vmul.f32 %v3082_v20, %v5628_v25  ;;  %v1610_v37 = vmul.f32 %v3085_v41, %v5629_v46  ;;  %v699_v32 = vsel %vm680_vm1, %v658_v27, %v677_v26 }
 0x1c0   : > { %1785 = vadd.xlane.f32.xlu0 %v1723_v42  ;;  %v1342_v12 = vadd.f32 %v1310_v54, %v1274_v10  ;;  %v1137_v17 = vadd.f32 %v1105_v19, %v973_v45  ;;  %v1241_v53 = vmul.f32 %v3026_v29, %v5631_v4  ;;  %v890_v2 = vmul.f32 %v2971_v50, %v4615_v24  ;;  %v5676_v42 = vld [vmem:[#allocation68_spill] sm:$0xff]  ;;  %v5677_v45 = vld [vmem:[#allocation43_spill] sm:$0xff] }
 0x1c1   : > { %v786_v48 = vadd.f32 %v754_v9, %v620_v0  ;;  %v1678_v25 = vmul.f32 %v3092_v55, %v5673_v52  ;;  %v1309_v46 = vmul.f32 %v3029_v34, %v5674_v58  ;;  %v4796_v54 = vunpack.c.l.bf16 %v2314_v8 }
 0x1c2   : > { %v1506_v60 = vadd.f32 %v1474_v3, %v1342_v12  ;;  %v1205_v63 = vadd.f32 %v1173_v1, %v1137_v17  ;;  %v958_v15 = vmul.f32 %v2974_v51, %v699_v32  ;;  %v383_v4 = vmul.f32 %v4248_v22, %v2921_v35  ;;  %v5679_v17 = vld [vmem:[#allocation71_spill] sm:$0xff] }
 0x1c3   : > { %v854_v39 = vadd.f32 %v822_v30, %v786_v48  ;;  %v1028_v33 = vrot.slane %v4746_v57, 2  ;;  %v1047_v24 = vrot.slane %v4748_v14, 2  ;;  %v451_v16 = vmul.f32 %v4456_v11, %v2924_v36 }
 0x1c4   : > { %v1574_v61 = vadd.f32 %v1542_v62, %v1506_v60  ;;  %v1273_v26 = vadd.f32 %v1241_v53, %v1205_v63  ;;  %v1473_v8 = vmul.f32 %v3064_v59, %v5675_v5  ;;  %v1122_v13 = vmul.f32 %v3007_v18, %v4292_v56 }
 0x1c5   : > { %v922_v19 = vadd.f32 %v890_v2, %v854_v39  ;;  %v1541_v35 = vmul.f32 %v3082_v20, %v5676_v42  ;;  %v483_v22 = vadd.f32 %v451_v16, %v383_v4  ;;  %v587_v10 = vmul.f32 %v4796_v54, %v2930_v38  ;;  %v5680_v2 = vld [vmem:[#allocation73_spill] sm:$0xff] }
 0x1c6   : > { %v1642_v9 = vadd.f32 %v1610_v37, %v1574_v61  ;;  %v1341_v40 = vadd.f32 %v1309_v46, %v1273_v26  ;;  %v1190_v36 = vmul.f32 %v3023_v28, %v5677_v45  ;;  %v639_v11 = vrot.slane %v4796_v54, 1  ;;  %v5678_v37 = vld [vmem:[#allocation30_spill] sm:$0xff]  ;;  %v5681_v46 = vld [vmem:[#allocation19_spill] sm:$0xff] }
 0x1c7   : > { %v990_v3 = vadd.f32 %v958_v15, %v922_v19  ;;  %v1067_v0 = vsel %vm1048_vm2, %v1028_v33, %v1047_v24  ;;  %v551_v56 = vadd.f32 %v519_v6, %v483_v22  ;;  %v753_v30 = vmul.f32 %v2965_v47, %v5638_v7 }
 0x1c8   : > { %v1710_v1 = vadd.f32 %v1678_v25, %v1642_v9  ;;  %v1505_v12 = vadd.f32 %v1473_v8, %v1341_v40  ;;  %v1609_v62 = vmul.f32 %v3085_v41, %v5637_v44  ;;  %v1258_v32 = vmul.f32 %v3026_v29, %v5678_v37  ;;  %v1734_v37 = vpop.xlane.xlu1 %1733 }
 0x1c9   : > { %v1154_v38 = vadd.f32 %v1122_v13, %v990_v3  ;;  %v1677_v53 = vmul.f32 %v3092_v55, %v5679_v17  ;;  %v619_v48 = vadd.f32 %v587_v10, %v551_v56  ;;  %v821_v60 = vmul.f32 %v2968_v49, %v5680_v2  ;;  %v5682_v49 = vld [vmem:[#allocation65_spill] sm:$0xff]  ;;  %v5683_v13 = vld [vmem:[#allocation76_spill] sm:$0xff] }
 0x1ca   : > { %1759 = vadd.xlane.f32.xlu1 %v1710_v1  ;;  %v1573_v6 = vadd.f32 %v1541_v35, %v1505_v12  ;;  %v1326_v47 = vmul.f32 %v3029_v34, %v1067_v0  ;;  %v718_v44 = vsel %vm680_vm1, %v639_v11, %v658_v27  ;;  %v1396_v7 = vrot.slane %v4746_v57, 3  ;;  %v5684_v10 = vld [vmem:[#allocation32_spill] sm:$0xff]  ;;  %v5685_v11 = vld [vmem:[#allocation27_spill] sm:$0xff]  ;;  %v5686_v0 = vld [vmem:[#allocation78_spill] sm:$0xff] }
 0x1cb   : > { %v1222_v52 = vadd.f32 %v1190_v36, %v1154_v38  ;;  %v1415_v25 = vrot.slane %v4748_v14, 3  ;;  %v785_v58 = vadd.f32 %v753_v30, %v619_v48  ;;  %v889_v63 = vmul.f32 %v2971_v50, %v5681_v46  ;;  %v5687_v30 = vld [vmem:[#allocation34_spill] sm:$0xff] }
 0x1cc   : > { %v1641_v39 = vadd.f32 %v1609_v62, %v1573_v6  ;;  %v1490_v4 = vmul.f32 %v3064_v59, %v5682_v49  ;;  %v957_v24 = vmul.f32 %v2974_v51, %v718_v44  ;;  %v1558_v27 = vmul.f32 %v3082_v20, %v5649_v43 }
 0x1cd   : > { %v1290_v15 = vadd.f32 %v1258_v32, %v1222_v52  ;;  %v853_v61 = vadd.f32 %v821_v60, %v785_v58  ;;  %v1009_v57 = vrot.slane %v4796_v54, 2  ;;  %v1435_v14 = vsel %vm1416_vm3, %v1396_v7, %v1415_v25  ;;  %v1736_v32 = vpop.xlane.xlu1 %1735 }
 0x1ce   : > { %v1709_v16 = vadd.f32 %v1677_v53, %v1641_v39  ;;  %v1121_v50 = vmul.f32 %v3007_v18, %v5650_v31  ;;  %v1626_v19 = vmul.f32 %v3085_v41, %v4674_v21  ;;  %v1189_v9 = vmul.f32 %v3023_v28, %v5683_v13 }
 0x1cf   : > { %v1358_v26 = vadd.f32 %v1326_v47, %v1290_v15  ;;  %v921_v5 = vadd.f32 %v889_v63, %v853_v61  ;;  %v1694_v43 = vmul.f32 %v3092_v55, %v1435_v14  ;;  %v1086_v35 = vsel %vm1048_vm2, %v1009_v57, %v1028_v33 }
 0x1d0   : > { %1757 = vadd.xlane.f32.xlu0 %v1709_v16  ;;  %v1257_v40 = vmul.f32 %v3026_v29, %v5684_v10  ;;  %v1325_v3 = vmul.f32 %v3029_v34, %v1086_v35  ;;  %v1377_v21 = vrot.slane %v4796_v54, 3  ;;  %v1489_v28 = vmul.f32 %v3064_v59, %v5685_v11  ;;  %v1730_v59 = vpop.xlane.xlu0 %1729 }
 0x1d1   : > { %v1522_v8 = vadd.f32 %v1490_v4, %v1358_v26  ;;  %v989_v51 = vadd.f32 %v957_v24, %v921_v5  ;;  %v1557_v33 = vmul.f32 %v3082_v20, %v5686_v0  ;;  %v1625_v12 = vmul.f32 %v3085_v41, %v5687_v30  ;;  %v4867_v53 = vpop.xlane.xlu1 %1763 }
 0x1d2   : > { %v1454_v56 = vsel %vm1416_vm3, %v1377_v21, %v1396_v7  ;;  %v5688_v4 = vlaneseq  ;;  %v1796_v57 = vmul.f32 0.00390625, %v1736_v32  ;;  %v1795_v5 = vmul.f32 0.00390625, %v1734_v37 }
 0x1d3   : > { %v1590_v42 = vadd.f32 %v1558_v27, %v1522_v8  ;;  %v1153_v22 = vadd.f32 %v1121_v50, %v989_v51  ;;  %v1693_v62 = vmul.f32 %v3092_v55, %v1454_v56  ;;  %vm2009_vm7 = vcmask 1043459  }
 0x1d4   : > { %v1732_v17 = vpop.xlane.xlu0 %1731  ;;  %v1858_v61 = vand.u32 127, %v5688_v4  ;;  %vm2011_vm8 = vcmask 1044484   ;;  %vm2013_vm9 = vcmask 1045509   ;;  %vm2015_vm10 = vcmask 1046534  }
 0x1d5   : > { %v1658_v18 = vadd.f32 %v1626_v19, %v1590_v42  ;;  %v1221_v31 = vadd.f32 %v1189_v9, %v1153_v22  ;;  %v4871_v48 = vpop.xlane.xlu1 %1767  ;;  %v1794_v50 = vmul.f32 0.00390625, %v1732_v17  ;;  %v1793_v9 = vmul.f32 0.00390625, %v1730_v59 }
 0x1d6   : > { %v1863_v26 = vadd.s32 4294967288, %v1858_v61  ;;  %v4896_v14 = vsub.s32 %v1858_v61, %v2905_v23  ;;  %vm2017_vm11 = vcmask 1047559   ;;  %vm2030_vm12 = vcmask 130048  }
 0x1d7   : > { %v1726_v45 = vadd.f32 %v1694_v43, %v1658_v18  ;;  %v1289_v36 = vadd.f32 %v1257_v40, %v1221_v31 }
 0x1d8   : > { %v4869_v20 = vpop.xlane.xlu0 %1761  ;;  %v4893_v27 = vsub.s32 %v1863_v26, %v2905_v23  ;;  %v1873_v22 = vrot.slane %v1795_v5, %v4896_v14  ;;  %v1862_v21 = vrot.slane %v1793_v9, %v4896_v14  ;;  %v1727_v26 = vld [vmem:[%s2855_s29] sm:$0xff] }
 0x1d9   : > { %1791 = vadd.xlane.f32.xlu1 %v1726_v45  ;;  %v1357_v1 = vadd.f32 %v1325_v3, %v1289_v36  ;;  %v1740_v60 = vpop.xlane.xlu1 %1739 }
 0x1da   : > { %v1798_v51 = vmul.f32 0.00390625, %v1740_v60  ;;  %v1877_v42 = vrot.slane %v1796_v57, %v4893_v27  ;;  %v1867_v10 = vrot.slane %v1794_v50, %v4893_v27 }
 0x1db   : > { %v1521_v29 = vadd.f32 %v1489_v28, %v1357_v1 }
 0x1dc   : > { %v4873_v2 = vpop.xlane.xlu0 %1765  ;;  %v1886_v18 = vrot.slane %v1798_v51, %v4893_v27  ;;  %v1878_v0 = vsel %vm1868_vm4, %v1877_v42, %v1873_v22  ;;  %v1812_v51 = vmul.f32 0.00390625, %v4871_v48 }
 0x1dd   : > { %v1589_v34 = vadd.f32 %v1557_v33, %v1521_v29  ;;  %v4875_v6 = vpop.xlane.xlu1 %1771  ;;  %v1869_v29 = vsel %vm1868_vm4, %v1867_v10, %v1862_v21 }
 0x1de   : > { %v2006_v32 = vsel %vm2005_vm5, %v1878_v0, %v1869_v29  ;;  %v1814_v9 = vmul.f32 0.00390625, %v4875_v6 }
 0x1df   : > { %v1657_v54 = vadd.f32 %v1625_v12, %v1589_v34 }
 0x1e0   : > { %v1738_v41 = vpop.xlane.xlu0 %1737 }
 0x1e1   : > { %v1725_v38 = vadd.f32 %v1693_v62, %v1657_v54  ;;  %v1744_v52 = vpop.xlane.xlu1 %1743  ;;  %v1797_v13 = vmul.f32 0.00390625, %v1738_v41 }
 0x1e2   : > { %v1800_v43 = vmul.f32 0.00390625, %v1744_v52 }
 0x1e3   : > { %1789 = vadd.xlane.f32.xlu0 %v1725_v38  ;;  %v1882_v31 = vrot.slane %v1797_v13, %v4896_v14  ;;  %v1811_v13 = vmul.f32 0.00390625, %v4873_v2  ;;  %v1949_v2 = vrot.slane %v1812_v51, %v4893_v27 }
 0x1e4   : > { %v4877_v55 = vpop.xlane.xlu0 %1769  ;;  %v1895_v33 = vrot.slane %v1800_v43, %v4893_v27  ;;  %v1810_v43 = vmul.f32 0.00390625, %v4867_v53  ;;  %v1958_v53 = vrot.slane %v1814_v9, %v4893_v27 }
 0x1e5   : > { %v4879_v44 = vpop.xlane.xlu1 %1775  ;;  %v1887_v34 = vsel %vm1868_vm4, %v1886_v18, %v1882_v31  ;;  %v1813_v42 = vmul.f32 0.00390625, %v4877_v55  ;;  %v1945_v6 = vrot.slane %v1811_v13, %v4896_v14 }
 0x1e6   : > { %v2008_v60 = vsel %vm2007_vm6, %v1887_v34, %v2006_v32  ;;  %v1816_v22 = vmul.f32 0.00390625, %v4879_v44 }
 0x1e8   : > { %v1742_v47 = vpop.xlane.xlu0 %1741  ;;  %v1967_v31 = vrot.slane %v1816_v22, %v4893_v27 }
 0x1e9   : > { %v1748_v25 = vpop.xlane.xlu1 %1747  ;;  %v1799_v35 = vmul.f32 0.00390625, %v1742_v47 }
 0x1ea   : > { %v1802_v40 = vmul.f32 0.00390625, %v1748_v25 }
 0x1eb   : > { %v1891_v56 = vrot.slane %v1799_v35, %v4896_v14  ;;  %v1809_v35 = vmul.f32 0.00390625, %v4869_v20  ;;  %v1954_v20 = vrot.slane %v1813_v42, %v4896_v14 }
 0x1ec   : > { %v4881_v7 = vpop.xlane.xlu0 %1773  ;;  %v1904_v30 = vrot.slane %v1802_v40, %v4893_v27 }
 0x1ed   : > { %v1896_v17 = vsel %vm1868_vm4, %v1895_v33, %v1891_v56  ;;  %v1815_v10 = vmul.f32 0.00390625, %v4881_v7 }
 0x1f2   : > { %v1746_v58 = vpop.xlane.xlu0 %1745 }
 0x1f3   : > { %v1801_v23 = vmul.f32 0.00390625, %v1746_v58 }
 0x1f5   : > { %v1900_v12 = vrot.slane %v1801_v23, %v4896_v14 }
 0x1f7   : > { %v1905_v41 = vsel %vm1868_vm4, %v1904_v30, %v1900_v12 }
 0x1fc   : > { %v4883_v46 = vpop.xlane.xlu1 %1779 }
 0x1fd   : > { %v1818_v40 = vmul.f32 0.00390625, %v4883_v46  ;;  %v1940_v46 = vrot.slane %v1810_v43, %v4893_v27 }
 0x207   : > { %v4885_v63 = vpop.xlane.xlu0 %1777 }
 0x208   : > { %v1817_v48 = vmul.f32 0.00390625, %v4885_v63  ;;  %v1936_v63 = vrot.slane %v1809_v35, %v4896_v14 }
 0x20a   : > { %v1941_v0 = vsel %vm1868_vm4, %v1940_v46, %v1936_v63 }
 0x20e   : > { %v1752_v39 = vpop.xlane.xlu1 %1751 }
 0x20f   : > { %v1804_v3 = vmul.f32 0.00390625, %v1752_v39  ;;  %v2010_v39 = vsel %vm2009_vm7, %v1896_v17, %v2008_v60  ;;  %v1728_v60 = vld [vmem:[%s2855_s29 + $0x8] sm:$0xff] }
 0x210   : > { %v2012_v4 = vsel %vm2011_vm8, %v1905_v41, %v2010_v39 }
 0x211   : > { %v1913_v62 = vrot.slane %v1804_v3, %v4893_v27  ;;  %v1963_v3 = vrot.slane %v1815_v10, %v4896_v14 }
 0x213   : > { %v1968_v33 = vsel %vm1868_vm4, %v1967_v31, %v1963_v3 }
 0x216   : > { %v1750_v15 = vpop.xlane.xlu0 %1749 }
 0x217   : > { %v1803_v45 = vmul.f32 0.00390625, %v1750_v15 }
 0x219   : > { %v1909_v54 = vrot.slane %v1803_v45, %v4896_v14  ;;  %v1950_v45 = vsel %vm1868_vm4, %v1949_v2, %v1945_v6 }
 0x21a   : > { %v2019_v56 = vsel %vm2005_vm5, %v1950_v45, %v1941_v0 }
 0x21b   : > { %v1914_v47 = vsel %vm1868_vm4, %v1913_v62, %v1909_v54 }
 0x21e   : > { %v4887_v49 = vpop.xlane.xlu1 %1783 }
 0x21f   : > { %v1820_v55 = vmul.f32 0.00390625, %v4887_v49  ;;  %v1976_v49 = vrot.slane %v1818_v40, %v4893_v27 }
 0x221   : > { %v1985_v21 = vrot.slane %v1820_v55, %v4893_v27 }
 0x22b   : > { %v4890_v24 = vpop.xlane.xlu0 %1781 }
 0x22c   : > { %v1819_v23 = vmul.f32 0.00390625, %v4890_v24  ;;  %v1972_v24 = vrot.slane %v1817_v48, %v4896_v14 }
 0x22e   : > { %v1977_v29 = vsel %vm1868_vm4, %v1976_v49, %v1972_v24 }
 0x233   : > { %v1756_v16 = vpop.xlane.xlu1 %1755 }
 0x234   : > { %v1806_v36 = vmul.f32 0.00390625, %v1756_v16  ;;  %v2014_v16 = vsel %vm2013_vm9, %v1914_v47, %v2012_v4 }
 0x236   : > { %v1922_v37 = vrot.slane %v1806_v36, %v4893_v27 }
 0x23a   : > { %v1754_v8 = vpop.xlane.xlu0 %1753 }
 0x23b   : > { %v1805_v11 = vmul.f32 0.00390625, %v1754_v8 }
 0x23d   : > { %v1918_v59 = vrot.slane %v1805_v11, %v4896_v14  ;;  %v1959_v11 = vsel %vm1868_vm4, %v1958_v53, %v1954_v20 }
 0x23e   : > { %v2020_v12 = vsel %vm2007_vm6, %v1959_v11, %v2019_v56 }
 0x23f   : > { %v1923_v15 = vsel %vm1868_vm4, %v1922_v37, %v1918_v59 }
 0x240   : > { %v2016_v57 = vsel %vm2015_vm10, %v1923_v15, %v2014_v16 }
 0x242   : > { %v4898_v19 = vpop.xlane.xlu1 %1787 }
 0x243   : > { %v1822_v44 = vmul.f32 0.00390625, %v4898_v19  ;;  %v1981_v19 = vrot.slane %v1819_v23, %v4896_v14 }
 0x245   : > { %v1986_v34 = vsel %vm1868_vm4, %v1985_v21, %v1981_v19 }
 0x24d   : > { %v1786_v28 = vpop.xlane.xlu0 %1785 }
 0x24e   : > { %v1821_v18 = vmul.f32 0.00390625, %v1786_v28  ;;  %v1994_v28 = vrot.slane %v1822_v44, %v4893_v27 }
 0x257   : > { %v1760_v1 = vpop.xlane.xlu1 %1759 }
 0x258   : > { %v1808_v38 = vmul.f32 0.00390625, %v1760_v1  ;;  %v1990_v1 = vrot.slane %v1821_v18, %v4896_v14 }
 0x25a   : > { %v1931_v25 = vrot.slane %v1808_v38, %v4893_v27  ;;  %v2021_v38 = vsel %vm2009_vm7, %v1968_v33, %v2020_v12  ;;  %v1995_v37 = vsel %vm1868_vm4, %v1994_v28, %v1990_v1 }
 0x25b   : > { %v2022_v59 = vsel %vm2011_vm8, %v1977_v29, %v2021_v38 }
 0x25c   : > { %v2023_v17 = vsel %vm2013_vm9, %v1986_v34, %v2022_v59 }
 0x25d   : > { %v1758_v52 = vpop.xlane.xlu0 %1757  ;;  %v2024_v41 = vsel %vm2015_vm10, %v1995_v37, %v2023_v17 }
 0x25e   : > { %v1807_v58 = vmul.f32 0.00390625, %v1758_v52 }
 0x260   : > { %v1927_v61 = vrot.slane %v1807_v58, %v4896_v14 }
 0x262   : > { %v1932_v5 = vsel %vm1868_vm4, %v1931_v25, %v1927_v61 }
 0x263   : > { %v2018_v50 = vsel %vm2017_vm11, %v1932_v5, %v2016_v57 }
 0x264   : > { %v2028_v8 = vadd.f32 %v2018_v50, %v1727_v26 }
 0x266   : > { %2031 = vst.msk [vmem:[%s2855_s29] sm:$0xff] %vm2030_vm12, %v2028_v8  ;;  %v1792_v7 = vpop.xlane.xlu1 %1791 }
 0x267   : > { %v1824_v36 = vmul.f32 0.00390625, %v1792_v7 }
 0x269   : > { %v2003_v62 = vrot.slane %v1824_v36, %v4893_v27 }
 0x270   : > { %v1790_v30 = vpop.xlane.xlu0 %1789 }
 0x271   : > { %v1823_v54 = vmul.f32 0.00390625, %v1790_v30 }
 0x273   : > { %v1999_v32 = vrot.slane %v1823_v54, %v4896_v14 }
 0x275   : > { %v2004_v27 = vsel %vm1868_vm4, %v2003_v62, %v1999_v32 }
 0x276   : > { %v2025_v52 = vsel %vm2017_vm11, %v2004_v27, %v2024_v41 }
 0x277   : > { %v2029_v14 = vadd.f32 %v2025_v52, %v1728_v60 }
 0x279   : > { %2032 = vst.msk [vmem:[%s2855_s29 + $0x8] sm:$0xff] %vm2030_vm12, %v2029_v14 }
 0x27a   : > { %2506 = shalt.err (!%p2503_p13)
}
 0x27b   : > { %s2507_s25 = scalar_lea.hbm %s4984_s14, 256  ;;  %s2511_s0 = scalar_lea.hbm %s5055_s2, 512 }
 0x27c   : > { %p2508_p0 = scmp.ne.s32.totalorder %s4984_s14, %s2507_s25  ;;  %p2512_p9 = scmp.lt.u32.totalorder %s4984_s14, %s5055_s2 }
 0x27d   : > { %p2513_p7 = scmp.lt.u32.totalorder %s2511_s0, %s2507_s25  ;;  %p2515_p5 = scmp.lt.u32.totalorder %s2507_s25, %s4984_s14 }
 0x27e   : > { %p2509_p3 = pnand %p2508_p0, %p5689_p8 }
 0x27f   : > { %p2514_p4 = por %p2513_p7, %p2512_p9 }
 0x280   : > { %p2510_p6 = pneg %p2509_p3 }
 0x281   : > { %p2516_p1 = por %p2515_p5, %p2514_p4 }
 0x283   : > { %p2517_p10 = pnand %p2516_p1, %p2510_p6 }
 0x285   : > { %2520 = shalt.err (!%p2517_p10)
}
 0x286   : > { %s2630_s27 = smov 128   ;;  %s2631_s7 = smov 8  }
 0x287   : > { %2322 = dma.vmem_to_hbm [thread:$0]  (%p5689_p8), %s4986_s28, 256, %s4984_s14, %s4992_s16, %s2630_s27, %s2630_s27, %s2631_s7  }
 0x288 PF: > { %p2336_p11 = scmp.ge.s32.totalorder %s2619_s19, 2  ;;  %s2062_s11 = sand.u32 1, %s2579_s9  }
 0x289   : > { %p5690_p12 = scmp.ne.s32.totalorder %s5319_s6, 0  ;;  %s2063_s24 = scalar_lea.sflag [#allocation4], %s2062_s11 }
 0x28b   : > { %p2332_p2 = pnand %p2336_p11, %p5690_p12 }
 0x28d   : > { %2574 = dma.done.wait (!%p2332_p2), %s2063_s24, 256  }
 0x28e   : > { %2576 = vsyncadd (!%p2332_p2), %s2063_s24, 4294967040  ;;  %s21_s19 = sadd.s32 1, %s2619_s19   ;;  %s5691_s29 = sld [smem:[#allocation11_spill]] }
 0x28f   : > { %p18_p13 = scmp.ge.s32.totalorder %s21_s19, 6   ;;  %s5692_s11 = sld [smem:[#allocation15_spill]] }
 0x290   : > { %s5693_s3 = sld [smem:[#allocation12_spill]]  ;;  %s5694_s14 = sld [smem:[#allocation16_spill]] }
 0x291   : > { %s5695_s28 = sld [smem:[#allocation13_spill]]  ;;  %s5696_s23 = sld [smem:[#allocation14_spill]] }
 0x292   : > { %s5697_s9 = smov %s2583_s10  ;;  %s5699_s12 = smov %s2595_s13 }
 0x293   : > { %s5701_s15 = smov %s2611_s17  ;;  %s5702_s16 = smov %s2615_s18 }
 0x294   : > { %s5698_s10 = smov %s5691_s29  ;;  %20 = sbr.rel (!%p18_p13) target bundleno = 13 (0xd), region = 90 }
 0x296   : > { %s5700_s13 = smov %s5693_s3 }
 0x297   : > { %s5703_s17 = smov %s5695_s28  ;;  %s5704_s18 = smov %s5696_s23 }
 0x29b   :  { %2068 = vsyncpa [#allocation3], 1 }
 0x29c   :  { %2070 = vsyncpa [#allocation3 + $0x1], 1 }
 0x29d   :  { %2071 = vsyncpa [#allocation6], 1 }
 0x29e   :  { %2073 = vsyncpa [#allocation6 + $0x1], 1 }
 0x29f   :  { %2074 = vsyncpa [#allocation4], 1 }
 0x2a0   :  { %2076 = vsyncpa [#allocation4 + $0x1], 1 }

</bundles_post_ra>
